<compile_context>
chip_gen: v6e
topology: v6e:2x2x1
jax: 0.10.0
libtpu: 0.0.40
codegen_flags: <defaults>
</compile_context>

<pallas_src>
import functools

import jax
import jax.numpy as jnp
from jax.experimental import pallas as pl
from jax.experimental.pallas import tpu as pltpu


def _round_up(x, m):
    return (x + m - 1) // m * m


def _tpu_defaults():
    """Generation-aware defaults (MXU width, VMEM limit, L-tile size)."""
    try:
        kind = jax.devices()[0].device_kind.lower()
    except Exception:
        kind = ""
    wide_mxu = ("v6" in kind) or ("v7" in kind)          # 256-wide MXU parts
    if "v7" in kind:                                      # 64 MiB VMEM part
        vmem_limit, max_l_tile = 48 * 1024 * 1024, 1024
    elif wide_mxu or ("v5" in kind) or ("v4" in kind):    # 128 MiB VMEM parts
        vmem_limit, max_l_tile = 96 * 1024 * 1024, 2048
    else:                                                 # unknown: conservative
        vmem_limit, max_l_tile = 48 * 1024 * 1024, 1024
    return dict(fuse_shortcut=wide_mxu,
                use_im2col=wide_mxu or (not kind),
                vmem_limit_bytes=vmem_limit,
                max_l_tile=max_l_tile)


# ---------------------------------------------------------------------------
# Fused kernel: whole residual block for one (batch, L-tile) grid point.
# ---------------------------------------------------------------------------
def _fused_residual_kernel(x_hbm, w1_ref, w2_ref, w3_ref, ws_ref, bias_ref,
                           o_ref, x_vmem, dma_sem, *,
                           L_tile, H, L_valid, C_out_p, compute_dtype,
                           fuse_shortcut, use_im2col):
    n = pl.program_id(0)
    i = pl.program_id(1)
    num_tiles = pl.num_programs(1)
    rows_in = L_tile + 2 * H
    cur = jax.lax.rem(i, 2)

    def slab_copy(tile_idx, slot):
        start = pl.multiple_of(tile_idx * L_tile, 8)
        return pltpu.make_async_copy(
            x_hbm.at[n, pl.ds(start, rows_in), :], x_vmem.at[slot],
            dma_sem.at[slot])

    # Cold start: the first tile of this batch row has nothing prefetched.
    @pl.when(i == 0)
    def _():
        slab_copy(0, 0).start()

    # Wait for this tile's slab (issued just above, or prefetched by tile i-1).
    slab_copy(i, cur).wait()

    # Prefetch tile i+1's slab into the other buffer; hidden behind compute.
    @pl.when(i + 1 < num_tiles)
    def _():
        slab_copy(i + 1, 1 - cur).start()

    t0 = i * L_tile                       # global index of first output row

    def conv(x, w_ref, K, rows_out):
        if use_im2col:
            # One deep-contraction matmul: (rows_out, K*C) @ (K*C, C_cols).
            cols = jnp.concatenate([x[k:k + rows_out, :] for k in range(K)],
                                   axis=-1)
            return jnp.dot(cols, w_ref[...], preferred_element_type=jnp.float32)
        # v5e path: K shallow accumulating matmuls (128-deep MXU passes, no
        # big im2col concat buffer).
        c = x.shape[-1]
        acc = None
        for k in range(K):
            p = jnp.dot(x[k:k + rows_out, :], w_ref[k * c:(k + 1) * c, :],
                        preferred_element_type=jnp.float32)
            acc = p if acc is None else acc + p
        return acc

    def act(y):                                           # LeakySineLU
        s = jnp.sin(y) ** 2 + y
        return jnp.maximum(0.1 * s, s)

    def mask_rows(y, first_global_row):
        # Zero rows outside [0, L_valid): emulates the zero 'same' padding the
        # reference applies between conv layers.
        r = y.shape[0]
        g = first_global_row + jax.lax.broadcasted_iota(jnp.int32, (r, 1), 0)
        return jnp.where((g >= 0) & (g < L_valid), y, 0.0)

    def mask_if_edge(y, first_global_row):
        # Only tiles whose halo'd row range leaves [0, L_valid) need masking.
        needs_mask = jnp.logical_or(t0 < 3, t0 + L_tile + 3 > L_valid)
        return jax.lax.cond(needs_mask,
                            lambda v: mask_rows(v, first_global_row),
                            lambda v: v, y)

    x = x_vmem[cur]                                       # (L_tile+2H, C_in_p)

    # conv1 (k=7) [+ fused 1x1 shortcut columns] : rows [t0-3, t0+L_tile+3)
    r1 = conv(x, w1_ref, 7, L_tile + 2 * H - 6)
    if fuse_shortcut:
        h1_pre = r1[:, :C_out_p]
        sc = r1[3:3 + L_tile, C_out_p:] + bias_ref[3:4, :]
    else:
        h1_pre = r1
        sc = jnp.dot(x[H:H + L_tile, :], ws_ref[...],
                     preferred_element_type=jnp.float32) + bias_ref[3:4, :]

    h1 = act(h1_pre + bias_ref[0:1, :])
    h1 = mask_if_edge(h1, t0 - 3).astype(compute_dtype)

    # conv2 (k=5) + bn2 + act : rows [t0-1, t0+L_tile+1)
    h2 = act(conv(h1, w2_ref, 5, L_tile + 2) + bias_ref[1:2, :])
    h2 = mask_if_edge(h2, t0 - 1).astype(compute_dtype)

    # conv3 (k=3) + bn3 : rows [t0, t0+L_tile)
    h3 = conv(h2, w3_ref, 3, L_tile) + bias_ref[2:3, :]

    o_ref[0] = act(h3 + sc).astype(o_ref.dtype)


# ---------------------------------------------------------------------------
# Parameter init.
# ---------------------------------------------------------------------------
def init_params(key, in_channels, out_channels):
    ks = jax.random.split(key, 8)

    def conv_w(k, c_out, c_in, ksize):
        bound = 1.0 / jnp.sqrt(float(c_in * ksize))
        return jax.random.uniform(k, (c_out, c_in, ksize), jnp.float32,
                                  -bound, bound)

    def bn(k, c):
        k1, k2, k3, k4 = jax.random.split(k, 4)
        gamma = jax.random.uniform(k1, (c,), jnp.float32, 0.5, 1.5)
        beta = jax.random.uniform(k2, (c,), jnp.float32, -0.5, 0.5)
        mean = jax.random.uniform(k3, (c,), jnp.float32, -0.5, 0.5)
        var = jax.random.uniform(k4, (c,), jnp.float32, 0.5, 1.5)
        return gamma, beta, mean, var

    return dict(
        w1=conv_w(ks[0], out_channels, in_channels, 7), bn1=bn(ks[1], out_channels),
        w2=conv_w(ks[2], out_channels, out_channels, 5), bn2=bn(ks[3], out_channels),
        w3=conv_w(ks[4], out_channels, out_channels, 3), bn3=bn(ks[5], out_channels),
        ws=conv_w(ks[6], out_channels, in_channels, 1), bns=bn(ks[7], out_channels),
    )


# ---------------------------------------------------------------------------
# Forward pass, channels-last (N, L, C) -- single fused pallas_call.
# ---------------------------------------------------------------------------
def residual_module_forward_nlc(params, x_nlc, *, compute_dtype=jnp.bfloat16,
                                max_l_tile=None, fuse_shortcut=None,
                                use_im2col=None, vmem_limit_bytes=None):
    dflt = _tpu_defaults()
    if max_l_tile is None:
        max_l_tile = dflt["max_l_tile"]
    if fuse_shortcut is None:
        fuse_shortcut = dflt["fuse_shortcut"]
    if use_im2col is None:
        use_im2col = dflt["use_im2col"]
    if vmem_limit_bytes is None:
        vmem_limit_bytes = dflt["vmem_limit_bytes"]

    N, L, C_in = x_nlc.shape
    C_out = params["w1"].shape[0]
    C_in_p = _round_up(C_in, 128)
    C_out_p = _round_up(C_out, 128)
    H = 6                                          # total halo: 3 + 2 + 1

    max_l_tile = _round_up(max(int(max_l_tile), 8), 8)   # (8,128) alignment fix
    L_tile = min(max_l_tile, _round_up(L, 8))
    num_tiles = pl.cdiv(L, L_tile)
    L_pad = num_tiles * L_tile

    # Lane-dense channels; pad L with halo + tile remainder (zeros).
    x = jnp.pad(x_nlc.astype(compute_dtype),
                ((0, 0), (H, H + L_pad - L), (0, C_in_p - C_in)))

    # Fold inference-mode BN into a per-channel scale (into the conv weights)
    # and bias (added in the kernel epilogue).
    def fold_bn(bn_p, eps=1e-5):
        gamma, beta, mean, var = bn_p
        s = gamma / jnp.sqrt(var + eps)
        return s, beta - mean * s

    s1, b1 = fold_bn(params["bn1"])
    s2, b2 = fold_bn(params["bn2"])
    s3, b3 = fold_bn(params["bn3"])
    ss, bs = fold_bn(params["bns"])
    biases = jnp.stack([jnp.pad(b, (0, C_out_p - C_out))
                        for b in (b1, b2, b3, bs)]).astype(jnp.float32)

    def prep_w(w_oik, cin_p, scale):
        # torch (C_out, C_in, K) -> im2col layout (K*cin_p, C_out_p), BN scale folded.
        c_o, c_i, k = w_oik.shape
        w = jnp.transpose(w_oik, (2, 1, 0)) * scale[None, None, :]
        w = jnp.pad(w, ((0, 0), (0, cin_p - c_i), (0, C_out_p - c_o)))
        return w.reshape(k * cin_p, C_out_p)

    w1 = prep_w(params["w1"], C_in_p, s1)
    ws = prep_w(params["ws"], C_in_p, ss)
    if fuse_shortcut:
        # 1x1 shortcut goes in conv1's center-tap row block of an extra
        # 128-wide output column block (free columns on 256-wide MXUs).
        sc_cols = jnp.zeros((7 * C_in_p, C_out_p), jnp.float32)
        sc_cols = sc_cols.at[3 * C_in_p:4 * C_in_p, :].set(ws)
        w1 = jnp.concatenate([w1, sc_cols], axis=1)
    w1 = w1.astype(compute_dtype)
    w2 = prep_w(params["w2"], C_out_p, s2).astype(compute_dtype)
    w3 = prep_w(params["w3"], C_out_p, s3).astype(compute_dtype)
    ws = ws.astype(compute_dtype)

    kernel = functools.partial(
        _fused_residual_kernel, L_tile=L_tile, H=H, L_valid=L,
        C_out_p=C_out_p, compute_dtype=compute_dtype,
        fuse_shortcut=fuse_shortcut, use_im2col=use_im2col)

    out = pl.pallas_call(
        kernel,
        out_shape=jax.ShapeDtypeStruct((N, L_pad, C_out_p), x_nlc.dtype),
        grid=(N, num_tiles),
        in_specs=[
            pl.BlockSpec(memory_space=pl.ANY),                 # x stays in HBM
            pl.BlockSpec(w1.shape, lambda n, i: (0, 0)),
            pl.BlockSpec(w2.shape, lambda n, i: (0, 0)),
            pl.BlockSpec(w3.shape, lambda n, i: (0, 0)),
            pl.BlockSpec(ws.shape, lambda n, i: (0, 0)),
            pl.BlockSpec(biases.shape, lambda n, i: (0, 0)),
        ],
        out_specs=pl.BlockSpec((1, L_tile, C_out_p), lambda n, i: (n, i, 0)),
        scratch_shapes=[
            pltpu.VMEM((2, L_tile + 2 * H, C_in_p), compute_dtype),  # dbl-buf
            pltpu.SemaphoreType.DMA((2,)),
        ],
        compiler_params=pltpu.CompilerParams(
            # L-tile axis must run sequentially per core (cross-step DMA
            # prefetch); batch axis is megacore/dual-TC parallel.
            dimension_semantics=("parallel", "arbitrary"),
            vmem_limit_bytes=vmem_limit_bytes),
    )(x, w1, w2, w3, ws, biases)

    return out[:, :L, :C_out]


def residual_module_forward(params, x_ncl, **kwargs):
    """PyTorch-compatible NCL interface around the channels-last kernel."""
    # TODO(synk): keep the surrounding model channels-last and call
    # residual_module_forward_nlc directly to avoid these two HBM transposes.
    out_nlc = residual_module_forward_nlc(
        params, jnp.transpose(x_ncl, (0, 2, 1)), **kwargs)
    return jnp.transpose(out_nlc, (0, 2, 1))


# ---------------------------------------------------------------------------
# Pure-JAX reference (correctness check).
# ---------------------------------------------------------------------------
def _ref_conv1d(x_ncl, w_oik):
    return jax.lax.conv_general_dilated(
        x_ncl, w_oik, window_strides=(1,), padding="SAME",
        dimension_numbers=("NCH", "OIH", "NCH"))


def _ref_bn(x_ncl, bn, eps=1e-5):
    gamma, beta, mean, var = bn
    return ((x_ncl - mean[None, :, None]) / jnp.sqrt(var[None, :, None] + eps)
            * gamma[None, :, None] + beta[None, :, None])


def _ref_act(x):
    s = jnp.sin(x) ** 2 + x
    return jnp.maximum(0.1 * s, s)


def residual_module_ref(params, x_ncl):
    h = _ref_act(_ref_bn(_ref_conv1d(x_ncl, params["w1"]), params["bn1"]))
    h = _ref_act(_ref_bn(_ref_conv1d(h, params["w2"]), params["bn2"]))
    h = _ref_bn(_ref_conv1d(h, params["w3"]), params["bn3"])
    sc = _ref_bn(_ref_conv1d(x_ncl, params["ws"]), params["bns"])
    return _ref_act(h + sc)


# ---------------------------------------------------------------------------
if __name__ == "__main__":
    key = jax.random.PRNGKey(0)
    k_params, k_x = jax.random.split(key)

    N, C_IN, C_OUT, L = 2, 4, 8, 16
    params = init_params(k_params, C_IN, C_OUT)
    x = jax.random.normal(k_x, (N, C_IN, L), jnp.float32)   # PyTorch NCL layout

    ref = residual_module_ref(params, x)

    # f32 compute path: tight-tolerance correctness check.
    out = residual_module_forward(params, x, compute_dtype=jnp.float32)
    out = jax.block_until_ready(out)
    assert out.shape == (N, C_OUT, L)
    assert jnp.allclose(out, ref, rtol=1e-4, atol=1e-4), (
        f"max abs err {jnp.max(jnp.abs(out - ref))}")

    # Default (bf16) fast path: loose check, f32 accumulation.
    out_bf16 = jax.block_until_ready(residual_module_forward(params, x))
    assert out_bf16.shape == (N, C_OUT, L)
    assert bool(jnp.all(jnp.isfinite(out_bf16)))
    assert jnp.allclose(out_bf16, ref, rtol=1e-1, atol=5e-1)

    # Multi-tile config (odd L, small tiles) so the double-buffered DMA
    # prefetch, interior-tile mask-skip and both conv/shortcut variants are
    # exercised regardless of which TPU generation this runs on.
    L2 = 45
    x2 = jax.random.normal(jax.random.PRNGKey(1), (N, C_IN, L2), jnp.float32)
    ref2 = residual_module_ref(params, x2)
    for fuse, im2col in ((True, True), (False, False)):
        out2 = residual_module_forward(
            params, x2, compute_dtype=jnp.float32, max_l_tile=16,
            fuse_shortcut=fuse, use_im2col=im2col)
        out2 = jax.block_until_ready(out2)
        assert out2.shape == (N, C_OUT, L2)
        assert jnp.allclose(out2, ref2, rtol=1e-4, atol=1e-4), (
            f"fuse={fuse} im2col={im2col} "
            f"max abs err {jnp.max(jnp.abs(out2 - ref2))}")

    print("KERNEL_OK")
</pallas_src>

<mosaic_0001>
module attributes {stable_mosaic.version = 11 : i64} {
  func.func @_fused_residual_kernel(%arg0: i32, %arg1: i32, %arg2: memref<2x28x128xf32, #tpu.memory_space<any>>, %arg3: memref<896x128xf32, #tpu.memory_space<vmem>>, %arg4: memref<640x128xf32, #tpu.memory_space<vmem>>, %arg5: memref<384x128xf32, #tpu.memory_space<vmem>>, %arg6: memref<128x128xf32, #tpu.memory_space<vmem>>, %arg7: memref<4x128xf32, #tpu.memory_space<vmem>>, %arg8: memref<1x16x128xf32, #tpu.memory_space<vmem>>, %arg9: memref<2x28x128xf32, #tpu.memory_space<vmem>>, %arg10: memref<2x!tpu.dma_semaphore, #tpu.memory_space<semaphore_mem>>) attributes {dimension_semantics = [#tpu.dimension_semantics<parallel>, #tpu.dimension_semantics<arbitrary>], iteration_bounds = array<i64: 2, 1>, scalar_prefetch = 0 : i64, scratch_operands = 2 : i64, tpu.core_type = #tpu.core_type<tc>, window_params = [{}, {pipeline_mode = #tpu.pipeline_mode<synchronous>, transform_indices = @transform_1, window_bounds = array<i64: 896, 128>}, {pipeline_mode = #tpu.pipeline_mode<synchronous>, transform_indices = @transform_2, window_bounds = array<i64: 640, 128>}, {pipeline_mode = #tpu.pipeline_mode<synchronous>, transform_indices = @transform_3, window_bounds = array<i64: 384, 128>}, {pipeline_mode = #tpu.pipeline_mode<synchronous>, transform_indices = @transform_4, window_bounds = array<i64: 128, 128>}, {pipeline_mode = #tpu.pipeline_mode<synchronous>, transform_indices = @transform_5, window_bounds = array<i64: 4, 128>}, {transform_indices = @transform_6, window_bounds = array<i64: 1, 16, 128>}]} {
    %c2_i32 = arith.constant 2 : i32
    %0 = arith.remsi %arg1, %c2_i32 : i32
    %c0_i32 = arith.constant 0 : i32
    %1 = arith.cmpi eq, %arg1, %c0_i32 : i32
    %2 = arith.extui %1 : i1 to i32
    %c0_i32_0 = arith.constant 0 : i32
    %3 = arith.cmpi ne, %2, %c0_i32_0 : i32
    scf.if %3 {
      %c0_i32_71 = arith.constant 0 : i32
      %132 = tpu.assume_multiple %c0_i32_71, 8 : i32
      %c0_i32_72 = arith.constant 0 : i32
      %c0_i32_73 = arith.constant 0 : i32
      %c0_i32_74 = arith.constant 0 : i32
      %133 = tpu.memref_slice %arg2[%arg0, %132, %c0_i32_74] : memref<2x28x128xf32, #tpu.memory_space<any>> -> memref<1x28x128xf32, #tpu.memory_space<any>>
      %134 = tpu.memref_squeeze %133 : memref<1x28x128xf32, #tpu.memory_space<any>> -> memref<28x128xf32, #tpu.memory_space<any>>
      %c0_i32_75 = arith.constant 0 : i32
      %c0_i32_76 = arith.constant 0 : i32
      %135 = tpu.memref_slice %arg9[%c0_i32_72, %c0_i32_75, %c0_i32_76] : memref<2x28x128xf32, #tpu.memory_space<vmem>> -> memref<1x28x128xf32, #tpu.memory_space<vmem>>
      %136 = tpu.memref_squeeze %135 : memref<1x28x128xf32, #tpu.memory_space<vmem>> -> memref<28x128xf32, #tpu.memory_space<vmem>>
      %137 = tpu.memref_slice %arg10[%c0_i32_73] : memref<2x!tpu.dma_semaphore, #tpu.memory_space<semaphore_mem>> -> memref<1x!tpu.dma_semaphore, #tpu.memory_space<semaphore_mem>>
      %138 = tpu.memref_squeeze %137 : memref<1x!tpu.dma_semaphore, #tpu.memory_space<semaphore_mem>> -> memref<!tpu.dma_semaphore, #tpu.memory_space<semaphore_mem>>
      tpu.enqueue_dma source(%134 : memref<28x128xf32, #tpu.memory_space<any>>) target(%136 : memref<28x128xf32, #tpu.memory_space<vmem>>) target_semaphore(%138 : memref<!tpu.dma_semaphore, #tpu.memory_space<semaphore_mem>>)
    } else {
    }
    %c16_i32 = arith.constant 16 : i32
    %4 = arith.muli %arg1, %c16_i32 : i32
    %5 = tpu.assume_multiple %4, 8 : i32
    %c0_i32_1 = arith.constant 0 : i32
    %6 = tpu.memref_slice %arg2[%arg0, %5, %c0_i32_1] : memref<2x28x128xf32, #tpu.memory_space<any>> -> memref<1x28x128xf32, #tpu.memory_space<any>>
    %7 = tpu.memref_squeeze %6 : memref<1x28x128xf32, #tpu.memory_space<any>> -> memref<28x128xf32, #tpu.memory_space<any>>
    %c0_i32_2 = arith.constant 0 : i32
    %c0_i32_3 = arith.constant 0 : i32
    %8 = tpu.memref_slice %arg9[%0, %c0_i32_2, %c0_i32_3] : memref<2x28x128xf32, #tpu.memory_space<vmem>> -> memref<1x28x128xf32, #tpu.memory_space<vmem>>
    %9 = tpu.memref_squeeze %8 : memref<1x28x128xf32, #tpu.memory_space<vmem>> -> memref<28x128xf32, #tpu.memory_space<vmem>>
    %10 = tpu.memref_slice %arg10[%0] : memref<2x!tpu.dma_semaphore, #tpu.memory_space<semaphore_mem>> -> memref<1x!tpu.dma_semaphore, #tpu.memory_space<semaphore_mem>>
    %11 = tpu.memref_squeeze %10 : memref<1x!tpu.dma_semaphore, #tpu.memory_space<semaphore_mem>> -> memref<!tpu.dma_semaphore, #tpu.memory_space<semaphore_mem>>
    tpu.wait_dma2 semaphore(%11 : memref<!tpu.dma_semaphore, #tpu.memory_space<semaphore_mem>>) src(%7 : memref<28x128xf32, #tpu.memory_space<any>>) dst(%9 : memref<28x128xf32, #tpu.memory_space<vmem>>)
    %c1_i32 = arith.constant 1 : i32
    %12 = arith.addi %arg1, %c1_i32 : i32
    %c1_i32_4 = arith.constant 1 : i32
    %13 = arith.cmpi slt, %12, %c1_i32_4 : i32
    %14 = arith.extui %13 : i1 to i32
    %c0_i32_5 = arith.constant 0 : i32
    %15 = arith.cmpi ne, %14, %c0_i32_5 : i32
    scf.if %15 {
      %c1_i32_71 = arith.constant 1 : i32
      %132 = arith.addi %arg1, %c1_i32_71 : i32
      %c1_i32_72 = arith.constant 1 : i32
      %133 = arith.subi %c1_i32_72, %0 : i32
      %c16_i32_73 = arith.constant 16 : i32
      %134 = arith.muli %132, %c16_i32_73 : i32
      %135 = tpu.assume_multiple %134, 8 : i32
      %c0_i32_74 = arith.constant 0 : i32
      %136 = tpu.memref_slice %arg2[%arg0, %135, %c0_i32_74] : memref<2x28x128xf32, #tpu.memory_space<any>> -> memref<1x28x128xf32, #tpu.memory_space<any>>
      %137 = tpu.memref_squeeze %136 : memref<1x28x128xf32, #tpu.memory_space<any>> -> memref<28x128xf32, #tpu.memory_space<any>>
      %c0_i32_75 = arith.constant 0 : i32
      %c0_i32_76 = arith.constant 0 : i32
      %138 = tpu.memref_slice %arg9[%133, %c0_i32_75, %c0_i32_76] : memref<2x28x128xf32, #tpu.memory_space<vmem>> -> memref<1x28x128xf32, #tpu.memory_space<vmem>>
      %139 = tpu.memref_squeeze %138 : memref<1x28x128xf32, #tpu.memory_space<vmem>> -> memref<28x128xf32, #tpu.memory_space<vmem>>
      %140 = tpu.memref_slice %arg10[%133] : memref<2x!tpu.dma_semaphore, #tpu.memory_space<semaphore_mem>> -> memref<1x!tpu.dma_semaphore, #tpu.memory_space<semaphore_mem>>
      %141 = tpu.memref_squeeze %140 : memref<1x!tpu.dma_semaphore, #tpu.memory_space<semaphore_mem>> -> memref<!tpu.dma_semaphore, #tpu.memory_space<semaphore_mem>>
      tpu.enqueue_dma source(%137 : memref<28x128xf32, #tpu.memory_space<any>>) target(%139 : memref<28x128xf32, #tpu.memory_space<vmem>>) target_semaphore(%141 : memref<!tpu.dma_semaphore, #tpu.memory_space<semaphore_mem>>)
    } else {
    }
    %c16_i32_6 = arith.constant 16 : i32
    %16 = arith.muli %arg1, %c16_i32_6 : i32
    %17 = arith.index_cast %0 : i32 to index
    %c0 = arith.constant 0 : index
    %c0_7 = arith.constant 0 : index
    %18 = vector.load %arg9[%17, %c0, %c0_7] : memref<2x28x128xf32, #tpu.memory_space<vmem>>, vector<1x28x128xf32>
    %19 = vector.shape_cast %18 : vector<1x28x128xf32> to vector<28x128xf32>
    %20 = vector.extract_strided_slice %19 {offsets = [0, 0], sizes = [22, 128], strides = [1, 1]} : vector<28x128xf32> to vector<22x128xf32>
    %c0_8 = arith.constant 0 : index
    %c0_9 = arith.constant 0 : index
    %21 = vector.load %arg3[%c0_8, %c0_9] : memref<896x128xf32, #tpu.memory_space<vmem>>, vector<128x128xf32>
    %cst = arith.constant dense<0.000000e+00> : vector<22x128xf32>
    %22 = tpu.matmul %20, %21, %cst {dimension_numbers = #tpu.dot_dimension_numbers<[1], [0], [0], [1], [0, 0, 1, 1], [], []>} : vector<22x128xf32>, vector<128x128xf32>, vector<22x128xf32> -> vector<22x128xf32>
    %23 = vector.extract_strided_slice %19 {offsets = [1, 0], sizes = [22, 128], strides = [1, 1]} : vector<28x128xf32> to vector<22x128xf32>
    %c128 = arith.constant 128 : index
    %c0_10 = arith.constant 0 : index
    %24 = vector.load %arg3[%c128, %c0_10] : memref<896x128xf32, #tpu.memory_space<vmem>>, vector<128x128xf32>
    %cst_11 = arith.constant dense<0.000000e+00> : vector<22x128xf32>
    %25 = tpu.matmul %23, %24, %cst_11 {dimension_numbers = #tpu.dot_dimension_numbers<[1], [0], [0], [1], [0, 0, 1, 1], [], []>} : vector<22x128xf32>, vector<128x128xf32>, vector<22x128xf32> -> vector<22x128xf32>
    %26 = arith.addf %22, %25 : vector<22x128xf32>
    %27 = vector.extract_strided_slice %19 {offsets = [2, 0], sizes = [22, 128], strides = [1, 1]} : vector<28x128xf32> to vector<22x128xf32>
    %c256 = arith.constant 256 : index
    %c0_12 = arith.constant 0 : index
    %28 = vector.load %arg3[%c256, %c0_12] : memref<896x128xf32, #tpu.memory_space<vmem>>, vector<128x128xf32>
    %cst_13 = arith.constant dense<0.000000e+00> : vector<22x128xf32>
    %29 = tpu.matmul %27, %28, %cst_13 {dimension_numbers = #tpu.dot_dimension_numbers<[1], [0], [0], [1], [0, 0, 1, 1], [], []>} : vector<22x128xf32>, vector<128x128xf32>, vector<22x128xf32> -> vector<22x128xf32>
    %30 = arith.addf %26, %29 : vector<22x128xf32>
    %31 = vector.extract_strided_slice %19 {offsets = [3, 0], sizes = [22, 128], strides = [1, 1]} : vector<28x128xf32> to vector<22x128xf32>
    %c384 = arith.constant 384 : index
    %c0_14 = arith.constant 0 : index
    %32 = vector.load %arg3[%c384, %c0_14] : memref<896x128xf32, #tpu.memory_space<vmem>>, vector<128x128xf32>
    %cst_15 = arith.constant dense<0.000000e+00> : vector<22x128xf32>
    %33 = tpu.matmul %31, %32, %cst_15 {dimension_numbers = #tpu.dot_dimension_numbers<[1], [0], [0], [1], [0, 0, 1, 1], [], []>} : vector<22x128xf32>, vector<128x128xf32>, vector<22x128xf32> -> vector<22x128xf32>
    %34 = arith.addf %30, %33 : vector<22x128xf32>
    %35 = vector.extract_strided_slice %19 {offsets = [4, 0], sizes = [22, 128], strides = [1, 1]} : vector<28x128xf32> to vector<22x128xf32>
    %c512 = arith.constant 512 : index
    %c0_16 = arith.constant 0 : index
    %36 = vector.load %arg3[%c512, %c0_16] : memref<896x128xf32, #tpu.memory_space<vmem>>, vector<128x128xf32>
    %cst_17 = arith.constant dense<0.000000e+00> : vector<22x128xf32>
    %37 = tpu.matmul %35, %36, %cst_17 {dimension_numbers = #tpu.dot_dimension_numbers<[1], [0], [0], [1], [0, 0, 1, 1], [], []>} : vector<22x128xf32>, vector<128x128xf32>, vector<22x128xf32> -> vector<22x128xf32>
    %38 = arith.addf %34, %37 : vector<22x128xf32>
    %39 = vector.extract_strided_slice %19 {offsets = [5, 0], sizes = [22, 128], strides = [1, 1]} : vector<28x128xf32> to vector<22x128xf32>
    %c640 = arith.constant 640 : index
    %c0_18 = arith.constant 0 : index
    %40 = vector.load %arg3[%c640, %c0_18] : memref<896x128xf32, #tpu.memory_space<vmem>>, vector<128x128xf32>
    %cst_19 = arith.constant dense<0.000000e+00> : vector<22x128xf32>
    %41 = tpu.matmul %39, %40, %cst_19 {dimension_numbers = #tpu.dot_dimension_numbers<[1], [0], [0], [1], [0, 0, 1, 1], [], []>} : vector<22x128xf32>, vector<128x128xf32>, vector<22x128xf32> -> vector<22x128xf32>
    %42 = arith.addf %38, %41 : vector<22x128xf32>
    %43 = vector.extract_strided_slice %19 {offsets = [6, 0], sizes = [22, 128], strides = [1, 1]} : vector<28x128xf32> to vector<22x128xf32>
    %c768 = arith.constant 768 : index
    %c0_20 = arith.constant 0 : index
    %44 = vector.load %arg3[%c768, %c0_20] : memref<896x128xf32, #tpu.memory_space<vmem>>, vector<128x128xf32>
    %cst_21 = arith.constant dense<0.000000e+00> : vector<22x128xf32>
    %45 = tpu.matmul %43, %44, %cst_21 {dimension_numbers = #tpu.dot_dimension_numbers<[1], [0], [0], [1], [0, 0, 1, 1], [], []>} : vector<22x128xf32>, vector<128x128xf32>, vector<22x128xf32> -> vector<22x128xf32>
    %46 = arith.addf %42, %45 : vector<22x128xf32>
    %47 = vector.extract_strided_slice %19 {offsets = [6, 0], sizes = [16, 128], strides = [1, 1]} : vector<28x128xf32> to vector<16x128xf32>
    %c0_22 = arith.constant 0 : index
    %c0_23 = arith.constant 0 : index
    %48 = vector.load %arg6[%c0_22, %c0_23] : memref<128x128xf32, #tpu.memory_space<vmem>>, vector<128x128xf32>
    %cst_24 = arith.constant dense<0.000000e+00> : vector<16x128xf32>
    %49 = tpu.matmul %47, %48, %cst_24 {dimension_numbers = #tpu.dot_dimension_numbers<[1], [0], [0], [1], [0, 0, 1, 1], [], []>} : vector<16x128xf32>, vector<128x128xf32>, vector<16x128xf32> -> vector<16x128xf32>
    %c3 = arith.constant 3 : index
    %c0_25 = arith.constant 0 : index
    %50 = vector.load %arg7[%c3, %c0_25] : memref<4x128xf32, #tpu.memory_space<vmem>>, vector<1x128xf32>
    %51 = vector.broadcast %50 : vector<1x128xf32> to vector<16x128xf32>
    %52 = arith.addf %49, %51 : vector<16x128xf32>
    %c0_26 = arith.constant 0 : index
    %c0_27 = arith.constant 0 : index
    %53 = vector.load %arg7[%c0_26, %c0_27] : memref<4x128xf32, #tpu.memory_space<vmem>>, vector<1x128xf32>
    %54 = vector.broadcast %53 : vector<1x128xf32> to vector<22x128xf32>
    %55 = arith.addf %46, %54 : vector<22x128xf32>
    %56 = math.sin %55 : vector<22x128xf32>
    %57 = arith.mulf %56, %56 : vector<22x128xf32>
    %58 = arith.addf %57, %55 : vector<22x128xf32>
    %cst_28 = arith.constant 1.000000e-01 : f32
    %59 = vector.broadcast %cst_28 : f32 to vector<22x128xf32>
    %60 = arith.mulf %59, %58 : vector<22x128xf32>
    %61 = arith.maximumf %60, %58 : vector<22x128xf32>
    %c3_i32 = arith.constant 3 : i32
    %62 = arith.subi %16, %c3_i32 : i32
    %c3_i32_29 = arith.constant 3 : i32
    %63 = arith.cmpi slt, %16, %c3_i32_29 : i32
    %c16_i32_30 = arith.constant 16 : i32
    %64 = arith.addi %16, %c16_i32_30 : i32
    %c3_i32_31 = arith.constant 3 : i32
    %65 = arith.addi %64, %c3_i32_31 : i32
    %c16_i32_32 = arith.constant 16 : i32
    %66 = arith.cmpi sgt, %65, %c16_i32_32 : i32
    %67 = arith.ori %63, %66 : i1
    %68 = arith.extui %67 : i1 to i32
    %c0_i32_33 = arith.constant 0 : i32
    %69 = arith.cmpi ne, %68, %c0_i32_33 : i32
    %70 = scf.if %69 -> (vector<22x128xf32>) {
      %132 = tpu.iota {dimensions = array<i32: 0>} : vector<22x1xi32>
      %133 = vector.broadcast %62 : i32 to vector<22x1xi32>
      %134 = arith.addi %133, %132 : vector<22x1xi32>
      %c0_i32_71 = arith.constant 0 : i32
      %135 = vector.broadcast %c0_i32_71 : i32 to vector<22x1xi32>
      %136 = arith.cmpi sge, %134, %135 : vector<22x1xi32>
      %c16_i32_72 = arith.constant 16 : i32
      %137 = vector.broadcast %c16_i32_72 : i32 to vector<22x1xi32>
      %138 = arith.cmpi slt, %134, %137 : vector<22x1xi32>
      %139 = arith.andi %136, %138 : vector<22x1xi1>
      %cst_73 = arith.constant 0.000000e+00 : f32
      %140 = vector.shape_cast %139 : vector<22x1xi1> to vector<22x1xi1>
      %141 = vector.broadcast %140 : vector<22x1xi1> to vector<22x128xi1>
      %142 = vector.broadcast %cst_73 : f32 to vector<22x128xf32>
      %143 = arith.select %141, %61, %142 : vector<22x128xi1>, vector<22x128xf32>
      scf.yield %143 : vector<22x128xf32>
    } else {
      scf.yield %61 : vector<22x128xf32>
    }
    %71 = vector.extract_strided_slice %70 {offsets = [0, 0], sizes = [18, 128], strides = [1, 1]} : vector<22x128xf32> to vector<18x128xf32>
    %c0_34 = arith.constant 0 : index
    %c0_35 = arith.constant 0 : index
    %72 = vector.load %arg4[%c0_34, %c0_35] : memref<640x128xf32, #tpu.memory_space<vmem>>, vector<128x128xf32>
    %cst_36 = arith.constant dense<0.000000e+00> : vector<18x128xf32>
    %73 = tpu.matmul %71, %72, %cst_36 {dimension_numbers = #tpu.dot_dimension_numbers<[1], [0], [0], [1], [0, 0, 1, 1], [], []>} : vector<18x128xf32>, vector<128x128xf32>, vector<18x128xf32> -> vector<18x128xf32>
    %74 = vector.extract_strided_slice %70 {offsets = [1, 0], sizes = [18, 128], strides = [1, 1]} : vector<22x128xf32> to vector<18x128xf32>
    %c128_37 = arith.constant 128 : index
    %c0_38 = arith.constant 0 : index
    %75 = vector.load %arg4[%c128_37, %c0_38] : memref<640x128xf32, #tpu.memory_space<vmem>>, vector<128x128xf32>
    %cst_39 = arith.constant dense<0.000000e+00> : vector<18x128xf32>
    %76 = tpu.matmul %74, %75, %cst_39 {dimension_numbers = #tpu.dot_dimension_numbers<[1], [0], [0], [1], [0, 0, 1, 1], [], []>} : vector<18x128xf32>, vector<128x128xf32>, vector<18x128xf32> -> vector<18x128xf32>
    %77 = arith.addf %73, %76 : vector<18x128xf32>
    %78 = vector.extract_strided_slice %70 {offsets = [2, 0], sizes = [18, 128], strides = [1, 1]} : vector<22x128xf32> to vector<18x128xf32>
    %c256_40 = arith.constant 256 : index
    %c0_41 = arith.constant 0 : index
    %79 = vector.load %arg4[%c256_40, %c0_41] : memref<640x128xf32, #tpu.memory_space<vmem>>, vector<128x128xf32>
    %cst_42 = arith.constant dense<0.000000e+00> : vector<18x128xf32>
    %80 = tpu.matmul %78, %79, %cst_42 {dimension_numbers = #tpu.dot_dimension_numbers<[1], [0], [0], [1], [0, 0, 1, 1], [], []>} : vector<18x128xf32>, vector<128x128xf32>, vector<18x128xf32> -> vector<18x128xf32>
    %81 = arith.addf %77, %80 : vector<18x128xf32>
    %82 = vector.extract_strided_slice %70 {offsets = [3, 0], sizes = [18, 128], strides = [1, 1]} : vector<22x128xf32> to vector<18x128xf32>
    %c384_43 = arith.constant 384 : index
    %c0_44 = arith.constant 0 : index
    %83 = vector.load %arg4[%c384_43, %c0_44] : memref<640x128xf32, #tpu.memory_space<vmem>>, vector<128x128xf32>
    %cst_45 = arith.constant dense<0.000000e+00> : vector<18x128xf32>
    %84 = tpu.matmul %82, %83, %cst_45 {dimension_numbers = #tpu.dot_dimension_numbers<[1], [0], [0], [1], [0, 0, 1, 1], [], []>} : vector<18x128xf32>, vector<128x128xf32>, vector<18x128xf32> -> vector<18x128xf32>
    %85 = arith.addf %81, %84 : vector<18x128xf32>
    %86 = vector.extract_strided_slice %70 {offsets = [4, 0], sizes = [18, 128], strides = [1, 1]} : vector<22x128xf32> to vector<18x128xf32>
    %c512_46 = arith.constant 512 : index
    %c0_47 = arith.constant 0 : index
    %87 = vector.load %arg4[%c512_46, %c0_47] : memref<640x128xf32, #tpu.memory_space<vmem>>, vector<128x128xf32>
    %cst_48 = arith.constant dense<0.000000e+00> : vector<18x128xf32>
    %88 = tpu.matmul %86, %87, %cst_48 {dimension_numbers = #tpu.dot_dimension_numbers<[1], [0], [0], [1], [0, 0, 1, 1], [], []>} : vector<18x128xf32>, vector<128x128xf32>, vector<18x128xf32> -> vector<18x128xf32>
    %89 = arith.addf %85, %88 : vector<18x128xf32>
    %c1 = arith.constant 1 : index
    %c0_49 = arith.constant 0 : index
    %90 = vector.load %arg7[%c1, %c0_49] : memref<4x128xf32, #tpu.memory_space<vmem>>, vector<1x128xf32>
    %91 = vector.broadcast %90 : vector<1x128xf32> to vector<18x128xf32>
    %92 = arith.addf %89, %91 : vector<18x128xf32>
    %93 = math.sin %92 : vector<18x128xf32>
    %94 = arith.mulf %93, %93 : vector<18x128xf32>
    %95 = arith.addf %94, %92 : vector<18x128xf32>
    %cst_50 = arith.constant 1.000000e-01 : f32
    %96 = vector.broadcast %cst_50 : f32 to vector<18x128xf32>
    %97 = arith.mulf %96, %95 : vector<18x128xf32>
    %98 = arith.maximumf %97, %95 : vector<18x128xf32>
    %c1_i32_51 = arith.constant 1 : i32
    %99 = arith.subi %16, %c1_i32_51 : i32
    %c3_i32_52 = arith.constant 3 : i32
    %100 = arith.cmpi slt, %16, %c3_i32_52 : i32
    %c16_i32_53 = arith.constant 16 : i32
    %101 = arith.addi %16, %c16_i32_53 : i32
    %c3_i32_54 = arith.constant 3 : i32
    %102 = arith.addi %101, %c3_i32_54 : i32
    %c16_i32_55 = arith.constant 16 : i32
    %103 = arith.cmpi sgt, %102, %c16_i32_55 : i32
    %104 = arith.ori %100, %103 : i1
    %105 = arith.extui %104 : i1 to i32
    %c0_i32_56 = arith.constant 0 : i32
    %106 = arith.cmpi ne, %105, %c0_i32_56 : i32
    %107 = scf.if %106 -> (vector<18x128xf32>) {
      %132 = tpu.iota {dimensions = array<i32: 0>} : vector<18x1xi32>
      %133 = vector.broadcast %99 : i32 to vector<18x1xi32>
      %134 = arith.addi %133, %132 : vector<18x1xi32>
      %c0_i32_71 = arith.constant 0 : i32
      %135 = vector.broadcast %c0_i32_71 : i32 to vector<18x1xi32>
      %136 = arith.cmpi sge, %134, %135 : vector<18x1xi32>
      %c16_i32_72 = arith.constant 16 : i32
      %137 = vector.broadcast %c16_i32_72 : i32 to vector<18x1xi32>
      %138 = arith.cmpi slt, %134, %137 : vector<18x1xi32>
      %139 = arith.andi %136, %138 : vector<18x1xi1>
      %cst_73 = arith.constant 0.000000e+00 : f32
      %140 = vector.shape_cast %139 : vector<18x1xi1> to vector<18x1xi1>
      %141 = vector.broadcast %140 : vector<18x1xi1> to vector<18x128xi1>
      %142 = vector.broadcast %cst_73 : f32 to vector<18x128xf32>
      %143 = arith.select %141, %98, %142 : vector<18x128xi1>, vector<18x128xf32>
      scf.yield %143 : vector<18x128xf32>
    } else {
      scf.yield %98 : vector<18x128xf32>
    }
    %108 = vector.extract_strided_slice %107 {offsets = [0, 0], sizes = [16, 128], strides = [1, 1]} : vector<18x128xf32> to vector<16x128xf32>
    %c0_57 = arith.constant 0 : index
    %c0_58 = arith.constant 0 : index
    %109 = vector.load %arg5[%c0_57, %c0_58] : memref<384x128xf32, #tpu.memory_space<vmem>>, vector<128x128xf32>
    %cst_59 = arith.constant dense<0.000000e+00> : vector<16x128xf32>
    %110 = tpu.matmul %108, %109, %cst_59 {dimension_numbers = #tpu.dot_dimension_numbers<[1], [0], [0], [1], [0, 0, 1, 1], [], []>} : vector<16x128xf32>, vector<128x128xf32>, vector<16x128xf32> -> vector<16x128xf32>
    %111 = vector.extract_strided_slice %107 {offsets = [1, 0], sizes = [16, 128], strides = [1, 1]} : vector<18x128xf32> to vector<16x128xf32>
    %c128_60 = arith.constant 128 : index
    %c0_61 = arith.constant 0 : index
    %112 = vector.load %arg5[%c128_60, %c0_61] : memref<384x128xf32, #tpu.memory_space<vmem>>, vector<128x128xf32>
    %cst_62 = arith.constant dense<0.000000e+00> : vector<16x128xf32>
    %113 = tpu.matmul %111, %112, %cst_62 {dimension_numbers = #tpu.dot_dimension_numbers<[1], [0], [0], [1], [0, 0, 1, 1], [], []>} : vector<16x128xf32>, vector<128x128xf32>, vector<16x128xf32> -> vector<16x128xf32>
    %114 = arith.addf %110, %113 : vector<16x128xf32>
    %115 = vector.extract_strided_slice %107 {offsets = [2, 0], sizes = [16, 128], strides = [1, 1]} : vector<18x128xf32> to vector<16x128xf32>
    %c256_63 = arith.constant 256 : index
    %c0_64 = arith.constant 0 : index
    %116 = vector.load %arg5[%c256_63, %c0_64] : memref<384x128xf32, #tpu.memory_space<vmem>>, vector<128x128xf32>
    %cst_65 = arith.constant dense<0.000000e+00> : vector<16x128xf32>
    %117 = tpu.matmul %115, %116, %cst_65 {dimension_numbers = #tpu.dot_dimension_numbers<[1], [0], [0], [1], [0, 0, 1, 1], [], []>} : vector<16x128xf32>, vector<128x128xf32>, vector<16x128xf32> -> vector<16x128xf32>
    %118 = arith.addf %114, %117 : vector<16x128xf32>
    %c2 = arith.constant 2 : index
    %c0_66 = arith.constant 0 : index
    %119 = vector.load %arg7[%c2, %c0_66] : memref<4x128xf32, #tpu.memory_space<vmem>>, vector<1x128xf32>
    %120 = vector.broadcast %119 : vector<1x128xf32> to vector<16x128xf32>
    %121 = arith.addf %118, %120 : vector<16x128xf32>
    %122 = arith.addf %121, %52 : vector<16x128xf32>
    %123 = math.sin %122 : vector<16x128xf32>
    %124 = arith.mulf %123, %123 : vector<16x128xf32>
    %125 = arith.addf %124, %122 : vector<16x128xf32>
    %cst_67 = arith.constant 1.000000e-01 : f32
    %126 = vector.broadcast %cst_67 : f32 to vector<16x128xf32>
    %127 = arith.mulf %126, %125 : vector<16x128xf32>
    %128 = arith.maximumf %127, %125 : vector<16x128xf32>
    %c0_68 = arith.constant 0 : index
    %c0_69 = arith.constant 0 : index
    %c0_70 = arith.constant 0 : index
    %129 = vector.load %arg8[%c0_68, %c0_69, %c0_70] : memref<1x16x128xf32, #tpu.memory_space<vmem>>, vector<1x16x128xf32>
    %130 = vector.shape_cast %129 : vector<1x16x128xf32> to vector<16x128xf32>
    %131 = vector.shape_cast %128 : vector<16x128xf32> to vector<1x16x128xf32>
    tpu.vector_store %arg8[%c0_68, %c0_69, %c0_70], %131 {strides = array<i32>} : memref<1x16x128xf32, #tpu.memory_space<vmem>>, vector<1x16x128xf32>,
    return
  }
  func.func @transform_1(%arg0: i32, %arg1: i32) -> (i32, i32) {
    %c0_i32 = arith.constant 0 : i32
    %c0_i32_0 = arith.constant 0 : i32
    %c0_i32_1 = arith.constant 0 : i32
    return %c0_i32, %c0_i32_0 : i32, i32
  }
  func.func @transform_2(%arg0: i32, %arg1: i32) -> (i32, i32) {
    %c0_i32 = arith.constant 0 : i32
    %c0_i32_0 = arith.constant 0 : i32
    %c0_i32_1 = arith.constant 0 : i32
    return %c0_i32, %c0_i32_0 : i32, i32
  }
  func.func @transform_3(%arg0: i32, %arg1: i32) -> (i32, i32) {
    %c0_i32 = arith.constant 0 : i32
    %c0_i32_0 = arith.constant 0 : i32
    %c0_i32_1 = arith.constant 0 : i32
    return %c0_i32, %c0_i32_0 : i32, i32
  }
  func.func @transform_4(%arg0: i32, %arg1: i32) -> (i32, i32) {
    %c0_i32 = arith.constant 0 : i32
    %c0_i32_0 = arith.constant 0 : i32
    %c0_i32_1 = arith.constant 0 : i32
    return %c0_i32, %c0_i32_0 : i32, i32
  }
  func.func @transform_5(%arg0: i32, %arg1: i32) -> (i32, i32) {
    %c0_i32 = arith.constant 0 : i32
    %c0_i32_0 = arith.constant 0 : i32
    %c0_i32_1 = arith.constant 0 : i32
    return %c0_i32, %c0_i32_0 : i32, i32
  }
  func.func @transform_6(%arg0: i32, %arg1: i32) -> (i32, i32, i32) {
    %c0_i32 = arith.constant 0 : i32
    %c0_i32_0 = arith.constant 0 : i32
    return %arg0, %arg1, %c0_i32 : i32, i32, i32
  }
}

</mosaic_0001>

<bundles_post_ra>
// kernel: tpu_custom_call.1
= control target key start
LH: loop header
LB: loop body
LE: loop exit
PB: predicated region body
PF: predicated region fallthrough
CT: control target
= control target key end

     0   :  { %11 = vsyncpa [#allocation5], 0  ;;  %s5788_s0 = inlined_call_operand.vmem [shape: f32[2,28,128], index: 0, kind: input, shape index: {}]   ;;  %s5789_s1 = inlined_call_operand.hbm [shape: f32[896,128], index: 1, kind: input, shape index: {}]   ;;  %s5790_s2 = inlined_call_operand.hbm [shape: f32[640,128], index: 2, kind: input, shape index: {}]   ;;  %s5791_s3 = inlined_call_operand.hbm [shape: f32[384,128], index: 3, kind: input, shape index: {}]   ;;  %s5792_s4 = inlined_call_operand.hbm [shape: f32[128,128], index: 4, kind: input, shape index: {}]   ;;  %s5793_s5 = inlined_call_operand.vmem [shape: f32[4,128], index: 5, kind: input, shape index: {}]   ;;  %s5794_s6 = inlined_call_operand.hbm [shape: f32[2,16,128], index: 6, kind: output, shape index: {}]  }
   0x1   :  { %12 = vsyncpa [#allocation8], 0 }
   0x2   :  { %13 = vsyncpa [#allocation11], 0 }
   0x3   :  { %14 = vsyncpa [#allocation6], 0 }
   0x4   :  { %16 = vsyncpa [#allocation6 + $0x1], 0  ;;  %s4673_s21 = smov 0   ;;  %s4675_s22 = smov 0  }
   0x5   :  { %s4677_s23 = smov 0   ;;  %s4679_s24 = smov 0  }
   0x6   :  { %s4681_s25 = smov 0   ;;  %s4683_s26 = smov 0  }
   0x7 LB: > { %s3246_s27 = sadd.s32 4294967295, %s4619_s26   ;;  %s3247_s28 = sadd.s32 4294967294, %s4619_s26   ;;  %s4619_s26 = sphi %s4683_s26, %s22_s26   ;;  %s4615_s25 = sphi %s4681_s25, %s5814_s25   ;;  %s4611_s24 = sphi %s4679_s24, %s5813_s24   ;;  %s4607_s23 = sphi %s4677_s23, %s5812_s23   ;;  %s4603_s22 = sphi %s4675_s22, %s5811_s22   ;;  %s4599_s21 = sphi %s4673_s21, %s5810_s21  }
   0x8   : > { %s34_s29 = sadd.s32 1, %s4615_s25  ;;  %s148_s30 = sadd.s32 1, %s4607_s23 }
   0x9   : > { %p36_p0 = scmp.ge.s32.totalorder %s34_s29, 2  ;;  %p158_p1 = scmp.ne.s32.totalorder %s4607_s23, %s4603_s22 }
   0xa   : > { %p159_p2 = scmp.eq.s32.totalorder %s3246_s27, 1  ;;  %p164_p3 = scmp.ne.s32.totalorder %s4603_s22, %s4599_s21 }
   0xb   : > { %s5816_s29 = smov (%p36_p0, %s34_s29), 0  ;;  %p165_p5 = scmp.eq.s32.totalorder %s3247_s28, 1 }
   0xc   : > { %p4713_p4 = por %p159_p2, %p158_p1  ;;  %s143_s8 = ssub.s32 %s4615_s25, %s5816_s29 }
   0xd   : > { %p3248_p6 = scmp.ge.s32.totalorder %s4619_s26, 1  ;;  %p146_p7 = scmp.eq.s32.totalorder %s143_s8, 0 }
   0xe   : > { %p4720_p8 = por %p165_p5, %p164_p3  ;;  %p172_p9 = scmp.lt.s32.totalorder %s4619_s26, 3 }
   0xf   : > { %s4726_s10 = scalar_select %p146_p7, %s4607_s23, %s148_s30  }
  0x10   : > { %p4728_p10 = pnand %p3248_p6, %p172_p9  ;;  %p4732_p11 = scmp.eq.s32.totalorder %s3246_s27, 0 }
  0x11   : > { %s4621_s13 = smov [#allocation7]   ;;  %s4622_s16 = smov [#allocation4]  }
  0x12   : > { %p4303_p12 = pneg %p4728_p10  ;;  %s197_s14 = sshll.u32 %s4621_s13, 4  ;;  %s198_s14 = int_to_ptr.vmem [resolvable:$true] %s197_s14 }
  0x13   : > { %s184_s17 = sshll.u32 %s4622_s16, 4  ;;  %s4436_s18 = scalar_lea.vmem %s198_s14, 10240  ;;  %s185_s17 = int_to_ptr.vmem [resolvable:$true] %s184_s17 }
  0x14   : > { %p4740_p13 = pnand %p4732_p11, %p4303_p12  ;;  %p4437_p1 = scmp.ne.s32.totalorder %s198_s14, %s4436_s18 }
  0x15   : > { %p4444_p5 = scmp.lt.s32.totalorder %s198_s14, %s198_s14  ;;  %p4445_p6 = scmp.lt.s32.totalorder %s4436_s18, %s4436_s18 }
  0x16   : > { %p4427_p0 = pneg %p4740_p13 }
  0x17   : > { %p4446_p7 = por %p4445_p6, %p4444_p5 }
  0x18   : > { %p4439_p2 = pnand %p4437_p1, %p4427_p0 }
  0x1a   : > { %p4440_p3 = pneg %p4439_p2 }
  0x1c   : > { %p4447_p9 = pnand %p4446_p7, %p4440_p3 }
  0x1e   : > { %4450 = shalt.err (!%p4447_p9)
}
  0x1f   : > { %s4623_s19 = smov 128   ;;  %s4624_s20 = smov 8  }
  0x20   : > { %4309 = dma.hbm_to_vmem [thread:$0]  (!%p4740_p13), %s5790_s2, 10240, %s198_s14, [#allocation8], %s4623_s19, %s4623_s19, %s4624_s20  }
  0x21   : > { %s4462_s30 = scalar_lea.vmem %s185_s17, 14336  ;;  %p4470_p3 = scmp.lt.s32.totalorder %s185_s17, %s185_s17 }
  0x22   : > { %p4463_p12 = scmp.ne.s32.totalorder %s185_s17, %s4462_s30  ;;  %p4471_p5 = scmp.lt.s32.totalorder %s4462_s30, %s4462_s30 }
  0x24   : > { %p4465_p1 = pnand %p4463_p12, %p4427_p0  ;;  %p4472_p6 = por %p4471_p5, %p4470_p3 }
  0x26   : > { %p4466_p2 = pneg %p4465_p1 }
  0x28   : > { %p4473_p7 = pnand %p4472_p6, %p4466_p2 }
  0x2a   : > { %4476 = shalt.err (!%p4473_p7)
}
  0x2b   : > { %4306 = dma.hbm_to_vmem [thread:$0]  (!%p4740_p13), %s5789_s1, 14336, %s185_s17, [#allocation5], %s4623_s19, %s4623_s19, %s4624_s20  }
  0x2c   : > { %s4625_s14 = smov [#allocation9]   ;;  %s4626_s18 = smov [#allocation10]  }
  0x2d   : > { %s210_s16 = sshll.u32 %s4625_s14, 4  ;;  %s223_s27 = sshll.u32 %s4626_s18, 4  ;;  %s211_s16 = int_to_ptr.vmem [resolvable:$true] %s210_s16  ;;  %s224_s27 = int_to_ptr.vmem [resolvable:$true] %s223_s27 }
  0x2e   : > { %s4488_s28 = scalar_lea.vmem %s211_s16, 6144  ;;  %p4496_p2 = scmp.lt.s32.totalorder %s211_s16, %s211_s16 }
  0x2f   : > { %p4489_p9 = scmp.ne.s32.totalorder %s211_s16, %s4488_s28  ;;  %p4497_p3 = scmp.lt.s32.totalorder %s4488_s28, %s4488_s28 }
  0x31   : > { %p4491_p12 = pnand %p4489_p9, %p4427_p0  ;;  %p4498_p5 = por %p4497_p3, %p4496_p2 }
  0x33   : > { %p4492_p1 = pneg %p4491_p12 }
  0x35   : > { %p4499_p6 = pnand %p4498_p5, %p4492_p1 }
  0x37   : > { %4502 = shalt.err (!%p4499_p6)
}
  0x38   : > { %4312 = dma.hbm_to_vmem [thread:$0]  (!%p4740_p13), %s5791_s3, 6144, %s211_s16, [#allocation8], %s4623_s19, %s4623_s19, %s4624_s20  }
  0x39   : > { %s4514_s8 = scalar_lea.vmem %s224_s27, 2048  ;;  %p4522_p2 = scmp.lt.s32.totalorder %s224_s27, %s224_s27 }
  0x3a   : > { %p4515_p7 = scmp.ne.s32.totalorder %s224_s27, %s4514_s8  ;;  %p4523_p1 = scmp.lt.s32.totalorder %s4514_s8, %s4514_s8 }
  0x3c   : > { %p4517_p9 = pnand %p4515_p7, %p4427_p0  ;;  %p4524_p3 = por %p4523_p1, %p4522_p2 }
  0x3e   : > { %p4518_p12 = pneg %p4517_p9 }
  0x40   : > { %p4525_p5 = pnand %p4524_p3, %p4518_p12 }
  0x42   : > { %4528 = shalt.err (!%p4525_p5)
}
  0x43   : > { %4315 = dma.hbm_to_vmem [thread:$0]  (!%p4740_p13), %s5792_s4, 2048, %s224_s27, [#allocation11], %s4623_s19, %s4623_s19, %s4624_s20  }
  0x44   : > { %242 = sbr.rel (%p4728_p10) target bundleno = 1260 (0x4ec), region = 40 }
  0x49   : > { %4580 = dma.done.wait (%p4732_p11), [#allocation5], 14336  }
  0x4a   : > { %4582 = vsyncadd (%p4732_p11), [#allocation5], 4294952960 }
  0x4b   : > { %4584 = dma.done.wait (%p4732_p11), [#allocation8], 16384  }
  0x4c   : > { %4586 = vsyncadd (%p4732_p11), [#allocation8], 4294950912 }
  0x4d   : > { %4588 = dma.done.wait (%p4732_p11), [#allocation11], 2048  }
  0x4e   : > { %4590 = vsyncadd (%p4732_p11), [#allocation11], 4294965248  ;;  %s274_s11 = sand.u32 1, %s4603_s22   ;;  %s3259_s19 = sshll.u32 %s4611_s24, 5 }
  0x4f   : > { %s3258_s15 = sshll.u32 %s274_s11, 4  ;;  %s290_s18 = scalar_lea.vmem %s5788_s0, %s3259_s19 }
  0x50   : > { %v329_v0 = vld [vmem:[%s290_s18] sm:$0xff]  ;;  %v331_v1 = vld [vmem:[%s290_s18 + $0x8] sm:$0xff]  ;;  %v333_v2 = vld [vmem:[%s290_s18 + $0x10] sm:$0xff]  ;;  %s4811_s12 = scalar_lea.vmem [#allocation12], %s3258_s15 }
  0x51   : > { %330 = vst [vmem:[#allocation2 + $0x10] sm:$0xff] %v329_v0  ;;  %332 = vst [vmem:[#allocation2] sm:$0xff] %v331_v1  ;;  %v3260_v3 = vld [vmem:[%s290_s18 + $0x18] sm:$0xf] }
  0x52   : > { %334 = vst [vmem:[#allocation2 + $0x18] sm:$0xff] %v333_v2  ;;  %346 = vst [vmem:[#allocation2 + $0x8] sm:$0xf] %v3260_v3 }
  0x53   : > { %350 = vsyncadd [#allocation3], 448 }
  0x54   : > { %4591 = dma.done.wait [#allocation3], 448 }
  0x55   : > { %4592 = vsyncadd [#allocation3], 4294966848  ;;  %v4627_v4 = vmov 0.0   ;;  %vm4628_vm0 = vmmov 0   ;;  %v466_v5 = vld [vmem:[#allocation4 + $0xf8] sm:$0xff]  ;;  %v465_v7 = vld [vmem:[#allocation4 + $0xf0] sm:$0xff] }
  0x56   : > { %3621 = vmatprep.subr.mxu0 %v4627_v4  ;;  %3662 = vmatprep.subr.mxu1 %v4627_v4  ;;  %v450_v6 = vld [vmem:[#allocation4 + $0x78] sm:$0xff]  ;;  %v449_v8 = vld [vmem:[#allocation4 + $0x70] sm:$0xff]  ;;  %v464_v9 = vld [vmem:[#allocation4 + $0xe8] sm:$0xff]  ;;  %vm874_vm1 = vcmask 1043456   ;;  %vm984_vm2 = vcmask 1042432   ;;  %vm1094_vm3 = vcmask 1041408  }
  0x57   : > { %3653 = vmatprep.mubr.msk.f32.mxu0 %vm4628_vm0, %v4627_v4  ;;  %3694 = vmatprep.mubr.msk.f32.mxu1 %vm4628_vm0, %v4627_v4  ;;  %v448_v10 = vld [vmem:[#allocation4 + $0x68] sm:$0xff]  ;;  %v463_v11 = vld [vmem:[#allocation4 + $0xe0] sm:$0xff]  ;;  %v462_v13 = vld [vmem:[#allocation4 + $0xd8] sm:$0xff]  ;;  %vm470_vm4 = vcmask 1046528   ;;  %vm655_vm5 = vcmask 1045504   ;;  %vm764_vm6 = vcmask 1044480  }
  0x58   : > { %3622 = vmatpush3.msra.mxu0 %v466_v5  ;;  %3663 = vmatpush3.msra.mxu1 %v450_v6  ;;  %v447_v12 = vld [vmem:[#allocation4 + $0x60] sm:$0xff]  ;;  %v446_v14 = vld [vmem:[#allocation4 + $0x58] sm:$0xff]  ;;  %v461_v15 = vld [vmem:[#allocation4 + $0xd0] sm:$0xff]  ;;  %s3317_s19 = sshll.u32 %s4611_s24, 8  ;;  %s3089_s20 = sshll.u32 %s4811_s12, 4  ;;  %s5738_s20 = int_to_ptr.vmem [resolvable:$true] %s3089_s20 }
  0x59   : > { %3623 = vmatprep.subr.mxu0 %v4627_v4  ;;  %3664 = vmatprep.subr.mxu1 %v4627_v4  ;;  %v445_v16 = vld [vmem:[#allocation4 + $0x50] sm:$0xff]  ;;  %v460_v17 = vld [vmem:[#allocation4 + $0xc8] sm:$0xff]  ;;  %v459_v19 = vld [vmem:[#allocation4 + $0xc0] sm:$0xff]  ;;  %s5736_s27 = scalar_lea.hbm %s5794_s6, %s3317_s19  ;;  %s5743_s28 = scalar_lea.sflag [#allocation6], %s274_s11 }
  0x5a   : > { %3624 = vmatpush3.msra.mxu0 %v465_v7  ;;  %3665 = vmatpush3.msra.mxu1 %v449_v8  ;;  %v444_v18 = vld [vmem:[#allocation4 + $0x48] sm:$0xff]  ;;  %v443_v20 = vld [vmem:[#allocation4 + $0x40] sm:$0xff]  ;;  %v4831_v21 = vld [vmem:[#allocation2 + $0x10] sm:$0xff]  ;;  %s4529_s17 = scalar_lea.vmem %s5738_s20, 256  ;;  %s4635_s24 = smov [#allocation12]  }
  0x5b   : > { %3625 = vmatprep.subr.mxu0 %v4627_v4  ;;  %3666 = vmatprep.subr.mxu1 %v4627_v4  ;;  %v4833_v22 = vld [vmem:[#allocation2] sm:$0xff]  ;;  %v875_v23 = vrot.slane %v4831_v21, 4  ;;  %v985_v25 = vrot.slane %v4831_v21, 5  ;;  %v458_v26 = vld [vmem:[#allocation4 + $0xb8] sm:$0xff]  ;;  %v1095_v29 = vrot.slane %v4831_v21, 6  ;;  %v457_v32 = vld [vmem:[#allocation4 + $0xb0] sm:$0xff]  ;;  %p4530_p10 = scmp.ne.s32.totalorder %s5738_s20, %s4529_s17 }
  0x5c   : > { %3626 = vmatpush3.msra.mxu0 %v464_v9  ;;  %3667 = vmatpush3.msra.mxu1 %v448_v10  ;;  %v876_v24 = vrot.slane %v4833_v22, 4  ;;  %v442_v27 = vld [vmem:[#allocation4 + $0x38] sm:$0xff]  ;;  %v986_v28 = vrot.slane %v4833_v22, 5  ;;  %v1096_v31 = vrot.slane %v4833_v22, 6  ;;  %v441_v33 = vld [vmem:[#allocation4 + $0x30] sm:$0xff]  ;;  %v456_v36 = vld [vmem:[#allocation4 + $0xa8] sm:$0xff] }
  0x5d   : > { %3627 = vmatprep.subr.mxu0 %v4627_v4  ;;  %3668 = vmatprep.subr.mxu1 %v4627_v4  ;;  %v440_v37 = vld [vmem:[#allocation4 + $0x28] sm:$0xff]  ;;  %v4860_v38 = vld [vmem:[#allocation2 + $0x18] sm:$0xff]  ;;  %v455_v39 = vld [vmem:[#allocation4 + $0xa0] sm:$0xff]  ;;  %v471_v47 = vrot.slane %v4831_v21, 1  ;;  %v472_v48 = vrot.slane %v4833_v22, 1  ;;  %p4531_p11 = pnand %p4530_p10, %p4713_p4  ;;  %s4533_s30 = sshll.u32 %s4635_s24, 4  ;;  %s4534_s30 = int_to_ptr.vmem [resolvable:$false] %s4533_s30 }
  0x5e   : > { %3628 = vmatpush3.msra.mxu0 %v463_v11  ;;  %3669 = vmatpush3.msra.mxu1 %v447_v12  ;;  %v4845_v30 = vsel %vm874_vm1, %v875_v23, %v876_v24  ;;  %v4853_v34 = vsel %vm984_vm2, %v985_v25, %v986_v28  ;;  %v4856_v35 = vsel %vm1094_vm3, %v1095_v29, %v1096_v31  ;;  %v439_v40 = vld [vmem:[#allocation4 + $0x20] sm:$0xff]  ;;  %v1098_v41 = vrot.slane %v4860_v38, 6  ;;  %v454_v42 = vld [vmem:[#allocation4 + $0x98] sm:$0xff]  ;;  %v453_v45 = vld [vmem:[#allocation4 + $0x90] sm:$0xff]  ;;  %s4535_s8 = scalar_lea.vmem %s4534_s30, 512  ;;  %p4536_p0 = scmp.lt.s32.totalorder %s5738_s20, %s4534_s30 }
  0x5f   : > { %3629 = vmatprep.subr.mxu0 %v4627_v4  ;;  %3670 = vmatprep.subr.mxu1 %v4627_v4  ;;  %v438_v43 = vld [vmem:[#allocation4 + $0x18] sm:$0xff]  ;;  %v437_v46 = vld [vmem:[#allocation4 + $0x10] sm:$0xff]  ;;  %v452_v49 = vld [vmem:[#allocation4 + $0x88] sm:$0xff]  ;;  %v473_v55 = vsel %vm470_vm4, %v471_v47, %v472_v48  ;;  %v768_v47 = vrot.slane %v4860_v38, 3  ;;  %p4532_p13 = pneg %p4531_p11  ;;  %p4537_p6 = scmp.lt.s32.totalorder %s4535_s8, %s4529_s17 }
  0x60   : > { %3630 = vmatpush3.msra.mxu0 %v462_v13  ;;  %3671 = vmatpush3.msra.mxu1 %v446_v14  ;;  %v4868_v44 = vsel %vm1094_vm3, %v1096_v31, %v1098_v41  ;;  %v436_v50 = vld [vmem:[#allocation4 + $0x8] sm:$0xff]  ;;  %v451_v53 = vld [vmem:[#allocation4 + $0x80] sm:$0xff]  ;;  %v654_v57 = vld [vmem:[#allocation4 + $0x178] sm:$0xff]  ;;  %v474_v13 = vrot.slane %v4860_v38, 1 }
  0x61   : > { %3631 = vmatprep.subr.mxu0 %v4627_v4  ;;  %3672 = vmatprep.subr.mxu1 %v4627_v4  ;;  %v4876_v51 = vld [vmem:[#allocation2 + $0x8] sm:$0xf]  ;;  %v435_v54 = vld [vmem:[#allocation4] sm:$0xff]  ;;  %v653_v58 = vld [vmem:[#allocation4 + $0x170] sm:$0xff]  ;;  %p4538_p7 = por %p4537_p6, %p4536_p0 }
  0x62   : > { %3632 = vmatpush3.msra.mxu0 %v461_v15  ;;  %3673 = vmatpush3.msra.mxu1 %v445_v16  ;;  %v1100_v52 = vrot.slane %v4876_v51, 6  ;;  %v762_v59 = vld [vmem:[#allocation4 + $0x1f8] sm:$0xff]  ;;  %v652_v60 = vld [vmem:[#allocation4 + $0x168] sm:$0xff]  ;;  %v761_v61 = vld [vmem:[#allocation4 + $0x1f0] sm:$0xff]  ;;  %v475_v16 = vsel %vm470_vm4, %v472_v48, %v474_v13 }
  0x63   : > { %3633 = vmatprep.subr.mxu0 %v4627_v4  ;;  %3674 = vmatprep.subr.mxu1 %v4627_v4  ;;  %v651_v62 = vld [vmem:[#allocation4 + $0x160] sm:$0xff]  ;;  %v760_v63 = vld [vmem:[#allocation4 + $0x1e8] sm:$0xff]  ;;  %v650_v0 = vld [vmem:[#allocation4 + $0x158] sm:$0xff]  ;;  %p4539_p9 = pnand %p4538_p7, %p4532_p13 }
  0x64   : > { %3634 = vmatpush3.msra.mxu0 %v460_v17  ;;  %3675 = vmatpush3.msra.mxu1 %v444_v18  ;;  %v4885_v56 = vsel %vm1094_vm3, %v1098_v41, %v1100_v52  ;;  %v759_v1 = vld [vmem:[#allocation4 + $0x1e0] sm:$0xff]  ;;  %v649_v2 = vld [vmem:[#allocation4 + $0x150] sm:$0xff]  ;;  %v758_v3 = vld [vmem:[#allocation4 + $0x1d8] sm:$0xff]  ;;  %v659_v41 = vrot.slane %v4860_v38, 2 }
  0x65   : > { %3635 = vmatprep.subr.mxu0 %v4627_v4  ;;  %3676 = vmatprep.subr.mxu1 %v4627_v4  ;;  %v648_v5 = vld [vmem:[#allocation4 + $0x148] sm:$0xff]  ;;  %v757_v6 = vld [vmem:[#allocation4 + $0x1d0] sm:$0xff]  ;;  %v647_v7 = vld [vmem:[#allocation4 + $0x140] sm:$0xff] }
  0x66   : > { %3636 = vmatpush3.msra.mxu0 %v459_v19  ;;  %3677 = vmatpush3.msra.mxu1 %v443_v20  ;;  %v756_v8 = vld [vmem:[#allocation4 + $0x1c8] sm:$0xff]  ;;  %v646_v9 = vld [vmem:[#allocation4 + $0x138] sm:$0xff]  ;;  %v755_v10 = vld [vmem:[#allocation4 + $0x1c0] sm:$0xff] }
  0x67   : > { %3637 = vmatprep.subr.mxu0 %v4627_v4  ;;  %3678 = vmatprep.subr.mxu1 %v4627_v4  ;;  %v645_v11 = vld [vmem:[#allocation4 + $0x130] sm:$0xff]  ;;  %v754_v12 = vld [vmem:[#allocation4 + $0x1b8] sm:$0xff]  ;;  %v644_v14 = vld [vmem:[#allocation4 + $0x128] sm:$0xff] }
  0x68   : > { %3638 = vmatpush3.msra.mxu0 %v458_v26  ;;  %3679 = vmatpush3.msra.mxu1 %v442_v27  ;;  %v753_v15 = vld [vmem:[#allocation4 + $0x1b0] sm:$0xff]  ;;  %v643_v17 = vld [vmem:[#allocation4 + $0x120] sm:$0xff]  ;;  %v752_v18 = vld [vmem:[#allocation4 + $0x1a8] sm:$0xff]  ;;  %v656_v26 = vrot.slane %v4831_v21, 2  ;;  %v657_v27 = vrot.slane %v4833_v22, 2 }
  0x69   : > { %3639 = vmatprep.subr.mxu0 %v4627_v4  ;;  %3680 = vmatprep.subr.mxu1 %v4627_v4  ;;  %v642_v19 = vld [vmem:[#allocation4 + $0x118] sm:$0xff]  ;;  %v751_v20 = vld [vmem:[#allocation4 + $0x1a0] sm:$0xff]  ;;  %v641_v23 = vld [vmem:[#allocation4 + $0x110] sm:$0xff] }
  0x6a   : > { %3640 = vmatpush3.msra.mxu0 %v457_v32  ;;  %3681 = vmatpush3.msra.mxu1 %v441_v33  ;;  %v750_v25 = vld [vmem:[#allocation4 + $0x198] sm:$0xff]  ;;  %v640_v29 = vld [vmem:[#allocation4 + $0x108] sm:$0xff]  ;;  %v749_v31 = vld [vmem:[#allocation4 + $0x190] sm:$0xff]  ;;  %v765_v33 = vrot.slane %v4831_v21, 3 }
  0x6b   : > { %3641 = vmatprep.subr.mxu0 %v4627_v4  ;;  %3682 = vmatprep.subr.mxu1 %v4627_v4  ;;  %v639_v32 = vld [vmem:[#allocation4 + $0x100] sm:$0xff]  ;;  %v871_v48 = vld [vmem:[#allocation4 + $0x268] sm:$0xff] }
  0x6c   : > { %3642 = vmatpush3.msra.mxu0 %v456_v36  ;;  %3683 = vmatpush3.msra.mxu1 %v440_v37  ;;  %v766_v36 = vrot.slane %v4833_v22, 3  ;;  %v748_v37 = vld [vmem:[#allocation4 + $0x188] sm:$0xff]  ;;  %v870_v52 = vld [vmem:[#allocation4 + $0x260] sm:$0xff] }
  0x6d   : > { %3643 = vmatprep.subr.mxu0 %v4627_v4  ;;  %3684 = vmatprep.subr.mxu1 %v4627_v4 }
  0x6e   : > { %3644 = vmatpush3.msra.mxu0 %v455_v39  ;;  %3685 = vmatpush3.msra.mxu1 %v439_v40  ;;  %v658_v39 = vsel %vm655_vm5, %v656_v26, %v657_v27  ;;  %v747_v40 = vld [vmem:[#allocation4 + $0x180] sm:$0xff] }
  0x6f   : > { %3645 = vmatprep.subr.mxu0 %v4627_v4  ;;  %3686 = vmatprep.subr.mxu1 %v4627_v4 }
  0x70   : > { %3646 = vmatpush3.msra.mxu0 %v454_v42  ;;  %3687 = vmatpush3.msra.mxu1 %v438_v43  ;;  %v767_v42 = vsel %vm764_vm6, %v765_v33, %v766_v36  ;;  %v872_v43 = vld [vmem:[#allocation4 + $0x270] sm:$0xff]  ;;  %v1085_v33 = vld [vmem:[#allocation4 + $0x338] sm:$0xff] }
  0x71   : > { %3647 = vmatprep.subr.mxu0 %v4627_v4  ;;  %3688 = vmatprep.subr.mxu1 %v4627_v4 }
  0x72   : > { %3648 = vmatpush3.msra.mxu0 %v453_v45  ;;  %3689 = vmatpush3.msra.mxu1 %v437_v46  ;;  %v983_v45 = vld [vmem:[#allocation4 + $0x2f8] sm:$0xff]  ;;  %v660_v46 = vsel %vm655_vm5, %v657_v27, %v659_v41 }
  0x73   : > { %3649 = vmatprep.subr.mxu0 %v4627_v4  ;;  %3690 = vmatprep.subr.mxu1 %v4627_v4 }
  0x74   : > { %3650 = vmatpush3.msra.mxu0 %v452_v49  ;;  %3691 = vmatpush3.msra.mxu1 %v436_v50  ;;  %v982_v49 = vld [vmem:[#allocation4 + $0x2f0] sm:$0xff]  ;;  %v769_v50 = vsel %vm764_vm6, %v766_v36, %v768_v47 }
  0x75   : > { %3651 = vmatprep.subr.mxu0 %v4627_v4  ;;  %3692 = vmatprep.subr.mxu1 %v4627_v4  ;;  %v1084_v36 = vld [vmem:[#allocation4 + $0x330] sm:$0xff] }
  0x76   : > { %3652 = vmatpush3.msra.mxu0 %v451_v53  ;;  %3693 = vmatpush3.msra.mxu1 %v435_v54  ;;  %v981_v53 = vld [vmem:[#allocation4 + $0x2e8] sm:$0xff]  ;;  %v770_v54 = vrot.slane %v4876_v51, 3 }
  0x77   : > { %3654 = vmatmul.mubr.f32.vlgmr.msra.gmra.mxu0 %v473_v55  ;;  %3703 = vmatprep.subr.mxu0 %v4627_v4  ;;  %v869_v55 = vld [vmem:[#allocation4 + $0x258] sm:$0xff] }
  0x78   : > { %3695 = vmatmul.mubr.f32.vlgmr.msra.gmra.mxu1 %v4831_v21  ;;  %3704 = vmatpush3.msra.mxu0 %v654_v57  ;;  %v873_v21 = vld [vmem:[#allocation4 + $0x278] sm:$0xff]  ;;  %v980_v57 = vld [vmem:[#allocation4 + $0x2e0] sm:$0xff] }
  0x79   : > { %3705 = vmatprep.subr.mxu0 %v4627_v4  ;;  %3744 = vmatprep.subr.mxu1 %v4627_v4 }
  0x7a   : > { %3706 = vmatpush3.msra.mxu0 %v653_v58  ;;  %3745 = vmatpush3.msra.mxu1 %v762_v59  ;;  %v771_v58 = vsel %vm764_vm6, %v768_v47, %v770_v54  ;;  %v868_v59 = vld [vmem:[#allocation4 + $0x250] sm:$0xff] }
  0x7b   : > { %3707 = vmatprep.subr.mxu0 %v4627_v4  ;;  %3746 = vmatprep.subr.mxu1 %v4627_v4 }
  0x7c   : > { %3708 = vmatpush3.msra.mxu0 %v652_v60  ;;  %3747 = vmatpush3.msra.mxu1 %v761_v61  ;;  %v979_v60 = vld [vmem:[#allocation4 + $0x2d8] sm:$0xff]  ;;  %v867_v61 = vld [vmem:[#allocation4 + $0x248] sm:$0xff] }
  0x7d   : > { %3709 = vmatprep.subr.mxu0 %v4627_v4  ;;  %3748 = vmatprep.subr.mxu1 %v4627_v4 }
  0x7e   : > { %3710 = vmatpush3.msra.mxu0 %v651_v62  ;;  %3749 = vmatpush3.msra.mxu1 %v760_v63  ;;  %v978_v62 = vld [vmem:[#allocation4 + $0x2d0] sm:$0xff]  ;;  %v866_v63 = vld [vmem:[#allocation4 + $0x240] sm:$0xff] }
  0x7f   : > { %3711 = vmatprep.subr.mxu0 %v4627_v4  ;;  %3750 = vmatprep.subr.mxu1 %v4627_v4 }
  0x80   : > { %3712 = vmatpush3.msra.mxu0 %v650_v0  ;;  %3751 = vmatpush3.msra.mxu1 %v759_v1  ;;  %v977_v0 = vld [vmem:[#allocation4 + $0x2c8] sm:$0xff]  ;;  %v865_v1 = vld [vmem:[#allocation4 + $0x238] sm:$0xff] }
  0x81   : > { %3713 = vmatprep.subr.mxu0 %v4627_v4  ;;  %3752 = vmatprep.subr.mxu1 %v4627_v4 }
  0x82   : > { %3714 = vmatpush3.msra.mxu0 %v649_v2  ;;  %3753 = vmatpush3.msra.mxu1 %v758_v3  ;;  %v976_v2 = vld [vmem:[#allocation4 + $0x2c0] sm:$0xff]  ;;  %v864_v3 = vld [vmem:[#allocation4 + $0x230] sm:$0xff] }
  0x83   : > { %3715 = vmatprep.subr.mxu0 %v4627_v4  ;;  %3754 = vmatprep.subr.mxu1 %v4627_v4 }
  0x84   : > { %3716 = vmatpush3.msra.mxu0 %v648_v5  ;;  %3755 = vmatpush3.msra.mxu1 %v757_v6  ;;  %v975_v5 = vld [vmem:[#allocation4 + $0x2b8] sm:$0xff]  ;;  %v863_v6 = vld [vmem:[#allocation4 + $0x228] sm:$0xff] }
  0x85   : > { %3717 = vmatprep.subr.mxu0 %v4627_v4  ;;  %3756 = vmatprep.subr.mxu1 %v4627_v4 }
  0x86   : > { %3718 = vmatpush3.msra.mxu0 %v647_v7  ;;  %3757 = vmatpush3.msra.mxu1 %v756_v8  ;;  %v974_v7 = vld [vmem:[#allocation4 + $0x2b0] sm:$0xff]  ;;  %v862_v8 = vld [vmem:[#allocation4 + $0x220] sm:$0xff] }
  0x87   : > { %3719 = vmatprep.subr.mxu0 %v4627_v4  ;;  %3758 = vmatprep.subr.mxu1 %v4627_v4 }
  0x88   : > { %3720 = vmatpush3.msra.mxu0 %v646_v9  ;;  %3759 = vmatpush3.msra.mxu1 %v755_v10  ;;  %v973_v9 = vld [vmem:[#allocation4 + $0x2a8] sm:$0xff]  ;;  %v861_v10 = vld [vmem:[#allocation4 + $0x218] sm:$0xff] }
  0x89   : > { %3721 = vmatprep.subr.mxu0 %v4627_v4  ;;  %3760 = vmatprep.subr.mxu1 %v4627_v4 }
  0x8a   : > { %3722 = vmatpush3.msra.mxu0 %v645_v11  ;;  %3761 = vmatpush3.msra.mxu1 %v754_v12  ;;  %v972_v11 = vld [vmem:[#allocation4 + $0x2a0] sm:$0xff]  ;;  %v860_v12 = vld [vmem:[#allocation4 + $0x210] sm:$0xff] }
  0x8b   : > { %3723 = vmatprep.subr.mxu0 %v4627_v4  ;;  %3762 = vmatprep.subr.mxu1 %v4627_v4 }
  0x8c   : > { %3724 = vmatpush3.msra.mxu0 %v644_v14  ;;  %3763 = vmatpush3.msra.mxu1 %v753_v15  ;;  %v859_v14 = vld [vmem:[#allocation4 + $0x208] sm:$0xff]  ;;  %v970_v15 = vld [vmem:[#allocation4 + $0x290] sm:$0xff] }
  0x8d   : > { %3656 = vmatprep.mubr.msk.f32.mxu0 %vm4628_vm0, %v4627_v4  ;;  %3725 = vmatprep.subr.mxu0 %v4627_v4 }
  0x8e   : > { %3764 = vmatprep.subr.mxu1 %v4627_v4  ;;  %3657 = vmatmul.mubr.f32.gmra.mxu0 %v475_v16  ;;  %v858_v16 = vld [vmem:[#allocation4 + $0x200] sm:$0xff] }
  0x8f   : > { %3726 = vmatpush3.msra.mxu0 %v643_v17  ;;  %3765 = vmatpush3.msra.mxu1 %v752_v18  ;;  %v969_v17 = vld [vmem:[#allocation4 + $0x288] sm:$0xff]  ;;  %v968_v18 = vld [vmem:[#allocation4 + $0x280] sm:$0xff] }
  0x90   : > { %3697 = vmatprep.mubr.msk.f32.mxu1 %vm4628_vm0, %v4627_v4  ;;  %3727 = vmatprep.subr.mxu0 %v4627_v4 }
  0x91   : > { %3766 = vmatprep.subr.mxu1 %v4627_v4  ;;  %3698 = vmatmul.mubr.f32.gmra.mxu1 %v4833_v22  ;;  %v1089_v22 = vld [vmem:[#allocation4 + $0x358] sm:$0xff] }
  0x92   : > { %3728 = vmatpush3.msra.mxu0 %v642_v19  ;;  %3767 = vmatpush3.msra.mxu1 %v751_v20  ;;  %v878_v19 = vrot.slane %v4860_v38, 4  ;;  %v1093_v20 = vld [vmem:[#allocation4 + $0x378] sm:$0xff] }
  0x93   : > { %3659 = vmatprep.mubr.msk.f32.mxu0 %vm4628_vm0, %v4627_v4  ;;  %3729 = vmatprep.subr.mxu0 %v4627_v4 }
  0x94   : > { %3768 = vmatprep.subr.mxu1 %v4627_v4  ;;  %3660 = vmatmul.mubr.f32.gmra.mxu0 %v474_v13  ;;  %v971_v13 = vld [vmem:[#allocation4 + $0x298] sm:$0xff]  ;;  %v879_v26 = vsel %vm874_vm1, %v876_v24, %v878_v19  ;;  %v1090_v24 = vld [vmem:[#allocation4 + $0x360] sm:$0xff] }
  0x95   : > { %3730 = vmatpush3.msra.mxu0 %v641_v23  ;;  %3769 = vmatpush3.msra.mxu1 %v750_v25  ;;  %v988_v23 = vrot.slane %v4860_v38, 5  ;;  %v1092_v25 = vld [vmem:[#allocation4 + $0x370] sm:$0xff] }
  0x96   : > { %3700 = vmatprep.mubr.msk.f32.mxu1 %vm4628_vm0, %v4627_v4  ;;  %3731 = vmatprep.subr.mxu0 %v4627_v4 }
  0x97   : > { %3770 = vmatprep.subr.mxu1 %v4627_v4  ;;  %3701 = vmatmul.mubr.f32.gmra.mxu1 %v4860_v38  ;;  %v1091_v38 = vld [vmem:[#allocation4 + $0x368] sm:$0xff]  ;;  %v989_v27 = vsel %vm984_vm2, %v986_v28, %v988_v23 }
  0x98   : > { %3732 = vmatpush3.msra.mxu0 %v640_v29  ;;  %3771 = vmatpush3.msra.mxu1 %v749_v31  ;;  %v990_v29 = vrot.slane %v4876_v51, 5  ;;  %v1087_v31 = vld [vmem:[#allocation4 + $0x348] sm:$0xff] }
  0x99   : > { %3733 = vmatprep.subr.mxu0 %v4627_v4  ;;  %3772 = vmatprep.subr.mxu1 %v4627_v4 }
  0x9a   : > { %3734 = vmatpush3.msra.mxu0 %v639_v32  ;;  %3735 = vmatprep.mubr.msk.f32.mxu0 %vm4628_vm0, %v4627_v4  ;;  %v991_v28 = vsel %vm984_vm2, %v988_v23, %v990_v29  ;;  %v1086_v32 = vld [vmem:[#allocation4 + $0x340] sm:$0xff]  ;;  %v1195_v23 = vld [vmem:[#allocation10 + $0x38] sm:$0xff]  ;;  %v1190_v29 = vld [vmem:[#allocation10 + $0x10] sm:$0xff] }
  0x9b   : > { %3773 = vmatpush3.msra.mxu1 %v748_v37  ;;  %3736 = vmatmul.mubr.f32.vlgmr.msra.gmra.mxu0 %v658_v39  ;;  %v1083_v37 = vld [vmem:[#allocation4 + $0x328] sm:$0xff]  ;;  %v1082_v39 = vld [vmem:[#allocation4 + $0x320] sm:$0xff] }
  0x9c   : > { %3774 = vmatprep.subr.mxu1 %v4627_v4  ;;  %3785 = vmatprep.subr.mxu0 %v4627_v4 }
  0x9d   : > { %3775 = vmatpush3.msra.mxu1 %v747_v40  ;;  %3776 = vmatprep.mubr.msk.f32.mxu1 %vm4628_vm0, %v4627_v4  ;;  %v1081_v40 = vld [vmem:[#allocation4 + $0x318] sm:$0xff] }
  0x9e   : > { %3786 = vmatpush3.msra.mxu0 %v873_v21  ;;  %3777 = vmatmul.mubr.f32.vlgmr.msra.gmra.mxu1 %v767_v42  ;;  %v1079_v21 = vld [vmem:[#allocation4 + $0x308] sm:$0xff]  ;;  %v1078_v42 = vld [vmem:[#allocation4 + $0x300] sm:$0xff] }
  0x9f   : > { %3787 = vmatprep.subr.mxu0 %v4627_v4  ;;  %3826 = vmatprep.subr.mxu1 %v4627_v4 }
  0xa0   : > { %3738 = vmatprep.mubr.msk.f32.mxu0 %vm4628_vm0, %v4627_v4  ;;  %3788 = vmatpush3.msra.mxu0 %v872_v43 }
  0xa1   : > { %3827 = vmatpush3.msra.mxu1 %v983_v45  ;;  %3739 = vmatmul.mubr.f32.gmra.mxu0 %v660_v46 }
  0xa2   : > { %3789 = vmatprep.subr.mxu0 %v4627_v4  ;;  %3828 = vmatprep.subr.mxu1 %v4627_v4 }
  0xa3   : > { %3779 = vmatprep.mubr.msk.f32.mxu1 %vm4628_vm0, %v4627_v4  ;;  %3790 = vmatpush3.msra.mxu0 %v871_v48 }
  0xa4   : > { %3829 = vmatpush3.msra.mxu1 %v982_v49  ;;  %3791 = vmatprep.subr.mxu0 %v4627_v4 }
  0xa5   : > { %3780 = vmatmul.mubr.f32.gmra.mxu1 %v769_v50  ;;  %3830 = vmatprep.subr.mxu1 %v4627_v4 }
  0xa6   : > { %3741 = vmatprep.mubr.msk.f32.mxu0 %vm4628_vm0, %v4627_v4  ;;  %3792 = vmatpush3.msra.mxu0 %v870_v52 }
  0xa7   : > { %3831 = vmatpush3.msra.mxu1 %v981_v53  ;;  %3742 = vmatmul.mubr.f32.gmra.mxu0 %v659_v41  ;;  %v1080_v41 = vld [vmem:[#allocation4 + $0x310] sm:$0xff] }
  0xa8   : > { %3793 = vmatprep.subr.mxu0 %v4627_v4  ;;  %3832 = vmatprep.subr.mxu1 %v4627_v4 }
  0xa9   : > { %3782 = vmatprep.mubr.msk.f32.mxu1 %vm4628_vm0, %v4627_v4  ;;  %3794 = vmatpush3.msra.mxu0 %v869_v55 }
  0xaa   : > { %3833 = vmatpush3.msra.mxu1 %v980_v57  ;;  %3795 = vmatprep.subr.mxu0 %v4627_v4 }
  0xab   : > { %3783 = vmatmul.mubr.f32.gmra.mxu1 %v771_v58  ;;  %3834 = vmatprep.subr.mxu1 %v4627_v4 }
  0xac   : > { %3796 = vmatpush3.msra.mxu0 %v868_v59  ;;  %3835 = vmatpush3.msra.mxu1 %v979_v60 }
  0xad   : > { %3797 = vmatprep.subr.mxu0 %v4627_v4  ;;  %3836 = vmatprep.subr.mxu1 %v4627_v4 }
  0xae   : > { %3798 = vmatpush3.msra.mxu0 %v867_v61  ;;  %3837 = vmatpush3.msra.mxu1 %v978_v62  ;;  %v1203_v61 = vld [vmem:[#allocation10 + $0x78] sm:$0xff] }
  0xaf   : > { %3799 = vmatprep.subr.mxu0 %v4627_v4  ;;  %3838 = vmatprep.subr.mxu1 %v4627_v4 }
  0xb0   : > { %3800 = vmatpush3.msra.mxu0 %v866_v63  ;;  %3839 = vmatpush3.msra.mxu1 %v977_v0  ;;  %v1202_v0 = vld [vmem:[#allocation10 + $0x70] sm:$0xff] }
  0xb1   : > { %3801 = vmatprep.subr.mxu0 %v4627_v4  ;;  %3840 = vmatprep.subr.mxu1 %v4627_v4 }
  0xb2   : > { %3802 = vmatpush3.msra.mxu0 %v865_v1  ;;  %3841 = vmatpush3.msra.mxu1 %v976_v2 }
  0xb3   : > { %3803 = vmatprep.subr.mxu0 %v4627_v4  ;;  %3842 = vmatprep.subr.mxu1 %v4627_v4 }
  0xb4   : > { %3804 = vmatpush3.msra.mxu0 %v864_v3  ;;  %3843 = vmatpush3.msra.mxu1 %v975_v5  ;;  %v1201_v3 = vld [vmem:[#allocation10 + $0x68] sm:$0xff] }
  0xb5   : > { %3805 = vmatprep.subr.mxu0 %v4627_v4  ;;  %3844 = vmatprep.subr.mxu1 %v4627_v4 }
  0xb6   : > { %3806 = vmatpush3.msra.mxu0 %v863_v6  ;;  %3845 = vmatpush3.msra.mxu1 %v974_v7  ;;  %v1200_v7 = vld [vmem:[#allocation10 + $0x60] sm:$0xff] }
  0xb7   : > { %3807 = vmatprep.subr.mxu0 %v4627_v4  ;;  %3846 = vmatprep.subr.mxu1 %v4627_v4 }
  0xb8   : > { %3808 = vmatpush3.msra.mxu0 %v862_v8  ;;  %3847 = vmatpush3.msra.mxu1 %v973_v9  ;;  %v1199_v9 = vld [vmem:[#allocation10 + $0x58] sm:$0xff] }
  0xb9   : > { %3809 = vmatprep.subr.mxu0 %v4627_v4  ;;  %3848 = vmatprep.subr.mxu1 %v4627_v4 }
  0xba   : > { %3810 = vmatpush3.msra.mxu0 %v861_v10  ;;  %3849 = vmatpush3.msra.mxu1 %v972_v11 }
  0xbb   : > { %3811 = vmatprep.subr.mxu0 %v4627_v4  ;;  %3850 = vmatprep.subr.mxu1 %v4627_v4 }
  0xbc   : > { %3812 = vmatpush3.msra.mxu0 %v860_v12  ;;  %3851 = vmatpush3.msra.mxu1 %v971_v13  ;;  %v1198_v12 = vld [vmem:[#allocation10 + $0x50] sm:$0xff] }
  0xbd   : > { %3813 = vmatprep.subr.mxu0 %v4627_v4  ;;  %3852 = vmatprep.subr.mxu1 %v4627_v4 }
  0xbe   : > { %3814 = vmatpush3.msra.mxu0 %v859_v14  ;;  %3853 = vmatpush3.msra.mxu1 %v970_v15 }
  0xbf   : > { %3815 = vmatprep.subr.mxu0 %v4627_v4  ;;  %3854 = vmatprep.subr.mxu1 %v4627_v4 }
  0xc0   : > { %3816 = vmatpush3.msra.mxu0 %v858_v16  ;;  %3817 = vmatprep.mubr.msk.f32.mxu0 %vm4628_vm0, %v4627_v4  ;;  %v1197_v16 = vld [vmem:[#allocation10 + $0x48] sm:$0xff] }
  0xc1   : > { %3855 = vmatpush3.msra.mxu1 %v969_v17  ;;  %3818 = vmatmul.mubr.f32.vlgmr.msra.gmra.mxu0 %v4845_v30  ;;  %v880_v30 = vrot.slane %v4876_v51, 4  ;;  %v1088_v51 = vld [vmem:[#allocation4 + $0x350] sm:$0xff] }
  0xc2   : > { %3856 = vmatprep.subr.mxu1 %v4627_v4  ;;  %3867 = vmatprep.subr.mxu0 %v4627_v4 }
  0xc3   : > { %3857 = vmatpush3.msra.mxu1 %v968_v18  ;;  %3858 = vmatprep.mubr.msk.f32.mxu1 %vm4628_vm0, %v4627_v4  ;;  %v1196_v18 = vld [vmem:[#allocation10 + $0x40] sm:$0xff] }
  0xc4   : > { %3868 = vmatpush3.msra.mxu0 %v1093_v20  ;;  %3859 = vmatmul.mubr.f32.vlgmr.msra.gmra.mxu1 %v4853_v34  ;;  %v881_v34 = vsel %vm874_vm1, %v878_v19, %v880_v30  ;;  %v1193_v30 = vld [vmem:[#allocation10 + $0x28] sm:$0xff] }
  0xc5   : > { %3869 = vmatprep.subr.mxu0 %v4627_v4  ;;  %3820 = vmatprep.mubr.msk.f32.mxu0 %vm4628_vm0, %v4627_v4 }
  0xc6   : > { %3870 = vmatpush3.msra.mxu0 %v1092_v25  ;;  %3861 = vmatprep.mubr.msk.f32.mxu1 %vm4628_vm0, %v4627_v4 }
  0xc7   : > { %3821 = vmatmul.mubr.f32.gmra.mxu0 %v879_v26  ;;  %3871 = vmatprep.subr.mxu0 %v4627_v4  ;;  %v1194_v26 = vld [vmem:[#allocation10 + $0x30] sm:$0xff] }
  0xc8   : > { %3872 = vmatpush3.msra.mxu0 %v1091_v38  ;;  %3862 = vmatmul.mubr.f32.gmra.mxu1 %v989_v27  ;;  %v1192_v38 = vld [vmem:[#allocation10 + $0x20] sm:$0xff]  ;;  %v1191_v27 = vld [vmem:[#allocation10 + $0x18] sm:$0xff] }
  0xc9   : > { %3873 = vmatprep.subr.mxu0 %v4627_v4  ;;  %3823 = vmatprep.mubr.msk.f32.mxu0 %vm4628_vm0, %v4627_v4 }
  0xca   : > { %3874 = vmatpush3.msra.mxu0 %v1090_v24  ;;  %3864 = vmatprep.mubr.msk.f32.mxu1 %vm4628_vm0, %v4627_v4  ;;  %v1189_v24 = vld [vmem:[#allocation10 + $0x8] sm:$0xff] }
  0xcb   : > { %3824 = vmatmul.mubr.f32.gmra.mxu0 %v881_v34  ;;  %3875 = vmatprep.subr.mxu0 %v4627_v4  ;;  %v1188_v34 = vld [vmem:[#allocation10] sm:$0xff] }
  0xcc   : > { %3876 = vmatpush3.msra.mxu0 %v1089_v22  ;;  %3865 = vmatmul.mubr.f32.gmra.mxu1 %v991_v28  ;;  %v1674_v22 = vld [vmem:[#allocation7 + $0x78] sm:$0xff]  ;;  %v1673_v28 = vld [vmem:[#allocation7 + $0x70] sm:$0xff] }
  0xcd   : > { %3877 = vmatprep.subr.mxu0 %v4627_v4  ;;  %3899 = vmatprep.mubr.msk.f32.mxu0 %vm4628_vm0, %v4627_v4 }
  0xce   : > { %3878 = vmatpush3.msra.mxu0 %v1088_v51  ;;  %3940 = vmatprep.mubr.f32.mxu1 %v4856_v35 }
  0xcf   : > { %3879 = vmatprep.subr.mxu0 %v4627_v4  ;;  %3908 = vmatprep.subr.mxu1 %v1203_v61 }
  0xd0   : > { %3880 = vmatpush3.msra.mxu0 %v1087_v31  ;;  %3909 = vmatpush3.msra.mxu1 %v1203_v61  ;;  %v1672_v31 = vld [vmem:[#allocation7 + $0x68] sm:$0xff]  ;;  %v1663_v61 = vld [vmem:[#allocation7 + $0x20] sm:$0xff] }
  0xd1   : > { %3881 = vmatprep.subr.mxu0 %v4627_v4  ;;  %3910 = vmatprep.subr.mxu1 %v1202_v0 }
  0xd2   : > { %3882 = vmatpush3.msra.mxu0 %v1086_v32  ;;  %3911 = vmatpush3.msra.mxu1 %v1202_v0  ;;  %v1681_v0 = vld [vmem:[#allocation7 + $0xb0] sm:$0xff] }
  0xd3   : > { %3883 = vmatprep.subr.mxu0 %v4627_v4  ;;  %3912 = vmatprep.subr.mxu1 %v1201_v3 }
  0xd4   : > { %3884 = vmatpush3.msra.mxu0 %v1085_v33  ;;  %3913 = vmatpush3.msra.mxu1 %v1201_v3  ;;  %v1671_v33 = vld [vmem:[#allocation7 + $0x60] sm:$0xff]  ;;  %v1680_v3 = vld [vmem:[#allocation7 + $0xa8] sm:$0xff] }
  0xd5   : > { %3885 = vmatprep.subr.mxu0 %v4627_v4  ;;  %3914 = vmatprep.subr.mxu1 %v1200_v7 }
  0xd6   : > { %3886 = vmatpush3.msra.mxu0 %v1084_v36  ;;  %3915 = vmatpush3.msra.mxu1 %v1200_v7  ;;  %v1690_v36 = vld [vmem:[#allocation7 + $0xf8] sm:$0xff]  ;;  %v1659_v7 = vld [vmem:[#allocation7] sm:$0xff] }
  0xd7   : > { %3887 = vmatprep.subr.mxu0 %v4627_v4  ;;  %3916 = vmatprep.subr.mxu1 %v1199_v9 }
  0xd8   : > { %3888 = vmatpush3.msra.mxu0 %v1083_v37  ;;  %3917 = vmatpush3.msra.mxu1 %v1199_v9  ;;  %v1670_v37 = vld [vmem:[#allocation7 + $0x58] sm:$0xff]  ;;  %v1677_v9 = vld [vmem:[#allocation7 + $0x90] sm:$0xff] }
  0xd9   : > { %3889 = vmatprep.subr.mxu0 %v4627_v4  ;;  %3918 = vmatprep.subr.mxu1 %v1198_v12 }
  0xda   : > { %3890 = vmatpush3.msra.mxu0 %v1082_v39  ;;  %3919 = vmatpush3.msra.mxu1 %v1198_v12  ;;  %v1676_v12 = vld [vmem:[#allocation7 + $0x88] sm:$0xff] }
  0xdb   : > { %3891 = vmatprep.subr.mxu0 %v4627_v4  ;;  %3920 = vmatprep.subr.mxu1 %v1197_v16 }
  0xdc   : > { %3892 = vmatpush3.msra.mxu0 %v1081_v40  ;;  %3921 = vmatpush3.msra.mxu1 %v1197_v16  ;;  %v1689_v40 = vld [vmem:[#allocation7 + $0xf0] sm:$0xff] }
  0xdd   : > { %3893 = vmatprep.subr.mxu0 %v4627_v4  ;;  %3922 = vmatprep.subr.mxu1 %v1196_v18 }
  0xde   : > { %3894 = vmatpush3.msra.mxu0 %v1080_v41  ;;  %3923 = vmatpush3.msra.mxu1 %v1196_v18 }
  0xdf   : > { %3895 = vmatprep.subr.mxu0 %v4627_v4  ;;  %3924 = vmatprep.subr.mxu1 %v1195_v23 }
  0xe0   : > { %3896 = vmatpush3.msra.mxu0 %v1079_v21  ;;  %3925 = vmatpush3.msra.mxu1 %v1195_v23  ;;  %v1669_v21 = vld [vmem:[#allocation7 + $0x50] sm:$0xff] }
  0xe1   : > { %3897 = vmatprep.subr.mxu0 %v4627_v4  ;;  %3926 = vmatprep.subr.mxu1 %v1194_v26 }
  0xe2   : > { %3898 = vmatpush3.msra.mxu0 %v1078_v42  ;;  %3927 = vmatpush3.msra.mxu1 %v1194_v26  ;;  %v1688_v42 = vld [vmem:[#allocation7 + $0xe8] sm:$0xff] }
  0xe3   : > { %3900 = vmatmul.mubr.f32.vlgmr.msra.gmra.mxu0 %v4856_v35  ;;  %3943 = vmatprep.subr.mxu0 %v4627_v4 }
  0xe4   : > { %3902 = vmatprep.mubr.msk.f32.mxu0 %vm4628_vm0, %v4627_v4  ;;  %3928 = vmatprep.subr.mxu1 %v1193_v30 }
  0xe5   : > { %3929 = vmatpush3.msra.mxu1 %v1193_v30  ;;  %3944 = vmatpush3.msra.mxu0 %v1690_v36 }
  0xe6   : > { %3930 = vmatprep.subr.mxu1 %v1192_v38  ;;  %3945 = vmatprep.subr.mxu0 %v4627_v4 }
  0xe7   : > { %3903 = vmatmul.mubr.f32.gmra.mxu0 %v4868_v44  ;;  %3931 = vmatpush3.msra.mxu1 %v1192_v38 }
  0xe8   : > { %3905 = vmatprep.mubr.msk.f32.mxu0 %vm4628_vm0, %v4627_v4  ;;  %3932 = vmatprep.subr.mxu1 %v1191_v27 }
  0xe9   : > { %3933 = vmatpush3.msra.mxu1 %v1191_v27  ;;  %3946 = vmatpush3.msra.mxu0 %v1689_v40 }
  0xea   : > { %3934 = vmatprep.subr.mxu1 %v1190_v29  ;;  %3947 = vmatprep.subr.mxu0 %v4627_v4 }
  0xeb   : > { %3906 = vmatmul.mubr.f32.gmra.mxu0 %v4885_v56  ;;  %3935 = vmatpush3.msra.mxu1 %v1190_v29 }
  0xec   : > { %3975 = vmatprep.mubr.msk.f32.mxu0 %vm4628_vm0, %v4627_v4  ;;  %3936 = vmatprep.subr.mxu1 %v1189_v24 }
  0xed   : > { %3937 = vmatpush3.msra.mxu1 %v1189_v24  ;;  %3948 = vmatpush3.msra.mxu0 %v1688_v42 }
  0xee   : > { %3938 = vmatprep.subr.mxu1 %v1188_v34  ;;  %3949 = vmatprep.subr.mxu0 %v4627_v4 }
  0xef   : > { %3939 = vmatpush3.msra.mxu1 %v1188_v34 }
  0xf0   : > { %3984 = vmatprep.subr.mxu1 %v4627_v4  ;;  %3941 = vmatmul.mubr.f32.vlgmr.msra.gmra.mxu1 %v4868_v44 }
  0xf1   : > { %3985 = vmatpush3.msra.mxu1 %v1674_v22  ;;  %4016 = vmatprep.mubr.msk.f32.mxu1 %vm4628_vm0, %v4627_v4 }
  0xf2   : > { %3986 = vmatprep.subr.mxu1 %v4627_v4 }
  0xf3   : > { %3987 = vmatpush3.msra.mxu1 %v1673_v28 }
  0xf4   : > { %3988 = vmatprep.subr.mxu1 %v4627_v4 }
  0xf5   : > { %3989 = vmatpush3.msra.mxu1 %v1672_v31 }
  0xf6   : > { %3990 = vmatprep.subr.mxu1 %v4627_v4 }
  0xf7   : > { %3991 = vmatpush3.msra.mxu1 %v1671_v33 }
  0xf8   : > { %3992 = vmatprep.subr.mxu1 %v4627_v4 }
  0xf9   : > { %3993 = vmatpush3.msra.mxu1 %v1670_v37 }
  0xfa   : > { %3994 = vmatprep.subr.mxu1 %v4627_v4 }
  0xfb   : > { %3995 = vmatpush3.msra.mxu1 %v1669_v21 }
  0xfc   : > { %3996 = vmatprep.subr.mxu1 %v4627_v4 }
 0x137   : > { %v545_v43 = vpop.f32.mrf.mxu0 }
 0x138   : > { %v625_v45 = vpop.f32.mrf.mxu1 }
 0x139   : > { %v626_v46 = vadd.f32 %v625_v45, %v545_v43  ;;  %v3655_v47 = vpop.f32.mrf.mxu0  ;;  %v1668_v43 = vld [vmem:[#allocation7 + $0x48] sm:$0xff] }
 0x13a   : > { %v3696_v35 = vpop.f32.mrf.mxu1  ;;  %3997 = vmatpush3.msra.mxu1 %v1668_v43 }
 0x13b   : > { %v1667_v35 = vld [vmem:[#allocation7 + $0x40] sm:$0xff]  ;;  %3998 = vmatprep.subr.mxu1 %v4627_v4 }
 0x13c   : > { %3999 = vmatpush3.msra.mxu1 %v1667_v35 }
 0x13d   : > { %4000 = vmatprep.subr.mxu1 %v4627_v4 }
 0x14e   : > { %v550_v48 = vpop.f32.mrf.mxu0 }
 0x150   : > { %v3658_v49 = vpop.f32.mrf.mxu0 }
 0x151   : > { %v630_v50 = vpop.f32.mrf.mxu1  ;;  %v1686_v49 = vld [vmem:[#allocation7 + $0xd8] sm:$0xff] }
 0x152   : > { %v631_v52 = vadd.f32 %v630_v50, %v550_v48 }
 0x153   : > { %v3699_v53 = vpop.f32.mrf.mxu1 }
 0x154   : > { %v555_v54 = vpop.f32.mrf.mxu0 }
 0x156   : > { %v3661_v55 = vpop.f32.mrf.mxu0 }
 0x157   : > { %v635_v57 = vpop.f32.mrf.mxu1 }
 0x158   : > { %v636_v58 = vadd.f32 %v635_v57, %v555_v54  ;;  %v1685_v54 = vld [vmem:[#allocation7 + $0xd0] sm:$0xff] }
 0x159   : > { %v3702_v59 = vpop.f32.mrf.mxu1  ;;  %v1665_v57 = vld [vmem:[#allocation7 + $0x30] sm:$0xff] }
 0x15a   : > { %v1684_v59 = vld [vmem:[#allocation7 + $0xc8] sm:$0xff] }
 0x15b   : > { %v730_v60 = vpop.f32.mrf.mxu0 }
 0x15c   : > { %v744_v56 = vadd.f32 %v730_v60, %v626_v46  ;;  %v1687_v46 = vld [vmem:[#allocation7 + $0xe0] sm:$0xff]  ;;  %v1664_v60 = vld [vmem:[#allocation7 + $0x28] sm:$0xff] }
 0x15d   : > { %v3737_v62 = vpop.f32.mrf.mxu0  ;;  %3950 = vmatpush3.msra.mxu0 %v1687_v46 }
 0x15e   : > { %v841_v63 = vpop.f32.mrf.mxu1  ;;  %3951 = vmatprep.subr.mxu0 %v4627_v4  ;;  %v1682_v62 = vld [vmem:[#allocation7 + $0xb8] sm:$0xff] }
 0x15f   : > { %v5047_v1 = vadd.f32 %v841_v63, %v744_v56  ;;  %3952 = vmatpush3.msra.mxu0 %v1686_v49  ;;  %v1683_v56 = vld [vmem:[#allocation7 + $0xc0] sm:$0xff]  ;;  %v1662_v63 = vld [vmem:[#allocation7 + $0x18] sm:$0xff] }
 0x160   : > { %v3778_v2 = vpop.f32.mrf.mxu1  ;;  %3953 = vmatprep.subr.mxu0 %v4627_v4 }
 0x161   : > { %v735_v5 = vpop.f32.mrf.mxu0  ;;  %3954 = vmatpush3.msra.mxu0 %v1685_v54  ;;  %v1661_v2 = vld [vmem:[#allocation7 + $0x10] sm:$0xff]  ;;  %v4631_v54 = vmov 2131351028  }
 0x162   : > { %v745_v6 = vadd.f32 %v735_v5, %v631_v52  ;;  %v1666_v52 = vld [vmem:[#allocation7 + $0x38] sm:$0xff]  ;;  %3955 = vmatprep.subr.mxu0 %v4627_v4  ;;  %v1660_v5 = vld [vmem:[#allocation7 + $0x8] sm:$0xff] }
 0x163   : > { %v3740_v8 = vpop.f32.mrf.mxu0  ;;  %4001 = vmatpush3.msra.mxu1 %v1666_v52  ;;  %3956 = vmatpush3.msra.mxu0 %v1684_v59  ;;  %v4633_v59 = vmov 920167782  }
 0x164   : > { %4002 = vmatprep.subr.mxu1 %v4627_v4  ;;  %3957 = vmatprep.subr.mxu0 %v4627_v4  ;;  %v1678_v8 = vld [vmem:[#allocation7 + $0x98] sm:$0xff] }
 0x165   : > { %v846_v10 = vpop.f32.mrf.mxu1  ;;  %4003 = vmatpush3.msra.mxu1 %v1665_v57  ;;  %3958 = vmatpush3.msra.mxu0 %v1683_v56  ;;  %v4632_v57 = vmov 2102212464  }
 0x166   : > { %v5049_v11 = vadd.f32 %v846_v10, %v745_v6  ;;  %4004 = vmatprep.subr.mxu1 %v4627_v4  ;;  %3959 = vmatprep.subr.mxu0 %v4627_v4  ;;  %v1679_v6 = vld [vmem:[#allocation7 + $0xa0] sm:$0xff] }
 0x167   : > { %v740_v13 = vpop.f32.mrf.mxu0  ;;  %v3781_v14 = vpop.f32.mrf.mxu1  ;;  %4005 = vmatpush3.msra.mxu1 %v1664_v60  ;;  %3960 = vmatpush3.msra.mxu0 %v1682_v62 }
 0x168   : > { %v746_v15 = vadd.f32 %v740_v13, %v636_v58  ;;  %4006 = vmatprep.subr.mxu1 %v4627_v4  ;;  %3961 = vmatprep.subr.mxu0 %v4627_v4  ;;  %v1675_v13 = vld [vmem:[#allocation7 + $0x80] sm:$0xff] }
 0x169   : > { %v3743_v17 = vpop.f32.mrf.mxu0  ;;  %4007 = vmatpush3.msra.mxu1 %v1663_v61  ;;  %3962 = vmatpush3.msra.mxu0 %v1681_v0 }
 0x16a   : > { %4008 = vmatprep.subr.mxu1 %v4627_v4  ;;  %3963 = vmatprep.subr.mxu0 %v4627_v4 }
 0x16b   : > { %v851_v19 = vpop.f32.mrf.mxu1  ;;  %4009 = vmatpush3.msra.mxu1 %v1662_v63  ;;  %3964 = vmatpush3.msra.mxu0 %v1680_v3 }
 0x16c   : > { %v5051_v20 = vadd.f32 %v851_v19, %v746_v15  ;;  %4010 = vmatprep.subr.mxu1 %v4627_v4  ;;  %3965 = vmatprep.subr.mxu0 %v4627_v4 }
 0x16d   : > { %v3784_v25 = vpop.f32.mrf.mxu1  ;;  %4011 = vmatpush3.msra.mxu1 %v1661_v2  ;;  %3966 = vmatpush3.msra.mxu0 %v1679_v6  ;;  %v4634_v2 = vmov 1326507024  }
 0x16e   : > { %4012 = vmatprep.subr.mxu1 %v4627_v4  ;;  %3967 = vmatprep.subr.mxu0 %v4627_v4 }
 0x16f   : > { %4013 = vmatpush3.msra.mxu1 %v1660_v5  ;;  %3968 = vmatpush3.msra.mxu0 %v1678_v8 }
 0x170   : > { %4014 = vmatprep.subr.mxu1 %v4627_v4  ;;  %3969 = vmatprep.subr.mxu0 %v4627_v4 }
 0x171   : > { %4015 = vmatpush3.msra.mxu1 %v1659_v7  ;;  %3970 = vmatpush3.msra.mxu0 %v1677_v9 }
 0x172   : > { %4066 = vmatprep.subr.mxu1 %v4627_v4  ;;  %3971 = vmatprep.subr.mxu0 %v4627_v4 }
 0x173   : > { %3972 = vmatpush3.msra.mxu0 %v1676_v12 }
 0x174   : > { %3973 = vmatprep.subr.mxu0 %v4627_v4 }
 0x175   : > { %3974 = vmatpush3.msra.mxu0 %v1675_v13 }
 0x176   : > { %4025 = vmatprep.subr.mxu0 %v4627_v4 }
 0x181   : > { %v5058_v51 = vpop.f32.mrf.mxu0 }
 0x182   : > { %v965_v10 = vadd.f32 %v5058_v51, %v5047_v1  ;;  %v3275_v1 = vld [vmem:[%s5793_s5] ss:$0 sm:$0xff] }
 0x183   : > { %v3819_v32 = vpop.f32.mrf.mxu0 }
 0x184   : > { %v5062_v44 = vpop.f32.mrf.mxu1 }
 0x185   : > { %v1075_v14 = vadd.f32 %v5062_v44, %v965_v10 }
 0x186   : > { %v3860_v39 = vpop.f32.mrf.mxu1 }
 0x187   : > { %v5066_v41 = vpop.f32.mrf.mxu0 }
 0x188   : > { %v5069_v45 = vpop.f32.mrf.mxu1  ;;  %v966_v15 = vadd.f32 %v5066_v41, %v5049_v11 }
 0x189   : > { %v3822_v47 = vpop.f32.mrf.mxu0 }
 0x18a   : > { %v3863_v48 = vpop.f32.mrf.mxu1  ;;  %v1076_v19 = vadd.f32 %v5069_v45, %v966_v15 }
 0x18b   : > { %v5074_v50 = vpop.f32.mrf.mxu0  ;;  %v4629_v48 = vmov 683565275  }
 0x18c   : > { %v5077_v53 = vpop.f32.mrf.mxu1  ;;  %v967_v25 = vadd.f32 %v5074_v50, %v5051_v20  ;;  %v4630_v50 = vmov 2475754826  }
 0x18d   : > { %v3825_v55 = vpop.f32.mrf.mxu0 }
 0x18e   : > { %v3866_v58 = vpop.f32.mrf.mxu1  ;;  %v1077_v34 = vadd.f32 %v5077_v53, %v967_v25 }
 0x1a3   : > { %v1171_v16 = vpop.f32.mrf.mxu0 }
 0x1a4   : > { %v1185_v17 = vadd.f32 %v1171_v16, %v1075_v14 }
 0x1a5   : > { %v3901_v18 = vpop.f32.mrf.mxu0 }
 0x1a6   : > { %v5110_v23 = vadd.f32 %v3275_v1, %v1185_v17 }
 0x1a7   : > { %v1176_v11 = vpop.f32.mrf.mxu0 }
 0x1a8   : > { %v1292_v26 = vand.u32 2147483647, %v5110_v23  ;;  %v1295_v30 = vand.u32 2139095040, %v5110_v23  ;;  %v1186_v38 = vadd.f32 %v1176_v11, %v1076_v19 }
 0x1a9   : > { %v3904_v27 = vpop.f32.mrf.mxu0 }
 0x1aa   : > { %v1296_v29 = vshrl.u32 %v1295_v30, 23  ;;  %v5116_v24 = vadd.f32 %v3275_v1, %v1186_v38  ;;  %v1299_v22 = vand.u32 8388607, %v1292_v26 }
 0x1ab   : > { %v1181_v28 = vpop.f32.mrf.mxu0 }
 0x1ac   : > { %v3276_v51 = vadd.s32 4294967169, %v1296_v29  ;;  %v1396_v31 = vand.u32 2147483647, %v5116_v24  ;;  %v1399_v20 = vand.u32 2139095040, %v5116_v24  ;;  %v1187_v32 = vadd.f32 %v1181_v28, %v1077_v34 }
 0x1ad   : > { %v3907_v33 = vpop.f32.mrf.mxu0  ;;  %v1300_v36 = vor.u32 8388608, %v1299_v22 }
 0x1ae   : > { %v1302_v44 = vadd.s32 1, %v3276_v51  ;;  %v1400_v37 = vshrl.u32 %v1399_v20, 23  ;;  %v1403_v39 = vand.u32 8388607, %v1396_v31  ;;  %v5125_v40 = vadd.f32 %v3275_v1, %v1187_v32 }
 0x1af   : > { %v5127_v45 = vshll.u32 %v1300_v36, 8 }
 0x1b0   : > { %vm1303_vm7 = vcmp.gt.s32.totalorder %v1302_v44, 0  ;;  %v3280_v21 = vadd.s32 4294967169, %v1400_v37  ;;  %v1404_v46 = vor.u32 8388608, %v1403_v39  ;;  %v1503_v47 = vand.u32 2139095040, %v5125_v40 }
 0x1b1   : > { %v1304_v41 = vsel %vm1303_vm7, %v1302_v44, 0  ;;  %v1500_v29 = vand.u32 2147483647, %v5125_v40 }
 0x1b2   : > { %v1305_v42 = vshrl.u32 %v1304_v41, 5  ;;  %v1306_v43 = vand.u32 31, %v1304_v41  ;;  %v1406_v53 = vadd.s32 1, %v3280_v21  ;;  %v1444_v33 = vshll.u32 %v1404_v46, 8 }
 0x1b3   : > { %v1504_v44 = vshrl.u32 %v1503_v47, 23 }
 0x1b4   : > { %v1307_v35 = vsub.s32 32, %v1306_v43  ;;  %v1309_v49 = vshll.u32 %v4629_v48, %v1306_v43  ;;  %v1312_v52 = vshll.u32 %v4630_v50, %v1306_v43  ;;  %v1315_v55 = vshll.u32 %v4631_v54, %v1306_v43 }
 0x1b5   : > { %v1318_v58 = vshll.u32 %v4632_v57, %v1306_v43  ;;  %v1321_v60 = vshll.u32 %v4633_v59, %v1306_v43  ;;  %vm1324_vm8 = vcmp.lt.s32.totalorder %v1305_v42, 1  ;;  %vm1325_vm9 = vcmp.lt.s32.totalorder %v1305_v42, 2 }
 0x1b6   : > { %v1310_v56 = vshrl.u32 %v4630_v50, %v1307_v35  ;;  %v1313_v61 = vshrl.u32 %v4631_v54, %v1307_v35  ;;  %v1316_v62 = vshrl.u32 %v4632_v57, %v1307_v35  ;;  %v1308_v63 = vshrl.u32 %v4629_v48, %v1307_v35 }
 0x1b7   : > { %v1319_v0 = vshrl.u32 %v4633_v59, %v1307_v35  ;;  %v1322_v3 = vshrl.u32 %v4634_v2, %v1307_v35  ;;  %vm1326_vm10 = vcmp.lt.s32.totalorder %v1305_v42, 3  ;;  %vm1407_vm11 = vcmp.gt.s32.totalorder %v1406_v53, 0 }
 0x1b8   : > { %v1311_v5 = vor.u32 %v1310_v56, %v1309_v49  ;;  %v1314_v6 = vor.u32 %v1313_v61, %v1312_v52  ;;  %v1317_v7 = vor.u32 %v1316_v62, %v1315_v55  ;;  %vm1327_vm12 = vcmp.lt.s32.totalorder %v1305_v42, 4 }
 0x1b9   : > { %v1320_v8 = vor.u32 %v1319_v0, %v1318_v58  ;;  %v1323_v9 = vor.u32 %v1322_v3, %v1321_v60  ;;  %v1408_v10 = vsel %vm1407_vm11, %v1406_v53, 0 }
 0x1ba   : > { %v1328_v12 = vsel %vm1324_vm8, %v1308_v63, %v1311_v5  ;;  %v1329_v13 = vsel %vm1327_vm12, %v1317_v7, 2102212464  ;;  %v1332_v14 = vsel %vm1324_vm8, %v1311_v5, %v1314_v6  ;;  %v1336_v15 = vsel %vm1324_vm8, %v1314_v6, %v1317_v7 }
 0x1bb   : > { %v1330_v16 = vsel %vm1326_vm10, %v1314_v6, %v1329_v13  ;;  %v1333_v1 = vsel %vm1327_vm12, %v1320_v8, 920167782  ;;  %v1337_v17 = vsel %vm1327_vm12, %v1323_v9, 1326507024  ;;  %v1409_v18 = vshrl.u32 %v1408_v10, 5 }
 0x1bc   : > { %v1331_v19 = vsel %vm1325_vm9, %v1328_v12, %v1330_v16  ;;  %v1334_v25 = vsel %vm1326_vm10, %v1317_v7, %v1333_v1  ;;  %v1338_v11 = vsel %vm1326_vm10, %v1320_v8, %v1337_v17  ;;  %v1410_v30 = vand.u32 31, %v1408_v10 }
 0x1bd   : > { %v1335_v38 = vsel %vm1325_vm9, %v1332_v14, %v1334_v25  ;;  %v1339_v27 = vsel %vm1325_vm9, %v1336_v15, %v1338_v11  ;;  %v1347_v20 = vmul.u32 %v5127_v45, %v1331_v19  ;;  %vm1428_vm13 = vcmp.lt.s32.totalorder %v1409_v18, 1 }
 0x1be   : > { %v5152_v34 = vmul.u32.u64.low %v5127_v45, %v1339_v27  ;;  %v5153_v22 = vmul.u32.u64.high %v5127_v45, %v1339_v27, %v5152_v34  ;;  %v5156_v28 = vmul.u32.u64.low %v5127_v45, %v1335_v38  ;;  %v5157_v51 = vmul.u32.u64.high %v5127_v45, %v1335_v38, %v5156_v28 }
 0x1bf   : > { %v1411_v32 = vsub.s32 32, %v1410_v30  ;;  %v1413_v36 = vshll.u32 %v4629_v48, %v1410_v30  ;;  %v1416_v37 = vshll.u32 %v4630_v50, %v1410_v30  ;;  %v1419_v39 = vshll.u32 %v4631_v54, %v1410_v30 }
 0x1c0   : > { %v1422_v43 = vshll.u32 %v4632_v57, %v1410_v30  ;;  %vm1349_vm14 = vc.u32 %v5153_v22, %v5156_v28  ;;  %v1350_v45 = vadd.s32 1, %v5157_v51  ;;  %v1425_v47 = vshll.u32 %v4633_v59, %v1410_v30 }
 0x1c1   : > { %v1414_v41 = vshrl.u32 %v4630_v50, %v1411_v32  ;;  %v1417_v21 = vshrl.u32 %v4631_v54, %v1411_v32  ;;  %v1420_v42 = vshrl.u32 %v4632_v57, %v1411_v32  ;;  %v1423_v46 = vshrl.u32 %v4633_v59, %v1411_v32 }
 0x1c2   : > { %v1426_v53 = vshrl.u32 %v4634_v2, %v1411_v32  ;;  %v1351_v55 = vsel %vm1349_vm14, %v1350_v45, %v5157_v51  ;;  %vm1430_vm15 = vcmp.lt.s32.totalorder %v1409_v18, 3  ;;  %vm1431_vm2 = vcmp.lt.s32.totalorder %v1409_v18, 4 }
 0x1c3   : > { %v1415_v35 = vor.u32 %v1414_v41, %v1413_v36  ;;  %v1418_v49 = vor.u32 %v1417_v21, %v1416_v37  ;;  %v1421_v52 = vor.u32 %v1420_v42, %v1419_v39  ;;  %v1424_v58 = vor.u32 %v1423_v46, %v1422_v43 }
 0x1c4   : > { %v1352_v60 = vadd.s32 %v1351_v55, %v1347_v20  ;;  %v1412_v56 = vshrl.u32 %v4629_v48, %v1411_v32  ;;  %v1427_v61 = vor.u32 %v1426_v53, %v1425_v47  ;;  %v3284_v5 = vadd.s32 4294967169, %v1504_v44 }
 0x1c5   : > { %v1433_v62 = vsel %vm1431_vm2, %v1421_v52, 2102212464  ;;  %v1436_v63 = vsel %vm1428_vm13, %v1415_v35, %v1418_v49  ;;  %v1437_v0 = vsel %vm1431_vm2, %v1424_v58, 920167782  ;;  %v1440_v3 = vsel %vm1428_vm13, %v1418_v49, %v1421_v52 }
 0x1c6   : > { %v1353_v6 = vadd.s32 536870912, %v1352_v60  ;;  %vm1429_vm3 = vcmp.lt.s32.totalorder %v1409_v18, 2  ;;  %v1438_v7 = vsel %vm1430_vm15, %v1421_v52, %v1437_v0  ;;  %v1441_v8 = vsel %vm1431_vm2, %v1427_v61, 1326507024 }
 0x1c7   : > { %v1432_v9 = vsel %vm1428_vm13, %v1412_v56, %v1415_v35  ;;  %v1434_v10 = vsel %vm1430_vm15, %v1418_v49, %v1433_v62  ;;  %v1439_v12 = vsel %vm1429_vm3, %v1436_v63, %v1438_v7  ;;  %v1442_v13 = vsel %vm1430_vm15, %v1424_v58, %v1441_v8 }
 0x1c8   : > { %v5182_v14 = vshrl.u32 %v1353_v6, 30  ;;  %v1443_v15 = vsel %vm1429_vm3, %v1440_v3, %v1442_v13  ;;  %v5184_v16 = vmul.u32.u64.low %v1444_v33, %v1439_v12  ;;  %v5185_v1 = vmul.u32.u64.high %v1444_v33, %v1439_v12, %v5184_v16 }
 0x1c9   : > { %v5188_v17 = vmul.u32.u64.low %v1444_v33, %v1443_v15  ;;  %v5189_v19 = vmul.u32.u64.high %v1444_v33, %v1443_v15, %v5188_v17  ;;  %v1510_v25 = vadd.s32 1, %v3284_v5  ;;  %v1435_v30 = vsel %vm1429_vm3, %v1432_v9, %v1434_v10 }
 0x1ca   : > { %v1355_v11 = vshll.u32 %v5182_v14, 30  ;;  %v1454_v27 = vadd.s32 1, %v5185_v1  ;;  %v1507_v18 = vand.u32 8388607, %v1500_v29  ;;  %v1451_v51 = vmul.u32 %v1444_v33, %v1435_v30 }
 0x1cb   : > { %vm1511_vm7 = vcmp.gt.s32.totalorder %v1510_v25, 0  ;;  %vm1453_vm8 = vc.u32 %v5189_v19, %v5184_v16  ;;  %v1348_v53 = vadd.s32 %v5156_v28, %v5153_v22  ;;  %vm1294_vm2 = vcmp.lt.s32.totalorder %v5110_v23, 0 }
 0x1cc   : > { %v1356_v38 = vsub.s32 %v1352_v60, %v1355_v11  ;;  %v1512_v34 = vsel %vm1511_vm7, %v1510_v25, 0  ;;  %v1455_v44 = vsel %vm1453_vm8, %v1454_v27, %v5185_v1  ;;  %v1508_v41 = vor.u32 8388608, %v1507_v18 }
 0x1cd   : > { %v1514_v20 = vand.u32 31, %v1512_v34  ;;  %v1456_v36 = vadd.s32 %v1455_v44, %v1451_v51  ;;  %v1513_v21 = vshrl.u32 %v1512_v34, 5  ;;  %vm5240_vm3 = vcmp.le.f32.partialorder %v1292_v26, 0.7853982 }
 0x1ce   : > { %v1358_v32 = vsub.s32 0, %v1356_v38  ;;  %v1548_v6 = vshll.u32 %v1508_v41, 8  ;;  %vm1398_vm7 = vcmp.lt.s32.totalorder %v5116_v24, 0  ;;  %vm5261_vm8 = vcmp.le.f32.partialorder %v1396_v31, 0.7853982 }
 0x1cf   : > { %v1515_v37 = vsub.s32 32, %v1514_v20  ;;  %v1517_v42 = vshll.u32 %v4629_v48, %v1514_v20  ;;  %v1457_v43 = vadd.s32 536870912, %v1456_v36  ;;  %v1520_v46 = vshll.u32 %v4630_v50, %v1514_v20 }
 0x1d0   : > { %v3277_v39 = vmin.u32 %v1358_v32, %v1356_v38  ;;  %v1523_v58 = vshll.u32 %v4631_v54, %v1514_v20  ;;  %v1526_v60 = vshll.u32 %v4632_v57, %v1514_v20  ;;  %v1529_v63 = vshll.u32 %v4633_v59, %v1514_v20 }
 0x1d1   : > { %v1518_v45 = vshrl.u32 %v4630_v50, %v1515_v37  ;;  %v1521_v33 = vshrl.u32 %v4631_v54, %v1515_v37  ;;  %v1524_v35 = vshrl.u32 %v4632_v57, %v1515_v37  ;;  %v1527_v49 = vshrl.u32 %v4633_v59, %v1515_v37 }
 0x1d2   : > { %v1360_v47 = vclz %v3277_v39  ;;  %v1530_v52 = vshrl.u32 %v4634_v2, %v1515_v37  ;;  %v5207_v55 = vshrl.u32 %v1457_v43, 30  ;;  %v1516_v7 = vshrl.u32 %v4629_v48, %v1515_v37 }
 0x1d3   : > { %v1519_v61 = vor.u32 %v1518_v45, %v1517_v42  ;;  %v1522_v62 = vor.u32 %v1521_v33, %v1520_v46  ;;  %v1525_v3 = vor.u32 %v1524_v35, %v1523_v58  ;;  %v1528_v5 = vor.u32 %v1527_v49, %v1526_v60 }
 0x1d4   : > { %v3278_v56 = vadd.s32 4294967294, %v1360_v47  ;;  %v1459_v0 = vshll.u32 %v5207_v55, 30  ;;  %v1531_v22 = vor.u32 %v1530_v52, %v1529_v63  ;;  %vm1532_vm10 = vcmp.lt.s32.totalorder %v1513_v21, 1 }
 0x1d5   : > { %vm1533_vm11 = vcmp.lt.s32.totalorder %v1513_v21, 2  ;;  %vm1534_vm12 = vcmp.lt.s32.totalorder %v1513_v21, 3  ;;  %vm1535_vm13 = vcmp.lt.s32.totalorder %v1513_v21, 4  ;;  %v1540_v12 = vsel %vm1532_vm10, %v1519_v61, %v1522_v62 }
 0x1d6   : > { %vm3279_vm9 = vcmp.lt.s32.totalorder %v3278_v56, 0  ;;  %v1460_v8 = vsub.s32 %v1456_v36, %v1459_v0  ;;  %v1536_v15 = vsel %vm1532_vm10, %v1516_v7, %v1519_v61  ;;  %v1537_v1 = vsel %vm1535_vm13, %v1525_v3, 2102212464 }
 0x1d7   : > { %v1363_v28 = vsel %vm3279_vm9, 0, %v3278_v56  ;;  %v1541_v17 = vsel %vm1535_vm13, %v1528_v5, 920167782  ;;  %v1544_v51 = vsel %vm1532_vm10, %v1522_v62, %v1525_v3  ;;  %v1545_v20 = vsel %vm1535_vm13, %v1531_v22, 1326507024 }
 0x1d8   : > { %v1364_v9 = vsub.s32 32, %v1363_v28  ;;  %v1368_v10 = vsub.s32 4294967266, %v1363_v28  ;;  %v1462_v13 = vsub.s32 0, %v1460_v8  ;;  %v1365_v25 = vshll.u32 %v1356_v38, %v1363_v28 }
 0x1d9   : > { %v1542_v27 = vsel %vm1534_vm12, %v1525_v3, %v1541_v17  ;;  %v1538_v36 = vsel %vm1534_vm12, %v1522_v62, %v1537_v1  ;;  %v1546_v37 = vsel %vm1534_vm12, %v1528_v5, %v1545_v20  ;;  %v1452_v56 = vadd.s32 %v5184_v16, %v5189_v19 }
 0x1da   : > { %v1366_v11 = vshrl.u32 %v1348_v53, %v1364_v9  ;;  %v1369_v30 = vadd.s32 127, %v1368_v10  ;;  %v3281_v18 = vmin.u32 %v1462_v13, %v1460_v8  ;;  %v1543_v34 = vsel %vm1533_vm11, %v1540_v12, %v1542_v27 }
 0x1db   : > { %v1547_v41 = vsel %vm1533_vm11, %v1544_v51, %v1546_v37  ;;  %v5222_v38 = vmul.u32.u64.low %v1548_v6, %v1543_v34  ;;  %v5223_v42 = vmul.u32.u64.high %v1548_v6, %v1543_v34, %v5222_v38  ;;  %v1539_v47 = vsel %vm1533_vm11, %v1536_v15, %v1538_v36 }
 0x1dc   : > { %v1367_v32 = vor.u32 %v1366_v11, %v1365_v25  ;;  %v1370_v44 = vshll.u32 %v1369_v30, 23  ;;  %v1464_v39 = vclz %v3281_v18  ;;  %v1555_v60 = vmul.u32 %v1548_v6, %v1539_v47 }
 0x1dd   : > { %v5226_v45 = vmul.u32.u64.low %v1548_v6, %v1547_v41  ;;  %v5227_v46 = vmul.u32.u64.high %v1548_v6, %v1547_v41, %v5226_v45  ;;  %v1558_v52 = vadd.s32 1, %v5223_v42  ;;  %v1378_v22 = vsub.s32 4, %v5182_v14 }
 0x1de   : > { %v1371_v43 = vor.u32 4788187, %v1370_v44  ;;  %v3282_v33 = vadd.s32 4294967294, %v1464_v39  ;;  %v1374_v49 = vcvt.s32.f32 %v1367_v32  ;;  %v1482_v18 = vsub.s32 4, %v5207_v55 }
 0x1df   : > { %vm1557_vm15 = vc.u32 %v5227_v46, %v5222_v38  ;;  %v1379_v26 = vsel %vm1294_vm2, %v1378_v22, %v5182_v14  ;;  %v1624_v36 = vlaneseq  ;;  %v1556_v47 = vadd.s32 %v5222_v38, %v5227_v46 }
 0x1e0   : > { %v1372_v35 = vand.u32 2147483647, %v1371_v43  ;;  %vm3283_vm14 = vcmp.lt.s32.totalorder %v3282_v33, 0  ;;  %v1559_v63 = vsel %vm1557_vm15, %v1558_v52, %v5223_v42  ;;  %v1381_v25 = vsel %vm5240_vm3, 0, %v1379_v26 }
 0x1e1   : > { %v1467_v58 = vsel %vm3283_vm14, 0, %v3282_v33  ;;  %v1560_v0 = vadd.s32 %v1559_v63, %v1555_v60  ;;  %v1385_v34 = vadd.s32 3, %v1381_v25  ;;  %v1483_v37 = vsel %vm1398_vm7, %v1482_v18, %v5207_v55  ;;  %v1983_v25 = vld [vmem:[#allocation7 + $0x1f0] sm:$0xff] }
 0x1e2   : > { %v1375_v53 = vmul.f32 %v1374_v49, %v1372_v35  ;;  %v1468_v61 = vsub.s32 32, %v1467_v58  ;;  %v1472_v62 = vsub.s32 4294967266, %v1467_v58  ;;  %v1469_v3 = vshll.u32 %v1460_v8, %v1467_v58 }
 0x1e3   : > { %v1561_v19 = vadd.s32 536870912, %v1560_v0  ;;  %v1386_v39 = vand.u32 3, %v1385_v34  ;;  %v1485_v31 = vsel %vm5261_vm8, 0, %v1483_v37  ;;  %v5271_v33 = vshrl.u32 %v1624_v36, 7  ;;  %v1982_v34 = vld [vmem:[#allocation7 + $0x1e8] sm:$0xff] }
 0x1e4   : > { %v1376_v21 = vxor.u32 2147483648, %v1375_v53  ;;  %v1470_v5 = vshrl.u32 %v1452_v56, %v1468_v61  ;;  %v1473_v7 = vadd.s32 127, %v1472_v62  ;;  %v1489_v58 = vadd.s32 3, %v1485_v31 }
 0x1e5   : > { %v5249_v10 = vshrl.u32 %v1561_v19, 30  ;;  %vm1391_vm10 = vcmp.eq.s32.totalorder %v1386_v39, 2  ;;  %vm1388_vm11 = vcmp.eq.s32.totalorder %v1386_v39, 0  ;;  %vm1384_vm12 = vweird.f32 %v5110_v23 }
 0x1e6   : > { %v1377_v16 = vsel %vm1294_vm2, %v1376_v21, %v1375_v53  ;;  %v1471_v9 = vor.u32 %v1470_v5, %v1469_v3  ;;  %v1474_v8 = vshll.u32 %v1473_v7, 23  ;;  %vm1387_vm13 = vcmp.lt.s32.totalorder %v1386_v39, 2 }
 0x1e7   : > { %v1380_v28 = vsel %vm5240_vm3, %v5110_v23, %v1377_v16  ;;  %v1563_v13 = vshll.u32 %v5249_v10, 30  ;;  %v1629_v46 = vadd.s32 4294967293, %v5271_v33  ;;  %v1490_v22 = vand.u32 3, %v1489_v58  ;;  %v1977_v58 = vld [vmem:[#allocation7 + $0x1c0] sm:$0xff] }
 0x1e8   : > { %4393 = vcosq.f32 %v1380_v28  ;;  %v1475_v12 = vor.u32 4788187, %v1474_v8  ;;  %v1478_v1 = vcvt.s32.f32 %v1471_v9 }
 0x1e9   : > { %4395 = vsinq.f32 %v1380_v28  ;;  %v1564_v17 = vsub.s32 %v1560_v0, %v1563_v13  ;;  %vm1632_vm14 = vcmp.ge.s32.totalorder %v1629_v46, 0  ;;  %v1984_v13 = vld [vmem:[#allocation7 + $0x1f8] sm:$0xff]  ;;  %vm1495_vm15 = vcmp.eq.s32.totalorder %v1490_v22, 2 }
 0x1ea   : > { %v1476_v15 = vand.u32 2147483647, %v1475_v12  ;;  %vm1492_vm2 = vcmp.eq.s32.totalorder %v1490_v22, 0  ;;  %vm1491_vm3 = vcmp.lt.s32.totalorder %v1490_v22, 2 }
 0x1eb   : > { %v1566_v30 = vsub.s32 0, %v1564_v17 }
 0x1ec   : > { %v1479_v11 = vmul.f32 %v1478_v1, %v1476_v15 }
 0x1ed   : > { %v3285_v51 = vmin.u32 %v1566_v30, %v1564_v17 }
 0x1ee   : > { %v1480_v27 = vxor.u32 2147483648, %v1479_v11 }
 0x1ef   : > { %v1568_v44 = vclz %v3285_v51 }
 0x1f0   : > { %v1481_v20 = vsel %vm1398_vm7, %v1480_v27, %v1479_v11  ;;  %v1586_v11 = vsub.s32 4, %v5249_v10  ;;  %vm1502_vm7 = vcmp.lt.s32.totalorder %v5125_v40, 0 }
 0x1f1   : > { %v1484_v32 = vsel %vm5261_vm8, %v5116_v24, %v1481_v20  ;;  %v3286_v41 = vadd.s32 4294967294, %v1568_v44  ;;  %vm1488_vm8 = vweird.f32 %v5116_v24 }
 0x1f2   : > { %4397 = vcosq.f32 %v1484_v32  ;;  %v1587_v44 = vsel %vm1502_vm7, %v1586_v11, %v5249_v10  ;;  %v1979_v10 = vld [vmem:[#allocation7 + $0x1d0] sm:$0xff]  ;;  %v1970_v11 = vld [vmem:[#allocation7 + $0x188] sm:$0xff] }
 0x1f3   : > { %4399 = vsinq.f32 %v1484_v32  ;;  %vm3287_vm9 = vcmp.lt.s32.totalorder %v3286_v41, 0  ;;  %v1981_v32 = vld [vmem:[#allocation7 + $0x1e0] sm:$0xff] }
 0x1f4   : > { %v1571_v35 = vsel %vm3287_vm9, 0, %v3286_v41  ;;  %vm5287_vm9 = vcmp.le.f32.partialorder %v1500_v29, 0.7853982  ;;  %v1980_v29 = vld [vmem:[#allocation7 + $0x1d8] sm:$0xff] }
 0x1f5   : > { %v4394_v42 = vpop.eup %4393  ;;  %v1572_v55 = vsub.s32 32, %v1571_v35  ;;  %v1576_v52 = vsub.s32 4294967266, %v1571_v35  ;;  %v1573_v56 = vshll.u32 %v1564_v17, %v1571_v35  ;;  %v1589_v39 = vsel %vm5287_vm9, 0, %v1587_v44 }
 0x1f6   : > { %v4396_v43 = vpop.eup %4395  ;;  %v1392_v45 = vxor.u32 2147483648, %v4394_v42 }
 0x1f7   : > { %v1389_v49 = vxor.u32 2147483648, %v4396_v43  ;;  %v1574_v61 = vshrl.u32 %v1556_v47, %v1572_v55  ;;  %v1577_v62 = vadd.s32 127, %v1576_v52 }
 0x1f8   : > { %v1393_v53 = vsel %vm1391_vm10, %v1392_v45, %v4396_v43  ;;  %v1978_v45 = vld [vmem:[#allocation7 + $0x1c8] sm:$0xff] }
 0x1f9   : > { %v1390_v60 = vsel %vm1388_vm11, %v4394_v42, %v1389_v49  ;;  %v1575_v0 = vor.u32 %v1574_v61, %v1573_v56  ;;  %v1578_v3 = vshll.u32 %v1577_v62, 23  ;;  %v1877_v49 = vld [vmem:[#allocation7 + $0x178] sm:$0xff]  ;;  %v1875_v56 = vld [vmem:[#allocation7 + $0x168] sm:$0xff] }
 0x1fa   : > { %v1394_v63 = vsel %vm1387_vm13, %v1390_v60, %v1393_v53  ;;  %v1876_v53 = vld [vmem:[#allocation7 + $0x170] sm:$0xff]  ;;  %v1976_v61 = vld [vmem:[#allocation7 + $0x1b8] sm:$0xff]  ;;  %vm1592_vm13 = vweird.f32 %v5125_v40 }
 0x1fb   : > { %v1395_v21 = vsel %vm1384_vm12, nan, %v1394_v63  ;;  %v1579_v5 = vor.u32 4788187, %v1578_v3  ;;  %v1582_v19 = vcvt.s32.f32 %v1575_v0  ;;  %v1874_v0 = vld [vmem:[#allocation7 + $0x160] sm:$0xff]  ;;  %v1975_v3 = vld [vmem:[#allocation7 + $0x1b0] sm:$0xff] }
 0x1fc   : > { %v1604_v38 = vmul.f32 %v1395_v21, %v1395_v21 }
 0x1fd   : > { %v1580_v16 = vand.u32 2147483647, %v1579_v5  ;;  %v1873_v5 = vld [vmem:[#allocation7 + $0x158] sm:$0xff] }
 0x1fe   : > { %v1607_v7 = vadd.f32 %v1604_v38, %v5110_v23 }
 0x1ff   : > { %v4398_v6 = vpop.eup %4397  ;;  %v1583_v12 = vmul.f32 %v1582_v19, %v1580_v16  ;;  %v1872_v19 = vld [vmem:[#allocation7 + $0x150] sm:$0xff] }
 0x200   : > { %v1610_v28 = vmul.f32 0.1, %v1607_v7  ;;  %v4400_v9 = vpop.eup %4399  ;;  %v1496_v8 = vxor.u32 2147483648, %v4398_v6 }
 0x201   : > { %v1493_v15 = vxor.u32 2147483648, %v4400_v9  ;;  %v1584_v17 = vxor.u32 2147483648, %v1583_v12 }
 0x202   : > { %v1613_v26 = vmax.f32 %v1610_v28, %v1607_v7  ;;  %v1497_v1 = vsel %vm1495_vm15, %v1496_v8, %v4400_v9  ;;  %v1974_v7 = vld [vmem:[#allocation7 + $0x1a8] sm:$0xff]  ;;  %v1973_v28 = vld [vmem:[#allocation7 + $0x1a0] sm:$0xff] }
 0x203   : > { %v1494_v23 = vsel %vm1492_vm2, %v4398_v6, %v1493_v15  ;;  %v1585_v27 = vsel %vm1502_vm7, %v1584_v17, %v1583_v12  ;;  %v5332_v6 = vadd.s32 16, %v5271_v33  ;;  %v1871_v12 = vld [vmem:[#allocation7 + $0x148] sm:$0xff]  ;;  %v1971_v17 = vld [vmem:[#allocation7 + $0x190] sm:$0xff] }
 0x204   : > { %4017 = vmatmul.mubr.msk.f32.vlgmr.msra.gmra.mxu1 %vm1632_vm14, %v1613_v26  ;;  %v1498_v30 = vsel %vm1491_vm3, %v1494_v23, %v1497_v1  ;;  %v1588_v20 = vsel %vm5287_vm9, %v5125_v40, %v1585_v27  ;;  %v5301_v41 = vsel %vm1632_vm14, %v1613_v26, 0.0  ;;  %v1972_v26 = vld [vmem:[#allocation7 + $0x198] sm:$0xff]  ;;  %v1870_v1 = vld [vmem:[#allocation7 + $0x140] sm:$0xff] }
 0x205   : > { %4067 = vmatpush3.msra.mxu1 %v1984_v13  ;;  %4019 = vmatprep.mubr.msk.f32.mxu1 %vm4628_vm0, %v4627_v4  ;;  %v1499_v18 = vsel %vm1488_vm8, nan, %v1498_v30  ;;  %4401 = vcosq.f32 %v1588_v20  ;;  %v1694_v43 = vrot.slane %v5301_v41, 1  ;;  %v2092_v47 = vrot.slane %v5301_v41, 4  ;;  %v1869_v23 = vld [vmem:[#allocation7 + $0x138] sm:$0xff]  ;;  %v1969_v27 = vld [vmem:[#allocation7 + $0x180] sm:$0xff] }
 0x206   : > { %4068 = vmatprep.subr.mxu1 %v4627_v4  ;;  %v1605_v14 = vmul.f32 %v1499_v18, %v1499_v18  ;;  %4403 = vsinq.f32 %v1588_v20  ;;  %v1631_v13 = vadd.s32 4294967293, %v5332_v6  ;;  %v1866_v20 = vld [vmem:[#allocation7 + $0x120] sm:$0xff]  ;;  %v1985_v44 = vrot.slane %v5301_v41, 3 }
 0x207   : > { %4069 = vmatpush3.msra.mxu1 %v1983_v25 }
 0x208   : > { %4070 = vmatprep.subr.mxu1 %v4627_v4  ;;  %v1608_v36 = vadd.f32 %v1605_v14, %v5116_v24  ;;  %v1593_v24 = vadd.s32 3, %v1589_v39  ;;  %vm1637_vm14 = vcmp.lt.s32.totalorder %v1631_v13, 16  ;;  %v1864_v39 = vld [vmem:[#allocation7 + $0x110] sm:$0xff] }
 0x209   : > { %4071 = vmatpush3.msra.mxu1 %v1982_v34  ;;  %v1867_v34 = vld [vmem:[#allocation7 + $0x128] sm:$0xff] }
 0x20a   : > { %4072 = vmatprep.subr.mxu1 %v4627_v4  ;;  %v1611_v37 = vmul.f32 0.1, %v1608_v36  ;;  %v1594_v60 = vand.u32 3, %v1593_v24 }
 0x20b   : > { %4073 = vmatpush3.msra.mxu1 %v1981_v32 }
 0x20c   : > { %4074 = vmatprep.subr.mxu1 %v4627_v4  ;;  %v5304_v42 = vmax.f32 %v1611_v37, %v1608_v36  ;;  %vm1599_vm10 = vcmp.eq.s32.totalorder %v1594_v60, 2  ;;  %vm1596_vm11 = vcmp.eq.s32.totalorder %v1594_v60, 0  ;;  %vm1595_vm12 = vcmp.lt.s32.totalorder %v1594_v60, 2  ;;  %v1865_v36 = vld [vmem:[#allocation7 + $0x118] sm:$0xff]  ;;  %v2088_v60 = vld [vmem:[#allocation7 + $0x260] sm:$0xff] }
 0x20d   : > { %4075 = vmatpush3.msra.mxu1 %v1980_v29 }
 0x20e   : > { %4076 = vmatprep.subr.mxu1 %v4627_v4  ;;  %4020 = vmatmul.mubr.f32.gmra.mxu1 %v5304_v42  ;;  %v1695_v31 = vrot.slane %v5304_v42, 1  ;;  %v2093_v35 = vrot.slane %v5304_v42, 4  ;;  %v1986_v14 = vrot.slane %v5304_v42, 3 }
 0x20f   : > { %4022 = vmatprep.mubr.msk.f32.mxu1 %vm4628_vm0, %v4627_v4  ;;  %4077 = vmatpush3.msra.mxu1 %v1979_v10  ;;  %v1863_v10 = vld [vmem:[#allocation7 + $0x108] sm:$0xff] }
 0x210   : > { %v1696_v55 = vsel %vm470_vm4, %v1694_v43, %v1695_v31  ;;  %4078 = vmatprep.subr.mxu1 %v4627_v4  ;;  %v5321_v52 = vsel %vm874_vm1, %v2092_v47, %v2093_v35  ;;  %v1987_v29 = vsel %vm764_vm6, %v1985_v44, %v1986_v14  ;;  %v1879_v43 = vrot.slane %v5304_v42, 2  ;;  %v2091_v47 = vld [vmem:[#allocation7 + $0x278] sm:$0xff] }
 0x211   : > { %3976 = vmatmul.mubr.f32.vlgmr.msra.gmra.mxu0 %v1696_v55  ;;  %4079 = vmatpush3.msra.mxu1 %v1978_v45  ;;  %v1878_v45 = vrot.slane %v5301_v41, 2  ;;  %v2089_v41 = vld [vmem:[#allocation7 + $0x268] sm:$0xff] }
 0x212   : > { %4026 = vmatpush3.msra.mxu0 %v1877_v49  ;;  %3978 = vmatprep.mubr.msk.f32.mxu0 %vm4628_vm0, %v4627_v4  ;;  %v4402_v62 = vpop.eup %4401 }
 0x213   : > { %4027 = vmatprep.subr.mxu0 %v4627_v4  ;;  %4080 = vmatprep.subr.mxu1 %v4627_v4  ;;  %v4404_v63 = vpop.eup %4403  ;;  %v1600_v21 = vxor.u32 2147483648, %v4402_v62  ;;  %v1880_v49 = vsel %vm655_vm5, %v1878_v45, %v1879_v43 }
 0x214   : > { %4028 = vmatpush3.msra.mxu0 %v1876_v53  ;;  %4081 = vmatpush3.msra.mxu1 %v1977_v58  ;;  %v1597_v38 = vxor.u32 2147483648, %v4404_v63  ;;  %v2090_v53 = vld [vmem:[#allocation7 + $0x270] sm:$0xff] }
 0x215   : > { %4029 = vmatprep.subr.mxu0 %v4627_v4  ;;  %4082 = vmatprep.subr.mxu1 %v4627_v4  ;;  %v1601_v46 = vsel %vm1599_vm10, %v1600_v21, %v4404_v63  ;;  %v2084_v63 = vld [vmem:[#allocation7 + $0x240] sm:$0xff]  ;;  %v2083_v21 = vld [vmem:[#allocation7 + $0x238] sm:$0xff] }
 0x216   : > { %4030 = vmatpush3.msra.mxu0 %v1875_v56  ;;  %4083 = vmatpush3.msra.mxu1 %v1976_v61  ;;  %v1598_v22 = vsel %vm1596_vm11, %v4402_v62, %v1597_v38  ;;  %v2087_v56 = vld [vmem:[#allocation7 + $0x258] sm:$0xff]  ;;  %v2086_v61 = vld [vmem:[#allocation7 + $0x250] sm:$0xff]  ;;  %v2085_v62 = vld [vmem:[#allocation7 + $0x248] sm:$0xff] }
 0x217   : > { %4031 = vmatprep.subr.mxu0 %v4627_v4  ;;  %4084 = vmatprep.subr.mxu1 %v4627_v4  ;;  %v1602_v16 = vsel %vm1595_vm12, %v1598_v22, %v1601_v46  ;;  %v2080_v38 = vld [vmem:[#allocation7 + $0x220] sm:$0xff]  ;;  %v2079_v46 = vld [vmem:[#allocation7 + $0x218] sm:$0xff] }
 0x218   : > { %4032 = vmatpush3.msra.mxu0 %v1874_v0  ;;  %4085 = vmatpush3.msra.mxu1 %v1975_v3  ;;  %v1603_v9 = vsel %vm1592_vm13, nan, %v1602_v16  ;;  %v2082_v0 = vld [vmem:[#allocation7 + $0x230] sm:$0xff]  ;;  %v2081_v3 = vld [vmem:[#allocation7 + $0x228] sm:$0xff]  ;;  %v2076_v22 = vld [vmem:[#allocation7 + $0x200] sm:$0xff] }
 0x219   : > { %4033 = vmatprep.subr.mxu0 %v4627_v4  ;;  %4086 = vmatprep.subr.mxu1 %v4627_v4  ;;  %v1606_v8 = vmul.f32 %v1603_v9, %v1603_v9 }
 0x21a   : > { %4034 = vmatpush3.msra.mxu0 %v1873_v5  ;;  %4087 = vmatpush3.msra.mxu1 %v1974_v7  ;;  %v2078_v5 = vld [vmem:[#allocation7 + $0x210] sm:$0xff]  ;;  %v2077_v7 = vld [vmem:[#allocation7 + $0x208] sm:$0xff] }
 0x21b   : > { %4035 = vmatprep.subr.mxu0 %v4627_v4  ;;  %4088 = vmatprep.subr.mxu1 %v4627_v4  ;;  %v1609_v15 = vadd.f32 %v1606_v8, %v5125_v40  ;;  %v1868_v40 = vld [vmem:[#allocation7 + $0x130] sm:$0xff] }
 0x21c   : > { %4036 = vmatpush3.msra.mxu0 %v1872_v19  ;;  %4089 = vmatpush3.msra.mxu1 %v1973_v28  ;;  %v5412_v28 = vpop.f32.mrf.mxu1 }
 0x21d   : > { %4037 = vmatprep.subr.mxu0 %v4627_v4  ;;  %4090 = vmatprep.subr.mxu1 %v4627_v4  ;;  %v1612_v25 = vmul.f32 0.1, %v1609_v15 }
 0x21e   : > { %4038 = vmatpush3.msra.mxu0 %v1871_v12  ;;  %4091 = vmatpush3.msra.mxu1 %v1972_v26  ;;  %v5414_v9 = vpop.f32.mrf.mxu1 }
 0x21f   : > { %4039 = vmatprep.subr.mxu0 %v4627_v4  ;;  %4092 = vmatprep.subr.mxu1 %v4627_v4  ;;  %v1615_v30 = vmax.f32 %v1612_v25, %v1609_v15 }
 0x220   : > { %4040 = vmatpush3.msra.mxu0 %v1870_v1  ;;  %4093 = vmatpush3.msra.mxu1 %v1971_v17 }
 0x221   : > { %4041 = vmatprep.subr.mxu0 %v4627_v4  ;;  %4094 = vmatprep.subr.mxu1 %v4627_v4  ;;  %v5347_v18 = vsel %vm1637_vm14, %v1615_v30, 0.0 }
 0x222   : > { %4042 = vmatpush3.msra.mxu0 %v1869_v23  ;;  %4095 = vmatpush3.msra.mxu1 %v1970_v11  ;;  %v1697_v51 = vrot.slane %v5347_v18, 1  ;;  %v1988_v37 = vrot.slane %v5347_v18, 3  ;;  %v1881_v55 = vrot.slane %v5347_v18, 2  ;;  %v2095_v16 = vrot.slane %v5347_v18, 4  ;;  %v2569_v18 = vld [vmem:[#allocation9 + $0x78] sm:$0xff] }
 0x223   : > { %4023 = vmatmul.mubr.msk.f32.gmra.mxu1 %vm1637_vm14, %v1615_v30  ;;  %4043 = vmatprep.subr.mxu0 %v4627_v4 }
 0x224   : > { %4044 = vmatpush3.msra.mxu0 %v1868_v40  ;;  %4096 = vmatprep.subr.mxu1 %v4627_v4  ;;  %v1698_v32 = vsel %vm470_vm4, %v1695_v31, %v1697_v51  ;;  %v1989_v24 = vsel %vm764_vm6, %v1986_v14, %v1988_v37  ;;  %v1862_v31 = vld [vmem:[#allocation7 + $0x100] sm:$0xff]  ;;  %v1882_v58 = vsel %vm655_vm5, %v1879_v43, %v1881_v55  ;;  %v2564_v43 = vld [vmem:[#allocation9 + $0x50] sm:$0xff] }
 0x225   : > { %4045 = vmatprep.subr.mxu0 %v4627_v4  ;;  %4097 = vmatpush3.msra.mxu1 %v1969_v27  ;;  %v2096_v19 = vsel %vm874_vm1, %v2093_v35, %v2095_v16 }
 0x226   : > { %4046 = vmatpush3.msra.mxu0 %v1867_v34  ;;  %4098 = vmatprep.mubr.msk.f32.mxu1 %vm4628_vm0, %v4627_v4 }
 0x227   : > { %3979 = vmatmul.mubr.f32.gmra.mxu0 %v1698_v32  ;;  %4047 = vmatprep.subr.mxu0 %v4627_v4  ;;  %v2567_v32 = vld [vmem:[#allocation9 + $0x68] sm:$0xff] }
 0x228   : > { %3981 = vmatprep.mubr.msk.f32.mxu0 %vm4628_vm0, %v4627_v4  ;;  %4048 = vmatpush3.msra.mxu0 %v1866_v20 }
 0x229   : > { %4049 = vmatprep.subr.mxu0 %v4627_v4  ;;  %4099 = vmatmul.mubr.f32.vlgmr.msra.gmra.mxu1 %v1987_v29  ;;  %v2566_v29 = vld [vmem:[#allocation9 + $0x60] sm:$0xff] }
 0x22a   : > { %4050 = vmatpush3.msra.mxu0 %v1865_v36  ;;  %4101 = vmatprep.mubr.msk.f32.mxu1 %vm4628_vm0, %v4627_v4 }
 0x22b   : > { %3982 = vmatmul.mubr.f32.gmra.mxu0 %v1697_v51  ;;  %4051 = vmatprep.subr.mxu0 %v4627_v4  ;;  %v2568_v51 = vld [vmem:[#allocation9 + $0x70] sm:$0xff] }
 0x22c   : > { %4052 = vmatpush3.msra.mxu0 %v1864_v39  ;;  %4057 = vmatprep.mubr.msk.f32.mxu0 %vm4628_vm0, %v4627_v4 }
 0x22d   : > { %4053 = vmatprep.subr.mxu0 %v4627_v4  ;;  %4102 = vmatmul.mubr.f32.gmra.mxu1 %v1989_v24  ;;  %v2584_v24 = vld [vmem:[#allocation9 + $0xf0] sm:$0xff] }
 0x22e   : > { %4054 = vmatpush3.msra.mxu0 %v1863_v10  ;;  %4104 = vmatprep.mubr.msk.f32.mxu1 %vm4628_vm0, %v4627_v4  ;;  %v2565_v10 = vld [vmem:[#allocation9 + $0x58] sm:$0xff] }
 0x22f   : > { %4055 = vmatprep.subr.mxu0 %v4627_v4 }
 0x230   : > { %4056 = vmatpush3.msra.mxu0 %v1862_v31  ;;  %v2583_v31 = vld [vmem:[#allocation9 + $0xe8] sm:$0xff] }
 0x231   : > { %4058 = vmatmul.mubr.f32.vlgmr.msra.gmra.mxu0 %v1880_v49  ;;  %4107 = vmatprep.subr.mxu0 %v4627_v4  ;;  %v2582_v49 = vld [vmem:[#allocation9 + $0xe0] sm:$0xff] }
 0x232   : > { %4105 = vmatmul.mubr.f32.gmra.mxu1 %v1988_v37  ;;  %4108 = vmatpush3.msra.mxu0 %v2091_v47  ;;  %v2585_v37 = vld [vmem:[#allocation9 + $0xf8] sm:$0xff]  ;;  %v2563_v47 = vld [vmem:[#allocation9 + $0x48] sm:$0xff] }
 0x233   : > { %4109 = vmatprep.subr.mxu0 %v4627_v4  ;;  %4060 = vmatprep.mubr.msk.f32.mxu0 %vm4628_vm0, %v4627_v4 }
 0x234   : > { %4110 = vmatpush3.msra.mxu0 %v2090_v53  ;;  %4148 = vmatprep.subr.mxu1 %v2585_v37  ;;  %v2562_v53 = vld [vmem:[#allocation9 + $0x40] sm:$0xff] }
 0x235   : > { %4061 = vmatmul.mubr.f32.gmra.mxu0 %v1882_v58  ;;  %4111 = vmatprep.subr.mxu0 %v4627_v4  ;;  %v2561_v58 = vld [vmem:[#allocation9 + $0x38] sm:$0xff] }
 0x236   : > { %4112 = vmatpush3.msra.mxu0 %v2089_v41  ;;  %4063 = vmatprep.mubr.msk.f32.mxu0 %vm4628_vm0, %v4627_v4  ;;  %v2581_v41 = vld [vmem:[#allocation9 + $0xd8] sm:$0xff] }
 0x237   : > { %4113 = vmatprep.subr.mxu0 %v4627_v4  ;;  %4149 = vmatpush3.msra.mxu1 %v2585_v37 }
 0x238   : > { %4114 = vmatpush3.msra.mxu0 %v2088_v60  ;;  %4150 = vmatprep.subr.mxu1 %v2584_v24  ;;  %v2580_v60 = vld [vmem:[#allocation9 + $0xd0] sm:$0xff] }
 0x239   : > { %4064 = vmatmul.mubr.f32.gmra.mxu0 %v1881_v55  ;;  %4115 = vmatprep.subr.mxu0 %v4627_v4 }
 0x23a   : > { %4116 = vmatpush3.msra.mxu0 %v2087_v56  ;;  %4139 = vmatprep.mubr.msk.f32.mxu0 %vm4628_vm0, %v4627_v4  ;;  %v2560_v56 = vld [vmem:[#allocation9 + $0x30] sm:$0xff] }
 0x23b   : > { %4117 = vmatprep.subr.mxu0 %v4627_v4  ;;  %4151 = vmatpush3.msra.mxu1 %v2584_v24 }
 0x23c   : > { %4118 = vmatpush3.msra.mxu0 %v2086_v61  ;;  %4152 = vmatprep.subr.mxu1 %v2583_v31  ;;  %v2579_v61 = vld [vmem:[#allocation9 + $0xc8] sm:$0xff] }
 0x23d   : > { %4119 = vmatprep.subr.mxu0 %v4627_v4  ;;  %4153 = vmatpush3.msra.mxu1 %v2583_v31 }
 0x23e   : > { %4120 = vmatpush3.msra.mxu0 %v2085_v62  ;;  %4154 = vmatprep.subr.mxu1 %v2582_v49  ;;  %v2559_v62 = vld [vmem:[#allocation9 + $0x28] sm:$0xff] }
 0x23f   : > { %4121 = vmatprep.subr.mxu0 %v4627_v4  ;;  %4155 = vmatpush3.msra.mxu1 %v2582_v49 }
 0x240   : > { %4122 = vmatpush3.msra.mxu0 %v2084_v63  ;;  %4156 = vmatprep.subr.mxu1 %v2581_v41  ;;  %v2578_v63 = vld [vmem:[#allocation9 + $0xc0] sm:$0xff] }
 0x241   : > { %4123 = vmatprep.subr.mxu0 %v4627_v4  ;;  %4157 = vmatpush3.msra.mxu1 %v2581_v41 }
 0x242   : > { %4124 = vmatpush3.msra.mxu0 %v2083_v21  ;;  %4158 = vmatprep.subr.mxu1 %v2580_v60  ;;  %v2558_v21 = vld [vmem:[#allocation9 + $0x20] sm:$0xff] }
 0x243   : > { %4125 = vmatprep.subr.mxu0 %v4627_v4  ;;  %4159 = vmatpush3.msra.mxu1 %v2580_v60 }
 0x244   : > { %4126 = vmatpush3.msra.mxu0 %v2082_v0  ;;  %4160 = vmatprep.subr.mxu1 %v2579_v61  ;;  %v2577_v0 = vld [vmem:[#allocation9 + $0xb8] sm:$0xff] }
 0x245   : > { %4127 = vmatprep.subr.mxu0 %v4627_v4  ;;  %4161 = vmatpush3.msra.mxu1 %v2579_v61 }
 0x246   : > { %4128 = vmatpush3.msra.mxu0 %v2081_v3  ;;  %4162 = vmatprep.subr.mxu1 %v2578_v63  ;;  %v2557_v3 = vld [vmem:[#allocation9 + $0x18] sm:$0xff] }
 0x247   : > { %4129 = vmatprep.subr.mxu0 %v4627_v4  ;;  %4163 = vmatpush3.msra.mxu1 %v2578_v63 }
 0x248   : > { %4130 = vmatpush3.msra.mxu0 %v2080_v38  ;;  %v2576_v38 = vld [vmem:[#allocation9 + $0xb0] sm:$0xff]  ;;  %4164 = vmatprep.subr.mxu1 %v2577_v0 }
 0x249   : > { %4131 = vmatprep.subr.mxu0 %v4627_v4  ;;  %4165 = vmatpush3.msra.mxu1 %v2577_v0 }
 0x24a   : > { %4132 = vmatpush3.msra.mxu0 %v2079_v46  ;;  %v2556_v46 = vld [vmem:[#allocation9 + $0x10] sm:$0xff]  ;;  %4166 = vmatprep.subr.mxu1 %v2576_v38 }
 0x24b   : > { %4133 = vmatprep.subr.mxu0 %v4627_v4  ;;  %4167 = vmatpush3.msra.mxu1 %v2576_v38 }
 0x24c   : > { %4134 = vmatpush3.msra.mxu0 %v2078_v5  ;;  %v2575_v5 = vld [vmem:[#allocation9 + $0xa8] sm:$0xff] }
 0x24d   : > { %4135 = vmatprep.subr.mxu0 %v4627_v4  ;;  %4168 = vmatprep.subr.mxu1 %v2575_v5 }
 0x24e   : > { %4136 = vmatpush3.msra.mxu0 %v2077_v7  ;;  %v2555_v7 = vld [vmem:[#allocation9 + $0x8] sm:$0xff]  ;;  %4169 = vmatpush3.msra.mxu1 %v2575_v5 }
 0x24f   : > { %4137 = vmatprep.subr.mxu0 %v4627_v4 }
 0x250   : > { %4138 = vmatpush3.msra.mxu0 %v2076_v22 }
 0x251   : > { %4140 = vmatmul.mubr.f32.vlgmr.msra.gmra.mxu0 %v5321_v52  ;;  %4183 = vmatprep.subr.mxu0 %v2569_v18 }
 0x252   : > { %4142 = vmatprep.mubr.msk.f32.mxu0 %vm4628_vm0, %v4627_v4  ;;  %4184 = vmatpush3.msra.mxu0 %v2569_v18  ;;  %v5451_v18 = vld [vmem:[#allocation9 + $0x178] sm:$0xff] }
 0x253   : > { %4185 = vmatprep.subr.mxu0 %v2568_v51 }
 0x254   : > { %4186 = vmatpush3.msra.mxu0 %v2568_v51 }
 0x255   : > { %4143 = vmatmul.mubr.f32.gmra.mxu0 %v2096_v19  ;;  %4187 = vmatprep.subr.mxu0 %v2567_v32  ;;  %v2554_v19 = vld [vmem:[#allocation9] sm:$0xff] }
 0x256   : > { %4145 = vmatprep.mubr.msk.f32.mxu0 %vm4628_vm0, %v4627_v4  ;;  %4188 = vmatpush3.msra.mxu0 %v2567_v32 }
 0x257   : > { %4189 = vmatprep.subr.mxu0 %v2566_v29 }
 0x258   : > { %4190 = vmatpush3.msra.mxu0 %v2566_v29 }
 0x259   : > { %4146 = vmatmul.mubr.f32.gmra.mxu0 %v2095_v16  ;;  %4191 = vmatprep.subr.mxu0 %v2565_v10  ;;  %v2574_v16 = vld [vmem:[#allocation9 + $0xa0] sm:$0xff] }
 0x25a   : > { %4192 = vmatpush3.msra.mxu0 %v2565_v10  ;;  %4170 = vmatprep.subr.mxu1 %v2574_v16 }
 0x25b   : > { %4193 = vmatprep.subr.mxu0 %v2564_v43  ;;  %4171 = vmatpush3.msra.mxu1 %v2574_v16 }
 0x25c   : > { %4194 = vmatpush3.msra.mxu0 %v2564_v43 }
 0x25d   : > { %4195 = vmatprep.subr.mxu0 %v2563_v47 }
 0x25e   : > { %4196 = vmatpush3.msra.mxu0 %v2563_v47 }
 0x25f   : > { %4197 = vmatprep.subr.mxu0 %v2562_v53 }
 0x260   : > { %4198 = vmatpush3.msra.mxu0 %v2562_v53 }
 0x261   : > { %4199 = vmatprep.subr.mxu0 %v2561_v58 }
 0x262   : > { %4200 = vmatpush3.msra.mxu0 %v2561_v58 }
 0x263   : > { %4201 = vmatprep.subr.mxu0 %v2560_v56 }
 0x264   : > { %4202 = vmatpush3.msra.mxu0 %v2560_v56 }
 0x265   : > { %4203 = vmatprep.subr.mxu0 %v2559_v62 }
 0x266   : > { %4204 = vmatpush3.msra.mxu0 %v2559_v62 }
 0x267   : > { %4205 = vmatprep.subr.mxu0 %v2558_v21 }
 0x268   : > { %4206 = vmatpush3.msra.mxu0 %v2558_v21 }
 0x269   : > { %4207 = vmatprep.subr.mxu0 %v2557_v3 }
 0x26a   : > { %4208 = vmatpush3.msra.mxu0 %v2557_v3 }
 0x26b   : > { %4209 = vmatprep.subr.mxu0 %v2556_v46 }
 0x26c   : > { %4210 = vmatpush3.msra.mxu0 %v2556_v46 }
 0x26d   : > { %4211 = vmatprep.subr.mxu0 %v2555_v7 }
 0x26e   : > { %4212 = vmatpush3.msra.mxu0 %v2555_v7 }
 0x26f   : > { %4213 = vmatprep.subr.mxu0 %v2554_v19 }
 0x270   : > { %4214 = vmatpush3.msra.mxu0 %v2554_v19 }
 0x2c4   : > { %v5416_v8 = vpop.f32.mrf.mxu1 }
 0x2c6   : > { %v4018_v12 = vpop.f32.mrf.mxu1 }
 0x2ce   : > { %v5418_v52 = vpop.f32.mrf.mxu1 }
 0x2d0   : > { %v4021_v26 = vpop.f32.mrf.mxu1 }
 0x2d1   : > { %v5420_v13 = vpop.f32.mrf.mxu0  ;;  %v2573_v26 = vld [vmem:[#allocation9 + $0x98] sm:$0xff] }
 0x2d2   : > { %v1849_v22 = vadd.f32 %v5416_v8, %v5420_v13  ;;  %4172 = vmatprep.subr.mxu1 %v2573_v26 }
 0x2d3   : > { %v3977_v42 = vpop.f32.mrf.mxu0  ;;  %4173 = vmatpush3.msra.mxu1 %v2573_v26 }
 0x2e3   : > { %v1858_v15 = vpop.f32.mrf.mxu1 }
 0x2e5   : > { %v4024_v35 = vpop.f32.mrf.mxu1 }
 0x2e6   : > { %v2571_v35 = vld [vmem:[#allocation9 + $0x88] sm:$0xff] }
 0x2e7   : > { %v5422_v1 = vpop.f32.mrf.mxu0 }
 0x2e8   : > { %v1854_v42 = vadd.f32 %v5418_v52, %v5422_v1  ;;  %v2570_v52 = vld [vmem:[#allocation9 + $0x80] sm:$0xff] }
 0x2e9   : > { %v3980_v17 = vpop.f32.mrf.mxu0  ;;  %v5424_v4 = vpop.f32.mrf.mxu1 }
 0x2eb   : > { %v1778_v25 = vpop.f32.mrf.mxu0  ;;  %v4100_v23 = vpop.f32.mrf.mxu1 }
 0x2ec   : > { %v5426_v11 = vadd.f32 %v1858_v15, %v1778_v25  ;;  %v2572_v15 = vld [vmem:[#allocation9 + $0x90] sm:$0xff]  ;;  %v3288_v25 = vld [vmem:[%s5793_s5 + $0x1] ss:$0 sm:$0xff] }
 0x2ed   : > { %v3983_v30 = vpop.f32.mrf.mxu0  ;;  %v5428_v40 = vpop.f32.mrf.mxu1  ;;  %4174 = vmatprep.subr.mxu1 %v2572_v15 }
 0x2ee   : > { %4175 = vmatpush3.msra.mxu1 %v2572_v15 }
 0x2ef   : > { %v4103_v27 = vpop.f32.mrf.mxu1  ;;  %4176 = vmatprep.subr.mxu1 %v2571_v35 }
 0x2f0   : > { %4177 = vmatpush3.msra.mxu1 %v2571_v35 }
 0x2f1   : > { %v5430_v34 = vpop.f32.mrf.mxu0  ;;  %4178 = vmatprep.subr.mxu1 %v2570_v52 }
 0x2f2   : > { %v5432_v14 = vpop.f32.mrf.mxu1  ;;  %v1966_v12 = vadd.f32 %v5430_v34, %v1849_v22  ;;  %4179 = vmatpush3.msra.mxu1 %v2570_v52 }
 0x2f3   : > { %v4059_v20 = vpop.f32.mrf.mxu0  ;;  %4218 = vmatprep.subr.mxu1 %v5451_v18 }
 0x2f4   : > { %v4106_v44 = vpop.f32.mrf.mxu1  ;;  %v2073_v13 = vadd.f32 %v5424_v4, %v1966_v12 }
 0x2f5   : > { %v5434_v36 = vpop.f32.mrf.mxu0 }
 0x2f6   : > { %v1967_v8 = vadd.f32 %v5434_v36, %v1854_v42 }
 0x2f7   : > { %v4062_v39 = vpop.f32.mrf.mxu0 }
 0x2f8   : > { %v2074_v27 = vadd.f32 %v5428_v40, %v1967_v8 }
 0x2f9   : > { %v5436_v45 = vpop.f32.mrf.mxu0 }
 0x2fa   : > { %v1968_v4 = vadd.f32 %v5436_v45, %v5426_v11 }
 0x2fb   : > { %v4065_v55 = vpop.f32.mrf.mxu0 }
 0x2fc   : > { %v2075_v37 = vadd.f32 %v5432_v14, %v1968_v4 }
 0x311   : > { %v2166_v17 = vpop.f32.mrf.mxu0 }
 0x312   : > { %v2180_v23 = vadd.f32 %v2166_v17, %v2073_v13 }
 0x313   : > { %v4141_v1 = vpop.f32.mrf.mxu0 }
 0x314   : > { %v5448_v30 = vadd.f32 %v3288_v25, %v2180_v23 }
 0x315   : > { %v2171_v34 = vpop.f32.mrf.mxu0 }
 0x316   : > { %v2191_v51 = vand.u32 2147483647, %v5448_v30  ;;  %v2194_v20 = vand.u32 2139095040, %v5448_v30  ;;  %v2181_v32 = vadd.f32 %v2171_v34, %v2074_v27 }
 0x317   : > { %v4144_v44 = vpop.f32.mrf.mxu0 }
 0x318   : > { %v2195_v36 = vshrl.u32 %v2194_v20, 23  ;;  %v5458_v29 = vadd.f32 %v3288_v25, %v2181_v32  ;;  %v2198_v40 = vand.u32 8388607, %v2191_v51 }
 0x319   : > { %v2176_v11 = vpop.f32.mrf.mxu0 }
 0x31a   : > { %v3289_v39 = vadd.s32 4294967169, %v2195_v36  ;;  %v2295_v10 = vand.u32 2147483647, %v5458_v29  ;;  %v2298_v24 = vand.u32 2139095040, %v5458_v29  ;;  %v2182_v43 = vadd.f32 %v2176_v11, %v2075_v37 }
 0x31b   : > { %v4147_v31 = vpop.f32.mrf.mxu0  ;;  %v2199_v47 = vor.u32 8388608, %v2198_v40 }
 0x31c   : > { %v2201_v45 = vadd.s32 1, %v3289_v39  ;;  %v2299_v49 = vshrl.u32 %v2298_v24, 23  ;;  %v2302_v55 = vand.u32 8388607, %v2295_v10  ;;  %v5467_v53 = vadd.f32 %v3288_v25, %v2182_v43 }
 0x31d   : > { %v5469_v56 = vshll.u32 %v2199_v47, 8 }
 0x31e   : > { %vm2202_vm0 = vcmp.gt.s32.totalorder %v2201_v45, 0  ;;  %v3293_v58 = vadd.s32 4294967169, %v2299_v49  ;;  %v2303_v61 = vor.u32 8388608, %v2302_v55  ;;  %v2402_v62 = vand.u32 2139095040, %v5467_v53 }
 0x31f   : > { %v2203_v41 = vsel %vm2202_vm0, %v2201_v45, 0  ;;  %v2399_v39 = vand.u32 2147483647, %v5467_v53 }
 0x320   : > { %v2204_v14 = vshrl.u32 %v2203_v41, 5  ;;  %v2205_v60 = vand.u32 31, %v2203_v41  ;;  %v2305_v3 = vadd.s32 1, %v3293_v58  ;;  %v2343_v55 = vshll.u32 %v2303_v61, 8 }
 0x321   : > { %v2403_v41 = vshrl.u32 %v2402_v62, 23 }
 0x322   : > { %v2206_v63 = vsub.s32 32, %v2205_v60  ;;  %v2208_v21 = vshll.u32 %v4629_v48, %v2205_v60  ;;  %v2211_v0 = vshll.u32 %v4630_v50, %v2205_v60  ;;  %v2214_v38 = vshll.u32 %v4631_v54, %v2205_v60 }
 0x323   : > { %v2217_v46 = vshll.u32 %v4632_v57, %v2205_v60  ;;  %v2220_v5 = vshll.u32 %v4633_v59, %v2205_v60  ;;  %vm2223_vm1 = vcmp.lt.s32.totalorder %v2204_v14, 1  ;;  %vm2224_vm6 = vcmp.lt.s32.totalorder %v2204_v14, 2 }
 0x324   : > { %v2209_v7 = vshrl.u32 %v4630_v50, %v2206_v63  ;;  %v2212_v22 = vshrl.u32 %v4631_v54, %v2206_v63  ;;  %v2215_v16 = vshrl.u32 %v4632_v57, %v2206_v63  ;;  %v2207_v19 = vshrl.u32 %v4629_v48, %v2206_v63 }
 0x325   : > { %v2218_v12 = vshrl.u32 %v4633_v59, %v2206_v63  ;;  %v2221_v26 = vshrl.u32 %v4634_v2, %v2206_v63  ;;  %vm2225_vm15 = vcmp.lt.s32.totalorder %v2204_v14, 3  ;;  %vm2306_vm2 = vcmp.gt.s32.totalorder %v2305_v3, 0 }
 0x326   : > { %v2210_v42 = vor.u32 %v2209_v7, %v2208_v21  ;;  %v2213_v15 = vor.u32 %v2212_v22, %v2211_v0  ;;  %v2216_v8 = vor.u32 %v2215_v16, %v2214_v38  ;;  %vm2226_vm3 = vcmp.lt.s32.totalorder %v2204_v14, 4 }
 0x327   : > { %v2219_v13 = vor.u32 %v2218_v12, %v2217_v46  ;;  %v2222_v35 = vor.u32 %v2221_v26, %v2220_v5  ;;  %v2307_v17 = vsel %vm2306_vm2, %v2305_v3, 0 }
 0x328   : > { %v2227_v25 = vsel %vm2223_vm1, %v2207_v19, %v2210_v42  ;;  %v2228_v23 = vsel %vm2226_vm3, %v2216_v8, 2102212464  ;;  %v2231_v52 = vsel %vm2223_vm1, %v2210_v42, %v2213_v15  ;;  %v2235_v1 = vsel %vm2223_vm1, %v2213_v15, %v2216_v8 }
 0x329   : > { %v2229_v27 = vsel %vm2225_vm15, %v2213_v15, %v2228_v23  ;;  %v2232_v4 = vsel %vm2226_vm3, %v2219_v13, 920167782  ;;  %v2236_v34 = vsel %vm2226_vm3, %v2222_v35, 1326507024  ;;  %v2308_v20 = vshrl.u32 %v2307_v17, 5 }
 0x32a   : > { %v2230_v32 = vsel %vm2224_vm6, %v2227_v25, %v2229_v27  ;;  %v2233_v44 = vsel %vm2225_vm15, %v2216_v8, %v2232_v4  ;;  %v2237_v36 = vsel %vm2225_vm15, %v2219_v13, %v2236_v34  ;;  %v2309_v40 = vand.u32 31, %v2307_v17 }
 0x32b   : > { %v2234_v37 = vsel %vm2224_vm6, %v2231_v52, %v2233_v44  ;;  %v2238_v11 = vsel %vm2224_vm6, %v2235_v1, %v2237_v36  ;;  %v2246_v47 = vmul.u32 %v5469_v56, %v2230_v32  ;;  %vm2327_vm7 = vcmp.lt.s32.totalorder %v2308_v20, 1 }
 0x32c   : > { %v5494_v24 = vmul.u32.u64.low %v5469_v56, %v2238_v11  ;;  %v5495_v43 = vmul.u32.u64.high %v5469_v56, %v2238_v11, %v5494_v24  ;;  %v5498_v31 = vmul.u32.u64.low %v5469_v56, %v2234_v37  ;;  %v5499_v45 = vmul.u32.u64.high %v5469_v56, %v2234_v37, %v5498_v31 }
 0x32d   : > { %v2310_v49 = vsub.s32 32, %v2309_v40  ;;  %v2312_v58 = vshll.u32 %v4629_v48, %v2309_v40  ;;  %v2315_v14 = vshll.u32 %v4630_v50, %v2309_v40  ;;  %v2318_v60 = vshll.u32 %v4631_v54, %v2309_v40 }
 0x32e   : > { %v2321_v3 = vshll.u32 %v4632_v57, %v2309_v40  ;;  %vm2248_vm8 = vc.u32 %v5495_v43, %v5498_v31  ;;  %v2249_v56 = vadd.s32 1, %v5499_v45  ;;  %v2324_v62 = vshll.u32 %v4633_v59, %v2309_v40 }
 0x32f   : > { %v2313_v63 = vshrl.u32 %v4630_v50, %v2310_v49  ;;  %v2316_v21 = vshrl.u32 %v4631_v54, %v2310_v49  ;;  %v2319_v0 = vshrl.u32 %v4632_v57, %v2310_v49  ;;  %v2322_v61 = vshrl.u32 %v4633_v59, %v2310_v49 }
 0x330   : > { %v2325_v7 = vshrl.u32 %v4634_v2, %v2310_v49  ;;  %v2250_v22 = vsel %vm2248_vm8, %v2249_v56, %v5499_v45  ;;  %vm2329_vm9 = vcmp.lt.s32.totalorder %v2308_v20, 3  ;;  %vm2330_vm10 = vcmp.lt.s32.totalorder %v2308_v20, 4 }
 0x331   : > { %v2314_v38 = vor.u32 %v2313_v63, %v2312_v58  ;;  %v2317_v46 = vor.u32 %v2316_v21, %v2315_v14  ;;  %v2320_v5 = vor.u32 %v2319_v0, %v2318_v60  ;;  %v2323_v16 = vor.u32 %v2322_v61, %v2321_v3 }
 0x332   : > { %v2251_v19 = vadd.s32 %v2250_v22, %v2246_v47  ;;  %v2311_v12 = vshrl.u32 %v4629_v48, %v2310_v49  ;;  %v2326_v26 = vor.u32 %v2325_v7, %v2324_v62  ;;  %v3297_v35 = vadd.s32 4294967169, %v2403_v41 }
 0x333   : > { %v2332_v42 = vsel %vm2330_vm10, %v2320_v5, 2102212464  ;;  %v2335_v15 = vsel %vm2327_vm7, %v2314_v38, %v2317_v46  ;;  %v2336_v8 = vsel %vm2330_vm10, %v2323_v16, 920167782  ;;  %v2339_v13 = vsel %vm2327_vm7, %v2317_v46, %v2320_v5 }
 0x334   : > { %v2252_v17 = vadd.s32 536870912, %v2251_v19  ;;  %vm2328_vm11 = vcmp.lt.s32.totalorder %v2308_v20, 2  ;;  %v2337_v25 = vsel %vm2329_vm9, %v2320_v5, %v2336_v8  ;;  %v2340_v23 = vsel %vm2330_vm10, %v2326_v26, 1326507024 }
 0x335   : > { %v2331_v52 = vsel %vm2327_vm7, %v2311_v12, %v2314_v38  ;;  %v2333_v1 = vsel %vm2329_vm9, %v2317_v46, %v2332_v42  ;;  %v2338_v27 = vsel %vm2328_vm11, %v2335_v15, %v2337_v25  ;;  %v2341_v4 = vsel %vm2329_vm9, %v2323_v16, %v2340_v23 }
 0x336   : > { %v5524_v34 = vshrl.u32 %v2252_v17, 30  ;;  %v2342_v32 = vsel %vm2328_vm11, %v2339_v13, %v2341_v4  ;;  %v5526_v44 = vmul.u32.u64.low %v2343_v55, %v2338_v27  ;;  %v5527_v36 = vmul.u32.u64.high %v2343_v55, %v2338_v27, %v5526_v44 }
 0x337   : > { %v5530_v40 = vmul.u32.u64.low %v2343_v55, %v2342_v32  ;;  %v5531_v37 = vmul.u32.u64.high %v2343_v55, %v2342_v32, %v5530_v40  ;;  %v2409_v11 = vadd.s32 1, %v3297_v35  ;;  %v2334_v45 = vsel %vm2328_vm11, %v2331_v52, %v2333_v1 }
 0x338   : > { %v2254_v24 = vshll.u32 %v5524_v34, 30  ;;  %v2353_v49 = vadd.s32 1, %v5527_v36  ;;  %v2406_v20 = vand.u32 8388607, %v2399_v39  ;;  %v2350_v58 = vmul.u32 %v2343_v55, %v2334_v45 }
 0x339   : > { %vm2410_vm12 = vcmp.gt.s32.totalorder %v2409_v11, 0  ;;  %vm2352_vm13 = vc.u32 %v5531_v37, %v5526_v44  ;;  %v2247_v12 = vadd.s32 %v5498_v31, %v5495_v43  ;;  %vm2193_vm7 = vcmp.lt.s32.totalorder %v5448_v30, 0 }
 0x33a   : > { %v2255_v47 = vsub.s32 %v2251_v19, %v2254_v24  ;;  %v2411_v41 = vsel %vm2410_vm12, %v2409_v11, 0  ;;  %v2354_v63 = vsel %vm2352_vm13, %v2353_v49, %v5527_v36  ;;  %v2407_v56 = vor.u32 8388608, %v2406_v20 }
 0x33b   : > { %v2413_v14 = vand.u32 31, %v2411_v41  ;;  %v2355_v21 = vadd.s32 %v2354_v63, %v2350_v58  ;;  %v2412_v61 = vshrl.u32 %v2411_v41, 5  ;;  %vm5584_vm8 = vcmp.le.f32.partialorder %v2191_v51, 0.7853982 }
 0x33c   : > { %v2257_v60 = vsub.s32 0, %v2255_v47  ;;  %v2447_v1 = vshll.u32 %v2407_v56, 8  ;;  %vm2297_vm9 = vcmp.lt.s32.totalorder %v5458_v29, 0  ;;  %vm5603_vm10 = vcmp.le.f32.partialorder %v2295_v10, 0.7853982 }
 0x33d   : > { %v2414_v0 = vsub.s32 32, %v2413_v14  ;;  %v2416_v62 = vshll.u32 %v4629_v48, %v2413_v14  ;;  %v2356_v38 = vadd.s32 536870912, %v2355_v21  ;;  %v2419_v5 = vshll.u32 %v4630_v50, %v2413_v14 }
 0x33e   : > { %v3290_v3 = vmin.u32 %v2257_v60, %v2255_v47  ;;  %v2422_v42 = vshll.u32 %v4631_v54, %v2413_v14  ;;  %v2425_v15 = vshll.u32 %v4632_v57, %v2413_v14  ;;  %v2428_v17 = vshll.u32 %v4633_v59, %v2413_v14 }
 0x33f   : > { %v2417_v46 = vshrl.u32 %v4630_v50, %v2414_v0  ;;  %v2420_v55 = vshrl.u32 %v4631_v54, %v2414_v0  ;;  %v2423_v22 = vshrl.u32 %v4632_v57, %v2414_v0  ;;  %v2426_v16 = vshrl.u32 %v4633_v59, %v2414_v0 }
 0x340   : > { %v2259_v7 = vclz %v3290_v3  ;;  %v2429_v19 = vshrl.u32 %v4634_v2, %v2414_v0  ;;  %v5549_v26 = vshrl.u32 %v2356_v38, 30  ;;  %v2415_v27 = vshrl.u32 %v4629_v48, %v2414_v0 }
 0x341   : > { %v2418_v13 = vor.u32 %v2417_v46, %v2416_v62  ;;  %v2421_v35 = vor.u32 %v2420_v55, %v2419_v5  ;;  %v2424_v23 = vor.u32 %v2423_v22, %v2422_v42  ;;  %v2427_v52 = vor.u32 %v2426_v16, %v2425_v15 }
 0x342   : > { %v3291_v8 = vadd.s32 4294967294, %v2259_v7  ;;  %v2358_v25 = vshll.u32 %v5549_v26, 30  ;;  %v2430_v43 = vor.u32 %v2429_v19, %v2428_v17  ;;  %vm2431_vm0 = vcmp.lt.s32.totalorder %v2412_v61, 1 }
 0x343   : > { %vm2432_vm1 = vcmp.lt.s32.totalorder %v2412_v61, 2  ;;  %vm2433_vm6 = vcmp.lt.s32.totalorder %v2412_v61, 3  ;;  %vm2434_vm15 = vcmp.lt.s32.totalorder %v2412_v61, 4  ;;  %v2439_v40 = vsel %vm2431_vm0, %v2418_v13, %v2421_v35 }
 0x344   : > { %vm3292_vm14 = vcmp.lt.s32.totalorder %v3291_v8, 0  ;;  %v2359_v4 = vsub.s32 %v2355_v21, %v2358_v25  ;;  %v2435_v24 = vsel %vm2431_vm0, %v2415_v27, %v2418_v13  ;;  %v2436_v45 = vsel %vm2434_vm15, %v2424_v23, 2102212464 }
 0x345   : > { %v2262_v31 = vsel %vm3292_vm14, 0, %v3291_v8  ;;  %v2440_v49 = vsel %vm2434_vm15, %v2427_v52, 920167782  ;;  %v2443_v21 = vsel %vm2431_vm0, %v2421_v35, %v2424_v23  ;;  %v2444_v0 = vsel %vm2434_vm15, %v2430_v43, 1326507024 }
 0x346   : > { %v2263_v32 = vsub.s32 32, %v2262_v31  ;;  %v2267_v36 = vsub.s32 4294967266, %v2262_v31  ;;  %v2361_v11 = vsub.s32 0, %v2359_v4  ;;  %v2264_v20 = vshll.u32 %v2255_v47, %v2262_v31 }
 0x347   : > { %v2441_v14 = vsel %vm2433_vm6, %v2424_v23, %v2440_v49  ;;  %v2437_v62 = vsel %vm2433_vm6, %v2421_v35, %v2436_v45  ;;  %v2445_v38 = vsel %vm2433_vm6, %v2427_v52, %v2444_v0  ;;  %v2351_v25 = vadd.s32 %v5526_v44, %v5531_v37 }
 0x348   : > { %v2265_v41 = vshrl.u32 %v2247_v12, %v2263_v32  ;;  %v2268_v58 = vadd.s32 127, %v2267_v36  ;;  %v3294_v60 = vmin.u32 %v2361_v11, %v2359_v4  ;;  %v2442_v63 = vsel %vm2432_vm1, %v2439_v40, %v2441_v14 }
 0x349   : > { %v2446_v5 = vsel %vm2432_vm1, %v2443_v21, %v2445_v38  ;;  %v5564_v47 = vmul.u32.u64.low %v2447_v1, %v2442_v63  ;;  %v5565_v55 = vmul.u32.u64.high %v2447_v1, %v2442_v63, %v5564_v47  ;;  %v2438_v12 = vsel %vm2432_vm1, %v2435_v24, %v2437_v62 }
 0x34a   : > { %v2266_v3 = vor.u32 %v2265_v41, %v2264_v20  ;;  %v2269_v56 = vshll.u32 %v2268_v58, 23  ;;  %v2363_v46 = vclz %v3294_v60  ;;  %v2454_v17 = vmul.u32 %v2447_v1, %v2438_v12 }
 0x34b   : > { %v5568_v22 = vmul.u32.u64.low %v2447_v1, %v2446_v5  ;;  %v5569_v16 = vmul.u32.u64.high %v2447_v1, %v2446_v5, %v5568_v22  ;;  %v2457_v8 = vadd.s32 1, %v5565_v55  ;;  %v2277_v40 = vsub.s32 4, %v5524_v34 }
 0x34c   : > { %v2270_v7 = vor.u32 4788187, %v2269_v56  ;;  %v3295_v19 = vadd.s32 4294967294, %v2363_v46  ;;  %v2273_v15 = vcvt.s32.f32 %v2266_v3  ;;  %v2381_v3 = vsub.s32 4, %v5549_v26 }
 0x34d   : > { %vm2456_vm3 = vc.u32 %v5569_v16, %v5564_v47  ;;  %v2278_v20 = vsel %vm2193_vm7, %v2277_v40, %v5524_v34  ;;  %vm2283_vm14 = vweird.f32 %v5448_v30 }
 0x34e   : > { %v2271_v42 = vand.u32 2147483647, %v2270_v7  ;;  %vm3296_vm2 = vcmp.lt.s32.totalorder %v3295_v19, 0  ;;  %v2458_v27 = vsel %vm2456_vm3, %v2457_v8, %v5565_v55  ;;  %v2280_v60 = vsel %vm5584_vm8, 0, %v2278_v20 }
 0x34f   : > { %v2366_v35 = vsel %vm3296_vm2, 0, %v3295_v19  ;;  %v2459_v43 = vadd.s32 %v2458_v27, %v2454_v17  ;;  %v2284_v56 = vadd.s32 3, %v2280_v60  ;;  %v2382_v55 = vsel %vm2297_vm9, %v2381_v3, %v5549_v26 }
 0x350   : > { %v2274_v13 = vmul.f32 %v2273_v15, %v2271_v42  ;;  %v2367_v23 = vsub.s32 32, %v2366_v35  ;;  %v2371_v52 = vsub.s32 4294967266, %v2366_v35  ;;  %v2368_v31 = vshll.u32 %v2359_v4, %v2366_v35 }
 0x351   : > { %v2460_v11 = vadd.s32 536870912, %v2459_v43  ;;  %v2285_v7 = vand.u32 3, %v2284_v56  ;;  %v2384_v10 = vsel %vm5603_vm10, 0, %v2382_v55  ;;  %v2455_v15 = vadd.s32 %v5564_v47, %v5569_v16 }
 0x352   : > { %v2275_v61 = vxor.u32 2147483648, %v2274_v13  ;;  %v2369_v32 = vshrl.u32 %v2351_v25, %v2367_v23  ;;  %v2372_v36 = vadd.s32 127, %v2371_v52  ;;  %v2388_v25 = vadd.s32 3, %v2384_v10 }
 0x353   : > { %v5591_v45 = vshrl.u32 %v2460_v11, 30  ;;  %vm2290_vm12 = vcmp.eq.s32.totalorder %v2285_v7, 2  ;;  %vm2287_vm13 = vcmp.eq.s32.totalorder %v2285_v7, 0  ;;  %vm2286_vm0 = vcmp.lt.s32.totalorder %v2285_v7, 2 }
 0x354   : > { %v2276_v1 = vsel %vm2193_vm7, %v2275_v61, %v2274_v13  ;;  %v2370_v37 = vor.u32 %v2369_v32, %v2368_v31  ;;  %v2373_v24 = vshll.u32 %v2372_v36, 23  ;;  %v2524_v16 = vadd.s32 4294967295, %v5271_v33 }
 0x355   : > { %v2279_v4 = vsel %vm5584_vm8, %v5448_v30, %v2276_v1  ;;  %v2462_v51 = vshll.u32 %v5591_v45, 30  ;;  %v2389_v11 = vand.u32 3, %v2388_v25  ;;  %vm2401_vm3 = vcmp.lt.s32.totalorder %v5467_v53, 0 }
 0x356   : > { %4405 = vcosq.f32 %v2279_v4  ;;  %v2374_v49 = vor.u32 4788187, %v2373_v24  ;;  %v2377_v58 = vcvt.s32.f32 %v2370_v37  ;;  %vm2527_vm1 = vcmp.ge.s32.totalorder %v2524_v16, 0  ;;  %v2757_v16 = vld [vmem:[#allocation9 + $0x158] sm:$0xff] }
 0x357   : > { %4407 = vsinq.f32 %v2279_v4  ;;  %v2463_v14 = vsub.s32 %v2459_v43, %v2462_v51  ;;  %vm2394_vm6 = vcmp.eq.s32.totalorder %v2389_v11, 2  ;;  %vm2391_vm15 = vcmp.eq.s32.totalorder %v2389_v11, 0 }
 0x358   : > { %v2375_v41 = vand.u32 2147483647, %v2374_v49  ;;  %vm2390_vm2 = vcmp.lt.s32.totalorder %v2389_v11, 2  ;;  %vm2387_vm7 = vweird.f32 %v5458_v29  ;;  %vm2400_vm8 = vcmp.le.f32.partialorder %v2399_v39, 0.7853982  ;;  %v2754_v11 = vld [vmem:[#allocation9 + $0x140] sm:$0xff] }
 0x359   : > { %v2465_v21 = vsub.s32 0, %v2463_v14 }
 0x35a   : > { %v2378_v63 = vmul.f32 %v2377_v58, %v2375_v41 }
 0x35b   : > { %v3298_v62 = vmin.u32 %v2465_v21, %v2463_v14 }
 0x35c   : > { %v2379_v0 = vxor.u32 2147483648, %v2378_v63 }
 0x35d   : > { %v2467_v5 = vclz %v3298_v62 }
 0x35e   : > { %v2380_v38 = vsel %vm2297_vm9, %v2379_v0, %v2378_v63 }
 0x35f   : > { %v2383_v46 = vsel %vm5603_vm10, %v5458_v29, %v2380_v38  ;;  %v3299_v22 = vadd.s32 4294967294, %v2467_v5 }
 0x360   : > { %4409 = vcosq.f32 %v2383_v46 }
 0x361   : > { %4411 = vsinq.f32 %v2383_v46  ;;  %vm3300_vm11 = vcmp.lt.s32.totalorder %v3299_v22, 0 }
 0x362   : > { %v2470_v8 = vsel %vm3300_vm11, 0, %v3299_v22 }
 0x363   : > { %v4406_v19 = vpop.eup %4405  ;;  %v2471_v35 = vsub.s32 32, %v2470_v8  ;;  %v2475_v17 = vsub.s32 4294967266, %v2470_v8  ;;  %v2472_v52 = vshll.u32 %v2463_v14, %v2470_v8 }
 0x364   : > { %v4408_v12 = vpop.eup %4407  ;;  %v2291_v42 = vxor.u32 2147483648, %v4406_v19 }
 0x365   : > { %v2288_v13 = vxor.u32 2147483648, %v4408_v12  ;;  %v2473_v27 = vshrl.u32 %v2455_v15, %v2471_v35  ;;  %v2476_v61 = vadd.s32 127, %v2475_v17 }
 0x366   : > { %v2292_v26 = vsel %vm2290_vm12, %v2291_v42, %v4408_v12  ;;  %vm2491_vm12 = vweird.f32 %v5467_v53 }
 0x367   : > { %v2289_v23 = vsel %vm2287_vm13, %v4406_v19, %v2288_v13  ;;  %v2474_v32 = vor.u32 %v2473_v27, %v2472_v52  ;;  %v2477_v36 = vshll.u32 %v2476_v61, 23 }
 0x368   : > { %v2293_v43 = vsel %vm2286_vm0, %v2289_v23, %v2292_v26  ;;  %v2526_v26 = vadd.s32 4294967295, %v5332_v6  ;;  %v2759_v6 = vld [vmem:[#allocation9 + $0x168] sm:$0xff] }
 0x369   : > { %v2294_v31 = vsel %vm2283_vm14, nan, %v2293_v43  ;;  %v2478_v40 = vor.u32 4788187, %v2477_v36  ;;  %v2481_v24 = vcvt.s32.f32 %v2474_v32  ;;  %v2760_v36 = vld [vmem:[#allocation9 + $0x170] sm:$0xff] }
 0x36a   : > { %v2503_v47 = vmul.f32 %v2294_v31, %v2294_v31  ;;  %vm2532_vm13 = vcmp.lt.s32.totalorder %v2526_v26, 16 }
 0x36b   : > { %v2479_v37 = vand.u32 2147483647, %v2478_v40  ;;  %v2756_v40 = vld [vmem:[#allocation9 + $0x150] sm:$0xff] }
 0x36c   : > { %v2506_v1 = vadd.f32 %v2503_v47, %v5448_v30  ;;  %v2485_v30 = vsub.s32 4, %v5591_v45 }
 0x36d   : > { %v4410_v44 = vpop.eup %4409  ;;  %v2482_v51 = vmul.f32 %v2481_v24, %v2479_v37  ;;  %v2751_v37 = vld [vmem:[#allocation9 + $0x128] sm:$0xff]  ;;  %v2750_v24 = vld [vmem:[#allocation9 + $0x120] sm:$0xff] }
 0x36e   : > { %v2509_v4 = vmul.f32 0.1, %v2506_v1  ;;  %v4412_v49 = vpop.eup %4411  ;;  %v2395_v20 = vxor.u32 2147483648, %v4410_v44  ;;  %v2486_v62 = vsel %vm2401_vm3, %v2485_v30, %v5591_v45 }
 0x36f   : > { %v2392_v58 = vxor.u32 2147483648, %v4412_v49  ;;  %v2483_v60 = vxor.u32 2147483648, %v2482_v51  ;;  %v2488_v46 = vsel %vm2400_vm8, 0, %v2486_v62 }
 0x370   : > { %v2512_v41 = vmax.f32 %v2509_v4, %v2506_v1  ;;  %v2396_v14 = vsel %vm2394_vm6, %v2395_v20, %v4412_v49  ;;  %v2492_v7 = vadd.s32 3, %v2488_v46  ;;  %v2755_v1 = vld [vmem:[#allocation9 + $0x148] sm:$0xff]  ;;  %v2749_v4 = vld [vmem:[#allocation9 + $0x118] sm:$0xff]  ;;  %v2748_v49 = vld [vmem:[#allocation9 + $0x110] sm:$0xff] }
 0x371   : > { %v2393_v33 = vsel %vm2391_vm15, %v4410_v44, %v2392_v58  ;;  %v2484_v21 = vsel %vm2401_vm3, %v2483_v60, %v2482_v51  ;;  %v2752_v44 = vld [vmem:[#allocation9 + $0x130] sm:$0xff]  ;;  %v2747_v20 = vld [vmem:[#allocation9 + $0x108] sm:$0xff]  ;;  %v2746_v51 = vld [vmem:[#allocation9 + $0x100] sm:$0xff] }
 0x372   : > { %4215 = vmatprep.mubr.msk.f32.mxu0 %vm2527_vm1, %v2512_v41  ;;  %v2397_v63 = vsel %vm2390_vm2, %v2393_v33, %v2396_v14  ;;  %v2487_v3 = vsel %vm2400_vm8, %v5467_v53, %v2484_v21  ;;  %v2542_v5 = vsel %vm2527_vm1, %v2512_v41, 0.0  ;;  %v2493_v12 = vand.u32 3, %v2492_v7 }
 0x373   : > { %v2398_v0 = vsel %vm2387_vm7, nan, %v2397_v63  ;;  %4413 = vcosq.f32 %v2487_v3  ;;  %v2589_v22 = vrot.slane %v2542_v5, 1  ;;  %v2762_v31 = vrot.slane %v2542_v5, 2  ;;  %v3274_v63 = vld [vmem:[%s5793_s5 + $0x3] ss:$0 sm:$0xff] }
 0x374   : > { %v2504_v56 = vmul.f32 %v2398_v0, %v2398_v0  ;;  %4415 = vsinq.f32 %v2487_v3  ;;  %vm2498_vm9 = vcmp.eq.s32.totalorder %v2493_v12, 2  ;;  %vm2495_vm10 = vcmp.eq.s32.totalorder %v2493_v12, 0  ;;  %v3301_v3 = vld [vmem:[%s5793_s5 + $0x2] ss:$0 sm:$0xff] }
 0x375   : > { %vm2494_vm11 = vcmp.lt.s32.totalorder %v2493_v12, 2 }
 0x376   : > { %v2507_v34 = vadd.f32 %v2504_v56, %v5458_v29 }
 0x378   : > { %v2510_v38 = vmul.f32 0.1, %v2507_v34 }
 0x37a   : > { %v5628_v55 = vmax.f32 %v2510_v38, %v2507_v34  ;;  %v1281_v38 = vadd.f32 %v5412_v28, %v3274_v63 }
 0x37c   : > { %4216 = vmatmul.mubr.f32.vlgmr.msra.gmra.mxu0 %v5628_v55  ;;  %v2590_v39 = vrot.slane %v5628_v55, 1  ;;  %v2763_v61 = vrot.slane %v5628_v55, 2 }
 0x37e   : > { %v2591_v19 = vsel %vm470_vm4, %v2589_v22, %v2590_v39  ;;  %v2764_v47 = vsel %vm655_vm5, %v2762_v31, %v2763_v61  ;;  %v1276_v22 = vadd.f32 %v3274_v63, %v5414_v9 }
 0x37f   : > { %4180 = vmatprep.mubr.f32.mxu1 %v2591_v19 }
 0x380   : > { %v4414_v45 = vpop.eup %4413 }
 0x381   : > { %v4416_v10 = vpop.eup %4415  ;;  %v2499_v42 = vxor.u32 2147483648, %v4414_v45 }
 0x382   : > { %v2496_v29 = vxor.u32 2147483648, %v4416_v10 }
 0x383   : > { %v2500_v15 = vsel %vm2498_vm9, %v2499_v42, %v4416_v10 }
 0x384   : > { %v2497_v8 = vsel %vm2495_vm10, %v4414_v45, %v2496_v29 }
 0x385   : > { %v2501_v13 = vsel %vm2494_vm11, %v2497_v8, %v2500_v15 }
 0x386   : > { %v2502_v35 = vsel %vm2491_vm12, nan, %v2501_v13 }
 0x387   : > { %v2505_v17 = vmul.f32 %v2502_v35, %v2502_v35 }
 0x389   : > { %v2508_v25 = vadd.f32 %v2505_v17, %v5467_v53  ;;  %v2758_v53 = vld [vmem:[#allocation9 + $0x160] sm:$0xff] }
 0x38b   : > { %v2511_v23 = vmul.f32 0.1, %v2508_v25 }
 0x38d   : > { %v2514_v52 = vmax.f32 %v2511_v23, %v2508_v25 }
 0x38f   : > { %v2544_v27 = vsel %vm2532_vm13, %v2514_v52, 0.0 }
 0x390   : > { %v2592_v43 = vrot.slane %v2544_v27, 1  ;;  %v2765_v41 = vrot.slane %v2544_v27, 2 }
 0x392   : > { %v2593_v32 = vsel %vm470_vm4, %v2590_v39, %v2592_v43  ;;  %v2766_v58 = vsel %vm655_vm5, %v2763_v61, %v2765_v41 }
 0x393   : > { %4181 = vmatmul.mubr.f32.vlgmr.msra.gmra.mxu1 %v2593_v32 }
 0x394   : > { %4219 = vmatpush3.msra.mxu1 %v5451_v18  ;;  %4250 = vmatprep.mubr.f32.mxu1 %v2764_v47  ;;  %v2753_v18 = vld [vmem:[#allocation9 + $0x138] sm:$0xff] }
 0x395   : > { %4220 = vmatprep.subr.mxu1 %v2760_v36 }
 0x396   : > { %4221 = vmatpush3.msra.mxu1 %v2760_v36 }
 0x397   : > { %4222 = vmatprep.subr.mxu1 %v2759_v6 }
 0x398   : > { %4223 = vmatpush3.msra.mxu1 %v2759_v6 }
 0x399   : > { %4224 = vmatprep.subr.mxu1 %v2758_v53 }
 0x39a   : > { %4225 = vmatpush3.msra.mxu1 %v2758_v53 }
 0x39b   : > { %4226 = vmatprep.subr.mxu1 %v2757_v16 }
 0x39c   : > { %4227 = vmatpush3.msra.mxu1 %v2757_v16 }
 0x39d   : > { %4228 = vmatprep.subr.mxu1 %v2756_v40 }
 0x39e   : > { %4229 = vmatpush3.msra.mxu1 %v2756_v40 }
 0x39f   : > { %4230 = vmatprep.subr.mxu1 %v2755_v1 }
 0x3a0   : > { %4231 = vmatpush3.msra.mxu1 %v2755_v1 }
 0x3a1   : > { %4232 = vmatprep.subr.mxu1 %v2754_v11 }
 0x3a2   : > { %4233 = vmatpush3.msra.mxu1 %v2754_v11 }
 0x3a3   : > { %4234 = vmatprep.subr.mxu1 %v2753_v18 }
 0x3a4   : > { %4235 = vmatpush3.msra.mxu1 %v2753_v18 }
 0x3a5   : > { %4236 = vmatprep.subr.mxu1 %v2752_v44 }
 0x3a6   : > { %4237 = vmatpush3.msra.mxu1 %v2752_v44 }
 0x3a7   : > { %4238 = vmatprep.subr.mxu1 %v2751_v37 }
 0x3a8   : > { %4239 = vmatpush3.msra.mxu1 %v2751_v37 }
 0x3a9   : > { %4240 = vmatprep.subr.mxu1 %v2750_v24 }
 0x3aa   : > { %4241 = vmatpush3.msra.mxu1 %v2750_v24 }
 0x3ab   : > { %4242 = vmatprep.subr.mxu1 %v2749_v4 }
 0x3ac   : > { %4243 = vmatpush3.msra.mxu1 %v2749_v4 }
 0x3ad   : > { %4244 = vmatprep.subr.mxu1 %v2748_v49 }
 0x3ae   : > { %4245 = vmatpush3.msra.mxu1 %v2748_v49 }
 0x3af   : > { %4246 = vmatprep.subr.mxu1 %v2747_v20 }
 0x3b0   : > { %4247 = vmatpush3.msra.mxu1 %v2747_v20 }
 0x3b1   : > { %4248 = vmatprep.subr.mxu1 %v2746_v51 }
 0x3b2   : > { %4249 = vmatpush3.msra.mxu1 %v2746_v51 }
 0x3b3   : > { %4251 = vmatmul.mubr.f32.vlgmr.msra.gmra.mxu1 %v2766_v58 }
 0x43c   : > { %v4217_v60 = vpop.f32.mrf.mxu0 }
 0x43e   : > { %v2737_v21 = vpop.f32.mrf.mxu0 }
 0x453   : > { %v4182_v14 = vpop.f32.mrf.mxu1 }
 0x454   : > { %v2743_v30 = vadd.f32 %v4217_v60, %v4182_v14 }
 0x455   : > { %v2662_v33 = vpop.f32.mrf.mxu1 }
 0x456   : > { %v2738_v56 = vadd.f32 %v2737_v21, %v2662_v33 }
 0x473   : > { %v4252_v0 = vpop.f32.mrf.mxu1 }
 0x474   : > { %v2845_v62 = vadd.f32 %v4252_v0, %v2743_v30 }
 0x475   : > { %v2835_v34 = vpop.f32.mrf.mxu1 }
 0x476   : > { %v2852_v46 = vadd.f32 %v3301_v3, %v2845_v62  ;;  %v2844_v5 = vadd.f32 %v2835_v34, %v2738_v56 }
 0x478   : > { %v5648_v55 = vadd.f32 %v2852_v46, %v1281_v38  ;;  %v2851_v7 = vadd.f32 %v3301_v3, %v2844_v5 }
 0x47a   : > { %v2959_v39 = vand.u32 2147483647, %v5648_v55  ;;  %v2962_v19 = vand.u32 2139095040, %v5648_v55  ;;  %v5653_v12 = vadd.f32 %v2851_v7, %v1276_v22  ;;  %vm2961_vm12 = vcmp.lt.s32.totalorder %v5648_v55, 0 }
 0x47c   : > { %v2963_v45 = vshrl.u32 %v2962_v19, 23  ;;  %v2966_v10 = vand.u32 8388607, %v2959_v39  ;;  %v2858_v42 = vand.u32 2139095040, %v5653_v12  ;;  %v2855_v29 = vand.u32 2147483647, %v5653_v12 }
 0x47d   : > { %vm2960_vm13 = vcmp.le.f32.partialorder %v2959_v39, 0.7853982 }
 0x47e   : > { %v3306_v28 = vadd.s32 4294967169, %v2963_v45  ;;  %v2859_v15 = vshrl.u32 %v2858_v42, 23  ;;  %v2967_v13 = vor.u32 8388608, %v2966_v10  ;;  %v2862_v9 = vand.u32 8388607, %v2855_v29 }
 0x480   : > { %v2969_v8 = vadd.s32 1, %v3306_v28  ;;  %v3302_v35 = vadd.s32 4294967169, %v2859_v15  ;;  %v5661_v52 = vshll.u32 %v2967_v13, 8  ;;  %v2863_v43 = vor.u32 8388608, %v2862_v9 }
 0x482   : > { %vm2970_vm4 = vcmp.gt.s32.totalorder %v2969_v8, 0  ;;  %v2865_v26 = vadd.s32 1, %v3302_v35  ;;  %v2903_v3 = vshll.u32 %v2863_v43, 8 }
 0x483   : > { %v2971_v17 = vsel %vm2970_vm4, %v2969_v8, 0  ;;  %vm2857_vm4 = vcmp.lt.s32.totalorder %v5653_v12, 0 }
 0x484   : > { %v2972_v25 = vshrl.u32 %v2971_v17, 5  ;;  %v2973_v23 = vand.u32 31, %v2971_v17  ;;  %vm2866_vm5 = vcmp.gt.s32.totalorder %v2865_v26, 0 }
 0x485   : > { %v2867_v24 = vsel %vm2866_vm5, %v2865_v26, 0  ;;  %vm2856_vm5 = vcmp.le.f32.partialorder %v2855_v29, 0.7853982 }
 0x486   : > { %v2974_v27 = vsub.s32 32, %v2973_v23  ;;  %v2976_v61 = vshll.u32 %v4629_v48, %v2973_v23  ;;  %v2979_v31 = vshll.u32 %v4630_v50, %v2973_v23  ;;  %v2982_v32 = vshll.u32 %v4631_v54, %v2973_v23 }
 0x487   : > { %v2985_v36 = vshll.u32 %v4632_v57, %v2973_v23  ;;  %v2988_v47 = vshll.u32 %v4633_v59, %v2973_v23  ;;  %vm2991_vm14 = vcmp.lt.s32.totalorder %v2972_v25, 1  ;;  %vm2993_vm0 = vcmp.lt.s32.totalorder %v2972_v25, 3 }
 0x488   : > { %v2977_v6 = vshrl.u32 %v4630_v50, %v2974_v27  ;;  %v2980_v53 = vshrl.u32 %v4631_v54, %v2974_v27  ;;  %v2983_v16 = vshrl.u32 %v4632_v57, %v2974_v27  ;;  %v2975_v40 = vshrl.u32 %v4629_v48, %v2974_v27 }
 0x489   : > { %v2986_v1 = vshrl.u32 %v4633_v59, %v2974_v27  ;;  %v2989_v11 = vshrl.u32 %v4634_v2, %v2974_v27  ;;  %vm2994_vm1 = vcmp.lt.s32.totalorder %v2972_v25, 4  ;;  %v2869_v20 = vand.u32 31, %v2867_v24 }
 0x48a   : > { %v2978_v18 = vor.u32 %v2977_v6, %v2976_v61  ;;  %v2981_v44 = vor.u32 %v2980_v53, %v2979_v31  ;;  %v2984_v37 = vor.u32 %v2983_v16, %v2982_v32  ;;  %vm2992_vm6 = vcmp.lt.s32.totalorder %v2972_v25, 2 }
 0x48b   : > { %v2987_v4 = vor.u32 %v2986_v1, %v2985_v36  ;;  %v2990_v49 = vor.u32 %v2989_v11, %v2988_v47  ;;  %v2870_v63 = vsub.s32 32, %v2869_v20  ;;  %v2868_v38 = vshrl.u32 %v2867_v24, 5 }
 0x48c   : > { %v2995_v51 = vsel %vm2991_vm14, %v2975_v40, %v2978_v18  ;;  %v2996_v41 = vsel %vm2994_vm1, %v2984_v37, 2102212464  ;;  %v2999_v58 = vsel %vm2991_vm14, %v2978_v18, %v2981_v44  ;;  %v3003_v14 = vsel %vm2991_vm14, %v2981_v44, %v2984_v37 }
 0x48d   : > { %v2997_v60 = vsel %vm2993_vm0, %v2981_v44, %v2996_v41  ;;  %v3000_v33 = vsel %vm2994_vm1, %v2987_v4, 920167782  ;;  %v3004_v30 = vsel %vm2994_vm1, %v2990_v49, 1326507024  ;;  %v2872_v19 = vshll.u32 %v4629_v48, %v2869_v20 }
 0x48e   : > { %v3001_v21 = vsel %vm2993_vm0, %v2984_v37, %v3000_v33  ;;  %v3005_v0 = vsel %vm2993_vm0, %v2987_v4, %v3004_v30  ;;  %v2998_v56 = vsel %vm2992_vm6, %v2995_v51, %v2997_v60  ;;  %v2873_v45 = vshrl.u32 %v4630_v50, %v2870_v63 }
 0x48f   : > { %v3002_v62 = vsel %vm2992_vm6, %v2999_v58, %v3001_v21  ;;  %v3006_v34 = vsel %vm2992_vm6, %v3003_v14, %v3005_v0  ;;  %v2875_v10 = vshll.u32 %v4630_v50, %v2869_v20  ;;  %v2876_v42 = vshrl.u32 %v4631_v54, %v2870_v63 }
 0x490   : > { %v5682_v46 = vmul.u32.u64.low %v5661_v52, %v3006_v34  ;;  %v5683_v5 = vmul.u32.u64.high %v5661_v52, %v3006_v34, %v5682_v46  ;;  %v5686_v7 = vmul.u32.u64.low %v5661_v52, %v3002_v62  ;;  %v5687_v22 = vmul.u32.u64.high %v5661_v52, %v3002_v62, %v5686_v7 }
 0x491   : > { %v2878_v28 = vshll.u32 %v4631_v54, %v2869_v20  ;;  %v2879_v15 = vshrl.u32 %v4632_v57, %v2870_v63  ;;  %v2881_v8 = vshll.u32 %v4632_v57, %v2869_v20  ;;  %v2882_v13 = vshrl.u32 %v4633_v59, %v2870_v63 }
 0x492   : > { %v2874_v35 = vor.u32 %v2873_v45, %v2872_v19  ;;  %v2877_v9 = vor.u32 %v2876_v42, %v2875_v10  ;;  %v2884_v17 = vshll.u32 %v4633_v59, %v2869_v20  ;;  %v2885_v26 = vshrl.u32 %v4634_v2, %v2870_v63 }
 0x493   : > { %v3014_v25 = vmul.u32 %v5661_v52, %v2998_v56  ;;  %vm3016_vm15 = vc.u32 %v5683_v5, %v5686_v7  ;;  %v3017_v50 = vadd.s32 1, %v5687_v22  ;;  %v2880_v54 = vor.u32 %v2879_v15, %v2878_v28 }
 0x494   : > { %v2871_v23 = vshrl.u32 %v4629_v48, %v2870_v63  ;;  %v2883_v27 = vor.u32 %v2882_v13, %v2881_v8  ;;  %v2886_v57 = vor.u32 %v2885_v26, %v2884_v17  ;;  %vm2887_vm2 = vcmp.lt.s32.totalorder %v2868_v38, 1 }
 0x495   : > { %v3018_v61 = vsel %vm3016_vm15, %v3017_v50, %v5687_v22  ;;  %vm2889_vm3 = vcmp.lt.s32.totalorder %v2868_v38, 3  ;;  %vm2890_vm7 = vcmp.lt.s32.totalorder %v2868_v38, 4  ;;  %v2895_v59 = vsel %vm2887_vm2, %v2874_v35, %v2877_v9 }
 0x496   : > { %v3019_v43 = vadd.s32 %v3018_v61, %v3014_v25  ;;  %v2892_v2 = vsel %vm2890_vm7, %v2880_v54, 2102212464  ;;  %v2896_v31 = vsel %vm2890_vm7, %v2883_v27, 920167782  ;;  %v2899_v52 = vsel %vm2887_vm2, %v2877_v9, %v2880_v54 }
 0x497   : > { %vm2888_vm8 = vcmp.lt.s32.totalorder %v2868_v38, 2  ;;  %v2891_v32 = vsel %vm2887_vm2, %v2871_v23, %v2874_v35  ;;  %v2897_v36 = vsel %vm2889_vm3, %v2880_v54, %v2896_v31  ;;  %v2900_v47 = vsel %vm2890_vm7, %v2886_v57, 1326507024 }
 0x498   : > { %v3020_v6 = vadd.s32 536870912, %v3019_v43  ;;  %v2893_v53 = vsel %vm2889_vm3, %v2877_v9, %v2892_v2  ;;  %v2898_v16 = vsel %vm2888_vm8, %v2895_v59, %v2897_v36  ;;  %v2901_v48 = vsel %vm2889_vm3, %v2883_v27, %v2900_v47 }
 0x499   : > { %v2902_v40 = vsel %vm2888_vm8, %v2899_v52, %v2901_v48  ;;  %v5706_v1 = vmul.u32.u64.low %v2903_v3, %v2898_v16  ;;  %v5707_v11 = vmul.u32.u64.high %v2903_v3, %v2898_v16, %v5706_v1  ;;  %v2894_v24 = vsel %vm2888_vm8, %v2891_v32, %v2893_v53 }
 0x49a   : > { %v3021_v18 = vshrl.u32 %v3020_v6, 30  ;;  %v5709_v44 = vmul.u32.u64.low %v2903_v3, %v2902_v40  ;;  %v5710_v37 = vmul.u32.u64.high %v2903_v3, %v2902_v40, %v5709_v44  ;;  %v2910_v51 = vmul.u32 %v2903_v3, %v2894_v24 }
 0x49b   : > { %v2913_v49 = vadd.s32 1, %v5707_v11  ;;  %v3015_v34 = vadd.s32 %v5686_v7, %v5683_v5  ;;  %vm3051_vm6 = vweird.f32 %v5648_v55  ;;  %vm2947_vm7 = vweird.f32 %v5653_v12 }
 0x49c   : > { %v3022_v4 = vshll.u32 %v3021_v18, 30  ;;  %vm2912_vm9 = vc.u32 %v5710_v37, %v5706_v1  ;;  %v2911_v25 = vadd.s32 %v5706_v1, %v5710_v37  ;;  %v3045_v57 = vsub.s32 4, %v3021_v18 }
 0x49d   : > { %v2914_v41 = vsel %vm2912_vm9, %v2913_v49, %v5707_v11 }
 0x49e   : > { %v3023_v20 = vsub.s32 %v3019_v43, %v3022_v4  ;;  %v2915_v14 = vadd.s32 %v2914_v41, %v2910_v51  ;;  %v3046_v52 = vsel %vm2961_vm12, %v3045_v57, %v3021_v18 }
 0x49f   : > { %v3048_v47 = vsel %vm2960_vm13, 0, %v3046_v52 }
 0x4a0   : > { %v3025_v58 = vsub.s32 0, %v3023_v20  ;;  %v2916_v33 = vadd.s32 536870912, %v2915_v14  ;;  %v3052_v16 = vadd.s32 3, %v3048_v47 }
 0x4a2   : > { %v3307_v60 = vmin.u32 %v3025_v58, %v3023_v20  ;;  %v2917_v63 = vshrl.u32 %v2916_v33, 30  ;;  %v3053_v1 = vand.u32 3, %v3052_v16 }
 0x4a4   : > { %v3027_v30 = vclz %v3307_v60  ;;  %v2918_v0 = vshll.u32 %v2917_v63, 30  ;;  %v2941_v48 = vsub.s32 4, %v2917_v63  ;;  %vm3058_vm14 = vcmp.eq.s32.totalorder %v3053_v1, 2 }
 0x4a5   : > { %vm3055_vm0 = vcmp.eq.s32.totalorder %v3053_v1, 0  ;;  %vm3054_vm1 = vcmp.lt.s32.totalorder %v3053_v1, 2 }
 0x4a6   : > { %v3308_v21 = vadd.s32 4294967294, %v3027_v30  ;;  %v2919_v56 = vsub.s32 %v2915_v14, %v2918_v0  ;;  %v2942_v11 = vsel %vm2857_vm4, %v2941_v48, %v2917_v63 }
 0x4a7   : > { %v2944_v37 = vsel %vm2856_vm5, 0, %v2942_v11 }
 0x4a8   : > { %vm3309_vm10 = vcmp.lt.s32.totalorder %v3308_v21, 0  ;;  %v2921_v46 = vsub.s32 0, %v2919_v56 }
 0x4a9   : > { %v3030_v62 = vsel %vm3309_vm10, 0, %v3308_v21 }
 0x4aa   : > { %v3031_v38 = vsub.s32 32, %v3030_v62  ;;  %v3035_v3 = vsub.s32 4294967266, %v3030_v62  ;;  %v3032_v22 = vshll.u32 %v3023_v20, %v3030_v62  ;;  %v3303_v10 = vmin.u32 %v2921_v46, %v2919_v56 }
 0x4ab   : > { %v2948_v20 = vadd.s32 3, %v2944_v37 }
 0x4ac   : > { %v3033_v19 = vshrl.u32 %v3015_v34, %v3031_v38  ;;  %v3036_v45 = vadd.s32 127, %v3035_v3  ;;  %v2923_v15 = vclz %v3303_v10 }
 0x4ad   : > { %v2949_v14 = vand.u32 3, %v2948_v20 }
 0x4ae   : > { %v3034_v42 = vor.u32 %v3033_v19, %v3032_v22  ;;  %v3037_v28 = vshll.u32 %v3036_v45, 23  ;;  %v3304_v13 = vadd.s32 4294967294, %v2923_v15 }
 0x4af   : > { %vm2954_vm15 = vcmp.eq.s32.totalorder %v2949_v14, 2  ;;  %vm2951_vm2 = vcmp.eq.s32.totalorder %v2949_v14, 0  ;;  %vm2950_vm3 = vcmp.lt.s32.totalorder %v2949_v14, 2 }
 0x4b0   : > { %v3038_v8 = vor.u32 4788187, %v3037_v28  ;;  %v3041_v9 = vcvt.s32.f32 %v3034_v42  ;;  %vm3305_vm11 = vcmp.lt.s32.totalorder %v3304_v13, 0 }
 0x4b1   : > { %v2926_v17 = vsel %vm3305_vm11, 0, %v3304_v13 }
 0x4b2   : > { %v3039_v35 = vand.u32 2147483647, %v3038_v8  ;;  %v2927_v5 = vsub.s32 32, %v2926_v17  ;;  %v2931_v7 = vsub.s32 4294967266, %v2926_v17  ;;  %v2928_v54 = vshll.u32 %v2919_v56, %v2926_v17 }
 0x4b4   : > { %v3042_v26 = vmul.f32 %v3041_v9, %v3039_v35  ;;  %v2929_v23 = vshrl.u32 %v2911_v25, %v2927_v5  ;;  %v2932_v27 = vadd.s32 127, %v2931_v7 }
 0x4b6   : > { %v3043_v50 = vxor.u32 2147483648, %v3042_v26  ;;  %v2930_v59 = vor.u32 %v2929_v23, %v2928_v54  ;;  %v2933_v43 = vshll.u32 %v2932_v27, 23 }
 0x4b8   : > { %v3044_v61 = vsel %vm2961_vm12, %v3043_v50, %v3042_v26  ;;  %v2934_v31 = vor.u32 4788187, %v2933_v43  ;;  %v2937_v36 = vcvt.s32.f32 %v2930_v59 }
 0x4b9   : > { %v3047_v2 = vsel %vm2960_vm13, %v5648_v55, %v3044_v61 }
 0x4ba   : > { %4417 = vcosq.f32 %v3047_v2  ;;  %v2935_v32 = vand.u32 2147483647, %v2934_v31 }
 0x4bb   : > { %4419 = vsinq.f32 %v3047_v2 }
 0x4bc   : > { %v2938_v6 = vmul.f32 %v2937_v36, %v2935_v32 }
 0x4be   : > { %v2939_v53 = vxor.u32 2147483648, %v2938_v6 }
 0x4c0   : > { %v2940_v39 = vsel %vm2857_vm4, %v2939_v53, %v2938_v6 }
 0x4c1   : > { %v2943_v40 = vsel %vm2856_vm5, %v5653_v12, %v2940_v39 }
 0x4c2   : > { %4421 = vcosq.f32 %v2943_v40 }
 0x4c3   : > { %4423 = vsinq.f32 %v2943_v40 }
 0x4c7   : > { %v4418_v18 = vpop.eup %4417 }
 0x4c8   : > { %v4420_v44 = vpop.eup %4419  ;;  %v3059_v24 = vxor.u32 2147483648, %v4418_v18 }
 0x4c9   : > { %v3056_v4 = vxor.u32 2147483648, %v4420_v44 }
 0x4ca   : > { %v3060_v49 = vsel %vm3058_vm14, %v3059_v24, %v4420_v44 }
 0x4cb   : > { %v3057_v51 = vsel %vm3055_vm0, %v4418_v18, %v3056_v4 }
 0x4cc   : > { %v3061_v29 = vsel %vm3054_vm1, %v3057_v51, %v3060_v49 }
 0x4cd   : > { %v3062_v41 = vsel %vm3051_vm6, nan, %v3061_v29 }
 0x4ce   : > { %v3064_v58 = vmul.f32 %v3062_v41, %v3062_v41 }
 0x4cf   : > { %v4422_v33 = vpop.eup %4421 }
 0x4d0   : > { %v3066_v60 = vadd.f32 %v3064_v58, %v5648_v55  ;;  %v4424_v30 = vpop.eup %4423  ;;  %v2955_v63 = vxor.u32 2147483648, %v4422_v33 }
 0x4d1   : > { %v2952_v0 = vxor.u32 2147483648, %v4424_v30 }
 0x4d2   : > { %v3068_v21 = vmul.f32 0.1, %v3066_v60  ;;  %v2956_v56 = vsel %vm2954_vm15, %v2955_v63, %v4424_v30 }
 0x4d3   : > { %v2953_v34 = vsel %vm2951_vm2, %v4422_v33, %v2952_v0 }
 0x4d4   : > { %v3070_v62 = vmax.f32 %v3068_v21, %v3066_v60  ;;  %v2957_v38 = vsel %vm2950_vm3, %v2953_v34, %v2956_v56 }
 0x4d5   : > { %v2958_v55 = vsel %vm2947_vm7, nan, %v2957_v38 }
 0x4d6   : > { %3072 = vst [vmem:[%s4811_s12 + $0x8] sm:$0xff] %v3070_v62  ;;  %v3063_v3 = vmul.f32 %v2958_v55, %v2958_v55 }
 0x4d8   : > { %v3065_v46 = vadd.f32 %v3063_v3, %v5653_v12 }
 0x4da   : > { %v3067_v22 = vmul.f32 0.1, %v3065_v46 }
 0x4dc   : > { %v3069_v19 = vmax.f32 %v3067_v22, %v3065_v46 }
 0x4de   : > { %3071 = vst [vmem:[%s4811_s12] sm:$0xff] %v3069_v19 }
 0x4df   : > { %4542 = shalt.err (!%p4539_p9)
}
 0x4e0   : > { %s4543_s11 = scalar_lea.hbm %s5736_s27, 256  ;;  %s4547_s14 = scalar_lea.hbm %s5794_s6, 512 }
 0x4e1   : > { %p4544_p12 = scmp.ne.s32.totalorder %s5736_s27, %s4543_s11  ;;  %p4548_p3 = scmp.lt.s32.totalorder %s5736_s27, %s5794_s6 }
 0x4e2   : > { %p4549_p5 = scmp.lt.s32.totalorder %s4547_s14, %s4543_s11 }
 0x4e3   : > { %p4545_p2 = pnand %p4544_p12, %p4713_p4 }
 0x4e4   : > { %p4550_p10 = por %p4549_p5, %p4548_p3 }
 0x4e5   : > { %p4546_p1 = pneg %p4545_p2 }
 0x4e7   : > { %p4551_p11 = pnand %p4550_p10, %p4546_p1 }
 0x4e9   : > { %4554 = shalt.err (!%p4551_p11)
}
 0x4ea   : > { %s4636_s16 = smov 128   ;;  %s4637_s18 = smov 8  }
 0x4eb   : > { %4301 = dma.vmem_to_hbm [thread:$0]  (%p4713_p4), %s5738_s20, 256, %s5736_s27, %s5743_s28, %s4636_s16, %s4636_s16, %s4637_s18  }
 0x4ec PF: > { %p4328_p13 = scmp.ge.s32.totalorder %s4619_s26, 2  ;;  %s3104_s17 = sand.u32 1, %s4599_s21  }
 0x4ed   : > { %s3105_s24 = scalar_lea.sflag [#allocation6], %s3104_s17 }
 0x4ee   : > { %p4317_p0 = pnand %p4328_p13, %p4720_p8 }
 0x4f0   : > { %p4318_p6 = pneg %p4317_p0 }
 0x4f2   : > { %4594 = dma.done.wait (%p4318_p6), %s3105_s24, 256  }
 0x4f3   : > { %4596 = vsyncadd (%p4318_p6), %s3105_s24, 4294967040  ;;  %s22_s26 = sadd.s32 1, %s4619_s26   ;;  %s5810_s21 = smov %s4603_s22 }
 0x4f4   : > { %p19_p7 = scmp.ge.s32.totalorder %s22_s26, 4   ;;  %s5811_s22 = smov %s4607_s23 }
 0x4f5   : > { %s5812_s23 = smov %s4726_s10  ;;  %s5813_s24 = smov %s4615_s25 }
 0x4f6   : > { %s5814_s25 = smov %s5816_s29  ;;  %21 = sbr.rel (!%p19_p7) target bundleno = 7 (0x7), region = 222 }
 0x4fb   :  { %3110 = vsyncpa [#allocation5], 1 }
 0x4fc   :  { %3112 = vsyncpa [#allocation5 + $0x1], 1 }
 0x4fd   :  { %3113 = vsyncpa [#allocation8], 1 }
 0x4fe   :  { %3114 = vsyncpa [#allocation11], 1 }
 0x4ff   :  { %3115 = vsyncpa [#allocation6], 1 }
 0x500   :  { %3117 = vsyncpa [#allocation6 + $0x1], 1 }
 0x501   :  { %3118 = vsyncmov [#allocation3] }
 0x504   :  { %s3119_s7 = vpop.sfrf %3118 }
 0x505   :  { %p3315_p4 = scmp.ne.s32.totalorder %s3119_s7, 0 }
 0x507   :  { %3123 = shalt.err (%p3315_p4)  }
 0x508   :  { %3125 = vsyncmov [#allocation3 + $0x1] }
 0x50b   :  { %s3126_s9 = vpop.sfrf %3125 }
 0x50c   :  { %p3316_p8 = scmp.ne.s32.totalorder %s3126_s9, 0 }
 0x50e   :  { %3130 = shalt.err (%p3316_p8)  }

</bundles_post_ra>
